<compile_context>
chip_gen: v7x
topology: tpu7x:2x2x1
jax: 0.10.0
libtpu: 0.0.40
codegen_flags: <defaults>
</compile_context>

<pallas_src>
import functools

import jax
import jax.numpy as jnp
import numpy as np
from jax import lax
from jax.experimental import pallas as pl
from jax.experimental.pallas import tpu as pltpu

_NCOEF = 9                   # per-patch coefficient table width
_DEFAULT_BLOCK_ROWS = 1024   # soft cap on rows (patches * B*C) per grid step
_SQRT6 = 2.449489742783178   # unit-variance scale for a sum of two uniforms


def _cdiv(a, b):
    return -(-a // b)


def _mix32(v):
    """Cheap int32 hash (2 xor/shift/mul rounds); VPU-only, wraps on overflow."""
    c = 0x45D9F3B
    v = (v ^ (jnp.right_shift(v, 16) & 0xFFFF)) * c
    v = (v ^ (jnp.right_shift(v, 16) & 0xFFFF)) * c
    v = v ^ (jnp.right_shift(v, 16) & 0xFFFF)
    return v


def _augment_kernel(seed_ref,                       # scalar prefetch (SMEM)
                    x_ref, coef_ref, tmat_ref,      # VMEM inputs
                    o_ref,                          # VMEM output
                    *, k_pat, bc, pp, quality_threshold):
    f32 = jnp.float32
    rows = k_pat * bc
    x = x_ref[...]                                  # (R, PP); row = b*k_pat + p
    coef = coef_ref[...]                            # (k_pat, 9) per-patch coefs

    # ---- per-row stats over the P*P pixels (one pass: sum / sum of squares) ---
    sx = jnp.sum(x, axis=-1, keepdims=True)
    sxx = jnp.sum(x * x, axis=-1, keepdims=True)
    mean_r = sx * (1.0 / pp)
    var_r = jnp.maximum(sxx - sx * mean_r, 0.0) * (1.0 / (pp - 1))
    quality_r = (jnp.sqrt(var_r) + (1.0 - 2.0 * jnp.abs(mean_r - 0.5))
                 + var_r) * (1.0 / 3.0)

    # ---- per-patch quality / mean: average the bc rows of each patch ----------
    # rows of one patch are k_pat apart -> static sublane slices + adds (no MXU)
    q_g = quality_r[0:k_pat, :]
    m_g = mean_r[0:k_pat, :]
    for b in range(1, bc):
        q_g = q_g + quality_r[b * k_pat:(b + 1) * k_pat, :]
        m_g = m_g + mean_r[b * k_pat:(b + 1) * k_pat, :]
    pq = q_g * (1.0 / bc)                           # (k_pat, 1)
    m_patch = m_g * (1.0 / bc)                      # (k_pat, 1)

    # ---- decision flags (mutually exclusive strong/light, as in torch) --------
    f_low = (pq < quality_threshold).astype(f32)
    f_strong = f_low * coef[:, 0:1]
    f_drop = f_low * (pq < 0.3).astype(f32) * coef[:, 1:2]
    f_light = (1.0 - f_low) * coef[:, 2:3]

    # ---- collapse every branch into one per-patch affine form -----------------
    scale = 1.0 + f_strong * coef[:, 3:4] + f_light * coef[:, 7:8]
    noise_c = f_strong * coef[:, 4:5] + f_light * coef[:, 8:9]
    blur_c = f_strong * coef[:, 5:6]
    offset = f_strong * coef[:, 6:7] * m_patch
    keep = 1.0 - f_drop

    def rowsify(v):   # (k_pat,1) -> (R,1): bc copies stacked along sublanes
        return jnp.concatenate([v] * bc, axis=0) if bc > 1 else v

    scale_r, noise_cr, blur_cr = rowsify(scale), rowsify(noise_c), rowsify(blur_c)
    offset_r, keep_r = rowsify(offset), rowsify(keep)

    # ---- 3x3 AvgPool2d(stride=1, pad=1, count_include_pad) on the MXU ---------
    # bf16 hi/lo split keeps ~f32 accuracy; tmat is the exact 0/1 kron stencil.
    t = tmat_ref[...]
    x_hi = x.astype(jnp.bfloat16)
    x_lo = (x - x_hi.astype(f32)).astype(jnp.bfloat16)
    blurred = (jnp.dot(x_hi, t, preferred_element_type=f32)
               + jnp.dot(x_lo, t, preferred_element_type=f32)) * (1.0 / 9.0)

    # ---- VPU-only pseudo-noise (two 16-bit uniforms -> triangular, var = 1) ---
    rid = lax.broadcasted_iota(jnp.int32, (rows, pp), 0)
    cid = lax.broadcasted_iota(jnp.int32, (rows, pp), 1)
    h = _mix32((pl.program_id(0) * rows + rid) * pp + cid + seed_ref[0])
    u0 = ((h & 0xFFFF).astype(f32) + 0.5) * (1.0 / 65536.0)
    u1 = ((jnp.right_shift(h, 16) & 0xFFFF).astype(f32) + 0.5) * (1.0 / 65536.0)
    noise = (u0 + u1 - 1.0) * _SQRT6

    out = scale_r * x + noise_cr * noise + blur_cr * blurred + offset_r
    o_ref[...] = (jnp.clip(out, 0.0, 1.0) * keep_r).astype(o_ref.dtype)


def _choose_blocking(n_patches, bc, target_rows, min_grid=4):
    """Patches per block (multiple of 8), grid size, padded patch count.

    Targets >= min_grid grid steps (DMA/compute overlap + v7x dual-TC sharding)
    while capping the block at ~target_rows rows; VMEM is linear in the block.
    """
    k_cap = max(8, (max(target_rows, 8 * bc) // bc) // 8 * 8)
    k_for_grid = max(8, _cdiv(_cdiv(n_patches, min_grid), 8) * 8)
    k = max(8, min(k_cap, k_for_grid))
    grid = max(1, _cdiv(n_patches, k))
    return k, grid, grid * k


def _pack_coefs(raw, strong_aug_prob, patch_drop_prob):
    """Data-independent per-patch pieces of the affine augmentation form."""
    f32 = jnp.float32
    aug, lc = raw["aug"], raw["lightc"]
    c_strong = (raw["r_strong"] < strong_aug_prob).astype(f32)
    c_drop = (raw["r_drop"] < patch_drop_prob).astype(f32)
    c_light = (raw["r_light"] < 0.3).astype(f32)
    s_scale_m1 = jnp.where(aug == 1, -1.0,
                  jnp.where(aug == 2, raw["bright"] - 1.0,
                   jnp.where(aug == 3, raw["contr"] - 1.0, 0.0)))
    s_ncoef = jnp.where(aug == 0, 0.1, 0.0)
    s_bcoef = jnp.where(aug == 1, 1.0, 0.0)
    s_ccoef = jnp.where(aug == 3, 1.0 - raw["contr"], 0.0)
    l_scale_m1 = jnp.where(lc == 1, raw["light"] - 1.0, 0.0)
    l_ncoef = jnp.where(lc == 0, 0.05, 0.0)
    return jnp.stack([c_strong, c_drop, c_light, s_scale_m1, s_ncoef,
                      s_bcoef, s_ccoef, l_scale_m1, l_ncoef], axis=1).astype(f32)


def _prepare_randoms(key, n_patches, strong_aug_prob, patch_drop_prob):
    ks = jax.random.split(key, 9)
    raw = dict(
        r_strong=jax.random.uniform(ks[0], (n_patches,), jnp.float32),
        r_drop=jax.random.uniform(ks[1], (n_patches,), jnp.float32),
        r_light=jax.random.uniform(ks[2], (n_patches,), jnp.float32),
        bright=jax.random.uniform(ks[3], (n_patches,), jnp.float32, 0.7, 1.3),
        contr=jax.random.uniform(ks[4], (n_patches,), jnp.float32, 0.7, 1.3),
        light=jax.random.uniform(ks[5], (n_patches,), jnp.float32, 0.9, 1.1),
        aug=jax.random.randint(ks[6], (n_patches,), 0, 4, jnp.int32),
        lightc=jax.random.randint(ks[7], (n_patches,), 0, 2, jnp.int32),
    )
    seed = jax.random.randint(ks[8], (1,), 0, 2 ** 30, jnp.int32)
    coef = _pack_coefs(raw, strong_aug_prob, patch_drop_prob)
    return raw, coef, seed


def _blur_matrix(patch_size):
    idx = jnp.arange(patch_size)
    t = (jnp.abs(idx[:, None] - idx[None, :]) <= 1).astype(jnp.float32)
    return jnp.kron(t, t)                 # (P*P, P*P) exact 0/1 3x3-box stencil


def _to_block_rows(img, patch_size, k_pat, grid_n):
    """(B,C,H,W) -> (grid_n*B*C*k_pat, P*P); inside a block: row = b*k_pat + p."""
    B, C, H, W = img.shape
    P = patch_size
    pH, pW = H // P, W // P
    Np, BC, PP = pH * pW, B * C, P * P
    xp = (img.reshape(B, C, pH, P, pW, P)
             .transpose(2, 4, 0, 1, 3, 5)          # (pH,pW,B,C,P,P)
             .reshape(Np, BC, PP))
    np_pad = grid_n * k_pat
    if np_pad > Np:
        xp = jnp.pad(xp, ((0, np_pad - Np), (0, 0), (0, 0)))
    return (xp.reshape(grid_n, k_pat, BC, PP)
              .transpose(0, 2, 1, 3)               # (grid, BC, k, PP)
              .reshape(np_pad * BC, PP))


def _from_block_rows(out2d, dims, patch_size, k_pat, grid_n):
    B, C, H, W = dims
    P = patch_size
    pH, pW = H // P, W // P
    Np, BC, PP = pH * pW, B * C, P * P
    np_pad = grid_n * k_pat
    return (out2d.reshape(grid_n, BC, k_pat, PP)
                 .transpose(0, 2, 1, 3)
                 .reshape(np_pad, BC, PP)[:Np]
                 .reshape(pH, pW, B, C, P, P)
                 .transpose(2, 3, 0, 4, 1, 5)
                 .reshape(B, C, H, W))


def quality_aware_patch_augment(img, key, *, patch_size=16, quality_threshold=0.7,
                                strong_aug_prob=0.8, patch_drop_prob=0.1,
                                block_rows=_DEFAULT_BLOCK_ROWS, min_grid=4):
    img = img.astype(jnp.float32)
    if img.ndim == 3:                     # torch module unsqueezes 3-D input
        img = img[None]
    B, C, H, W = img.shape
    P = patch_size
    assert H % P == 0 and W % P == 0, "H, W must be multiples of patch_size"
    pH, pW = H // P, W // P
    Np, BC, PP = pH * pW, B * C, P * P

    _raw, coef_patch, seed = _prepare_randoms(key, Np, strong_aug_prob,
                                              patch_drop_prob)
    del _raw

    k_pat, grid_n, np_pad = _choose_blocking(Np, BC, block_rows, min_grid)
    R = k_pat * BC

    x2d = _to_block_rows(img, P, k_pat, grid_n)
    if np_pad > Np:                       # padded patches: all-zero coefficients
        coef_patch = jnp.pad(coef_patch, ((0, np_pad - Np), (0, 0)))
    tmat = _blur_matrix(P).astype(jnp.bfloat16)    # 0/1 entries: lossless in bf16

    kernel = functools.partial(_augment_kernel, k_pat=k_pat, bc=BC, pp=PP,
                               quality_threshold=quality_threshold)

    grid_spec = pltpu.PrefetchScalarGridSpec(
        num_scalar_prefetch=1,                     # seed -> SMEM
        grid=(grid_n,),
        in_specs=[
            pl.BlockSpec((R, PP), lambda s, sref: (s, 0)),          # x (lane-dense)
            pl.BlockSpec((k_pat, _NCOEF), lambda s, sref: (s, 0)),  # per-patch coefs
            pl.BlockSpec((PP, PP), lambda s, sref: (0, 0)),         # blur stencil (resident)
        ],
        out_specs=pl.BlockSpec((R, PP), lambda s, sref: (s, 0)),
    )

    # linear VMEM footprint (x/out double buffers + temporaries + stencil)
    vmem_limit = int(min(48 * 2 ** 20, max(16 * 2 ** 20, 12 * R * PP * 4)))

    out2d = pl.pallas_call(
        kernel,
        out_shape=jax.ShapeDtypeStruct((np_pad * BC, PP), jnp.float32),
        grid_spec=grid_spec,
        compiler_params=pltpu.CompilerParams(
            dimension_semantics=("parallel",),     # no cross-step state
            vmem_limit_bytes=vmem_limit),
    )(seed, x2d, coef_patch, tmat)

    return _from_block_rows(out2d, (B, C, H, W), P, k_pat, grid_n)


def _jax_reference(x2d, raw, wblur, bc, pp, quality_threshold,
                   strong_aug_prob, patch_drop_prob):
    """Pure-JAX replica of the module math (noise treated as 0; noise rows masked)."""
    f32 = jnp.float32
    rows = x2d.shape[0]
    npatch = rows // bc
    mean_r = x2d.mean(-1, keepdims=True)
    var_r = jnp.sum((x2d - mean_r) ** 2, -1, keepdims=True) / (pp - 1)
    std_r = jnp.sqrt(var_r)
    q_r = (std_r + (1.0 - 2.0 * jnp.abs(mean_r - 0.5)) + var_r) / 3.0
    pq = q_r.reshape(npatch, bc).mean(-1)                 # (Np,)
    m_patch = mean_r.reshape(npatch, bc).mean(-1)         # (Np,)

    f_low = pq < quality_threshold
    f_strong = f_low & (raw["r_strong"] < strong_aug_prob)
    f_drop = f_low & (pq < 0.3) & (raw["r_drop"] < patch_drop_prob)
    f_light = (~f_low) & (raw["r_light"] < 0.3)
    aug, lc = raw["aug"], raw["lightc"]
    fn = f_strong & (aug == 0); fb = f_strong & (aug == 1)
    fbr = f_strong & (aug == 2); fct = f_strong & (aug == 3)
    fln = f_light & (lc == 0); flb = f_light & (lc == 1)

    x3 = x2d.reshape(npatch, bc, pp)
    e = lambda a: a[:, None, None].astype(f32)
    blurred = jnp.einsum("nbp,pq->nbq", x3, wblur,
                         precision=jax.lax.Precision.HIGHEST)
    bright = jnp.clip(x3 * e(raw["bright"]), 0.0, 1.0)
    mpe = m_patch[:, None, None]
    contrast = jnp.clip((x3 - mpe) * e(raw["contr"]) + mpe, 0.0, 1.0)
    lbright = jnp.clip(x3 * e(raw["light"]), 0.0, 1.0)
    ident_clip = jnp.clip(x3, 0.0, 1.0)        # noise paths with noise == 0

    out = x3
    out = out + e(fn) * (ident_clip - out)
    out = out + e(fb) * (blurred - out)
    out = out + e(fbr) * (bright - out)
    out = out + e(fct) * (contrast - out)
    out = out * (1.0 - e(f_drop))
    out = out + e(fln) * (ident_clip - out)
    out = out + e(flb) * (lbright - out)

    noise_rows = jnp.repeat((fn | fln) & (~f_drop), bc)   # rows we cannot replay
    return out.reshape(rows, pp), noise_rows


if __name__ == "__main__":
    key = jax.random.PRNGKey(0)
    k_img, k_aug1, k_aug2 = jax.random.split(key, 3)

    B, C, H, W, P = 2, 1, 224, 224, 16   # C=1: the module's quality squeeze assumes grayscale
    img = jax.random.uniform(k_img, (B, C, H, W), jnp.float32)
    # a constant low-quality region so the strong / patch-drop branches trigger
    img = img.at[:, :, : 4 * P, : 4 * P].set(0.9)
    pH, pW = H // P, W // P
    Np, BC, PP = pH * pW, B * C, P * P

    def _check(aug_key, **kw):
        out = quality_aware_patch_augment(img, aug_key, patch_size=P, **kw)
        out = jax.block_until_ready(out)
        assert out.shape == img.shape and out.dtype == jnp.float32

        sap = kw.get("strong_aug_prob", 0.8)
        pdp = kw.get("patch_drop_prob", 0.1)
        qth = kw.get("quality_threshold", 0.7)
        raw, _coef, _seed = _prepare_randoms(aug_key, Np, sap, pdp)
        x2d = (img.reshape(B, C, pH, P, pW, P)
                  .transpose(2, 4, 0, 1, 3, 5).reshape(Np * BC, PP))
        wblur = _blur_matrix(P) / 9.0
        ref2d, noise_rows = _jax_reference(x2d, raw, wblur, BC, PP, qth, sap, pdp)

        out2d = (out.reshape(B, C, pH, P, pW, P)
                    .transpose(2, 4, 0, 1, 3, 5).reshape(Np * BC, PP))
        out2d = np.asarray(out2d)
        ref2d = np.asarray(ref2d)
        nz = np.asarray(noise_rows)

        # tight match (hi/lo bf16 blur error ~5e-6) on every non-noise row
        np.testing.assert_allclose(out2d[~nz], ref2d[~nz], atol=2e-5, rtol=2e-5)
        assert out2d.min() >= 0.0 and out2d.max() <= 1.0
        if nz.any():   # in-kernel hash noise cannot be replayed host-side: sanity only
            base = np.asarray(jnp.clip(x2d, 0.0, 1.0))
            dev = np.abs(out2d[nz] - base[nz]).mean()
            assert 0.005 < dev < 0.25, dev

    # default params: every patch is below the 0.7 threshold -> strong / drop paths;
    # 4-step grid with (112, 256) lane-dense blocks
    _check(k_aug1)
    # lower threshold: light paths + drops; smaller blocks, 7-step grid, patch padding
    _check(k_aug2, quality_threshold=0.35, patch_drop_prob=0.5,
           block_rows=512, min_grid=8)

    print("KERNEL_OK")
</pallas_src>

<mosaic_0001>
module attributes {stable_mosaic.version = 11 : i64} {
  func.func @_augment_kernel(%arg0: i32, %arg1: memref<1xi32, #tpu.memory_space<smem>>, %arg2: memref<112x256xf32, #tpu.memory_space<vmem>>, %arg3: memref<56x9xf32, #tpu.memory_space<vmem>>, %arg4: memref<256x256xbf16, #tpu.memory_space<vmem>>, %arg5: memref<112x256xf32, #tpu.memory_space<vmem>>) attributes {dimension_semantics = [#tpu.dimension_semantics<parallel>], iteration_bounds = array<i64: 4>, scalar_prefetch = 1 : i64, scratch_operands = 0 : i64, tpu.core_type = #tpu.core_type<tc>, window_params = [{transform_indices = @transform_0, window_bounds = array<i64: 112, 256>}, {transform_indices = @transform_1, window_bounds = array<i64: 56, 9>}, {pipeline_mode = #tpu.pipeline_mode<synchronous>, transform_indices = @transform_2, window_bounds = array<i64: 256, 256>}, {transform_indices = @transform_3, window_bounds = array<i64: 112, 256>}]} {
    %c0 = arith.constant 0 : index
    %c0_0 = arith.constant 0 : index
    %0 = vector.load %arg2[%c0, %c0_0] : memref<112x256xf32, #tpu.memory_space<vmem>>, vector<112x256xf32>
    %c0_1 = arith.constant 0 : index
    %c0_2 = arith.constant 0 : index
    %1 = vector.load %arg3[%c0_1, %c0_2] : memref<56x9xf32, #tpu.memory_space<vmem>>, vector<56x9xf32>
    %cst = arith.constant dense<0.000000e+00> : vector<112xf32>
    %2 = vector.multi_reduction <add>, %0, %cst [1] : vector<112x256xf32> to vector<112xf32>
    %3 = vector.shape_cast %2 : vector<112xf32> to vector<112x1xf32>
    %4 = arith.mulf %0, %0 : vector<112x256xf32>
    %cst_3 = arith.constant dense<0.000000e+00> : vector<112xf32>
    %5 = vector.multi_reduction <add>, %4, %cst_3 [1] : vector<112x256xf32> to vector<112xf32>
    %6 = vector.shape_cast %5 : vector<112xf32> to vector<112x1xf32>
    %cst_4 = arith.constant 3.906250e-03 : f32
    %7 = vector.broadcast %cst_4 : f32 to vector<112x1xf32>
    %8 = arith.mulf %3, %7 : vector<112x1xf32>
    %9 = arith.mulf %3, %8 : vector<112x1xf32>
    %10 = arith.subf %6, %9 : vector<112x1xf32>
    %cst_5 = arith.constant 0.000000e+00 : f32
    %11 = vector.broadcast %cst_5 : f32 to vector<112x1xf32>
    %12 = arith.maximumf %10, %11 : vector<112x1xf32>
    %cst_6 = arith.constant 0.00392156886 : f32
    %13 = vector.broadcast %cst_6 : f32 to vector<112x1xf32>
    %14 = arith.mulf %12, %13 : vector<112x1xf32>
    %15 = math.sqrt %14 : vector<112x1xf32>
    %cst_7 = arith.constant 5.000000e-01 : f32
    %16 = vector.broadcast %cst_7 : f32 to vector<112x1xf32>
    %17 = arith.subf %8, %16 : vector<112x1xf32>
    %18 = math.absf %17 : vector<112x1xf32>
    %cst_8 = arith.constant 2.000000e+00 : f32
    %19 = vector.broadcast %cst_8 : f32 to vector<112x1xf32>
    %20 = arith.mulf %19, %18 : vector<112x1xf32>
    %cst_9 = arith.constant 1.000000e+00 : f32
    %21 = vector.broadcast %cst_9 : f32 to vector<112x1xf32>
    %22 = arith.subf %21, %20 : vector<112x1xf32>
    %23 = arith.addf %15, %22 : vector<112x1xf32>
    %24 = arith.addf %23, %14 : vector<112x1xf32>
    %cst_10 = arith.constant 0.333333343 : f32
    %25 = vector.broadcast %cst_10 : f32 to vector<112x1xf32>
    %26 = arith.mulf %24, %25 : vector<112x1xf32>
    %27 = vector.extract_strided_slice %26 {offsets = [0, 0], sizes = [56, 1], strides = [1, 1]} : vector<112x1xf32> to vector<56x1xf32>
    %28 = vector.extract_strided_slice %8 {offsets = [0, 0], sizes = [56, 1], strides = [1, 1]} : vector<112x1xf32> to vector<56x1xf32>
    %29 = vector.extract_strided_slice %26 {offsets = [56, 0], sizes = [56, 1], strides = [1, 1]} : vector<112x1xf32> to vector<56x1xf32>
    %30 = arith.addf %27, %29 : vector<56x1xf32>
    %31 = vector.extract_strided_slice %8 {offsets = [56, 0], sizes = [56, 1], strides = [1, 1]} : vector<112x1xf32> to vector<56x1xf32>
    %32 = arith.addf %28, %31 : vector<56x1xf32>
    %cst_11 = arith.constant 5.000000e-01 : f32
    %33 = vector.broadcast %cst_11 : f32 to vector<56x1xf32>
    %34 = arith.mulf %30, %33 : vector<56x1xf32>
    %cst_12 = arith.constant 5.000000e-01 : f32
    %35 = vector.broadcast %cst_12 : f32 to vector<56x1xf32>
    %36 = arith.mulf %32, %35 : vector<56x1xf32>
    %cst_13 = arith.constant 0.699999988 : f32
    %37 = vector.broadcast %cst_13 : f32 to vector<56x1xf32>
    %38 = arith.cmpf olt, %34, %37 : vector<56x1xf32>
    %39 = arith.extui %38 : vector<56x1xi1> to vector<56x1xi32>
    %40 = arith.sitofp %39 : vector<56x1xi32> to vector<56x1xf32>
    %41 = vector.extract_strided_slice %1 {offsets = [0, 0], sizes = [56, 1], strides = [1, 1]} : vector<56x9xf32> to vector<56x1xf32>
    %42 = arith.mulf %40, %41 : vector<56x1xf32>
    %cst_14 = arith.constant 3.000000e-01 : f32
    %43 = vector.broadcast %cst_14 : f32 to vector<56x1xf32>
    %44 = arith.cmpf olt, %34, %43 : vector<56x1xf32>
    %45 = arith.extui %44 : vector<56x1xi1> to vector<56x1xi32>
    %46 = arith.sitofp %45 : vector<56x1xi32> to vector<56x1xf32>
    %47 = arith.mulf %40, %46 : vector<56x1xf32>
    %48 = vector.extract_strided_slice %1 {offsets = [0, 1], sizes = [56, 1], strides = [1, 1]} : vector<56x9xf32> to vector<56x1xf32>
    %49 = arith.mulf %47, %48 : vector<56x1xf32>
    %cst_15 = arith.constant 1.000000e+00 : f32
    %50 = vector.broadcast %cst_15 : f32 to vector<56x1xf32>
    %51 = arith.subf %50, %40 : vector<56x1xf32>
    %52 = vector.extract_strided_slice %1 {offsets = [0, 2], sizes = [56, 1], strides = [1, 1]} : vector<56x9xf32> to vector<56x1xf32>
    %53 = arith.mulf %51, %52 : vector<56x1xf32>
    %54 = vector.extract_strided_slice %1 {offsets = [0, 3], sizes = [56, 1], strides = [1, 1]} : vector<56x9xf32> to vector<56x1xf32>
    %55 = arith.mulf %42, %54 : vector<56x1xf32>
    %cst_16 = arith.constant 1.000000e+00 : f32
    %56 = vector.broadcast %cst_16 : f32 to vector<56x1xf32>
    %57 = arith.addf %56, %55 : vector<56x1xf32>
    %58 = vector.extract_strided_slice %1 {offsets = [0, 7], sizes = [56, 1], strides = [1, 1]} : vector<56x9xf32> to vector<56x1xf32>
    %59 = arith.mulf %53, %58 : vector<56x1xf32>
    %60 = arith.addf %57, %59 : vector<56x1xf32>
    %61 = vector.extract_strided_slice %1 {offsets = [0, 4], sizes = [56, 1], strides = [1, 1]} : vector<56x9xf32> to vector<56x1xf32>
    %62 = arith.mulf %42, %61 : vector<56x1xf32>
    %63 = vector.extract_strided_slice %1 {offsets = [0, 8], sizes = [56, 1], strides = [1, 1]} : vector<56x9xf32> to vector<56x1xf32>
    %64 = arith.mulf %53, %63 : vector<56x1xf32>
    %65 = arith.addf %62, %64 : vector<56x1xf32>
    %66 = vector.extract_strided_slice %1 {offsets = [0, 5], sizes = [56, 1], strides = [1, 1]} : vector<56x9xf32> to vector<56x1xf32>
    %67 = arith.mulf %42, %66 : vector<56x1xf32>
    %68 = vector.extract_strided_slice %1 {offsets = [0, 6], sizes = [56, 1], strides = [1, 1]} : vector<56x9xf32> to vector<56x1xf32>
    %69 = arith.mulf %42, %68 : vector<56x1xf32>
    %70 = arith.mulf %69, %36 : vector<56x1xf32>
    %cst_17 = arith.constant 1.000000e+00 : f32
    %71 = vector.broadcast %cst_17 : f32 to vector<56x1xf32>
    %72 = arith.subf %71, %49 : vector<56x1xf32>
    %73 = tpu.concatenate %60, %60 in 0 : vector<56x1xf32>, vector<56x1xf32> -> vector<112x1xf32>
    %74 = tpu.concatenate %65, %65 in 0 : vector<56x1xf32>, vector<56x1xf32> -> vector<112x1xf32>
    %75 = tpu.concatenate %67, %67 in 0 : vector<56x1xf32>, vector<56x1xf32> -> vector<112x1xf32>
    %76 = tpu.concatenate %70, %70 in 0 : vector<56x1xf32>, vector<56x1xf32> -> vector<112x1xf32>
    %77 = tpu.concatenate %72, %72 in 0 : vector<56x1xf32>, vector<56x1xf32> -> vector<112x1xf32>
    %c0_18 = arith.constant 0 : index
    %c0_19 = arith.constant 0 : index
    %78 = vector.load %arg4[%c0_18, %c0_19] : memref<256x256xbf16, #tpu.memory_space<vmem>>, vector<256x256xbf16>
    %79 = arith.truncf %0 : vector<112x256xf32> to vector<112x256xbf16>
    %80 = arith.extf %79 : vector<112x256xbf16> to vector<112x256xf32>
    %81 = arith.subf %0, %80 : vector<112x256xf32>
    %82 = arith.truncf %81 : vector<112x256xf32> to vector<112x256xbf16>
    %cst_20 = arith.constant dense<0.000000e+00> : vector<112x256xf32>
    %83 = tpu.matmul %79, %78, %cst_20 {dimension_numbers = #tpu.dot_dimension_numbers<[1], [0], [0], [1], [0, 0, 1, 1], [], []>} : vector<112x256xbf16>, vector<256x256xbf16>, vector<112x256xf32> -> vector<112x256xf32>
    %cst_21 = arith.constant dense<0.000000e+00> : vector<112x256xf32>
    %84 = tpu.matmul %82, %78, %cst_21 {dimension_numbers = #tpu.dot_dimension_numbers<[1], [0], [0], [1], [0, 0, 1, 1], [], []>} : vector<112x256xbf16>, vector<256x256xbf16>, vector<112x256xf32> -> vector<112x256xf32>
    %85 = arith.addf %83, %84 : vector<112x256xf32>
    %cst_22 = arith.constant 0.111111112 : f32
    %86 = vector.broadcast %cst_22 : f32 to vector<112x256xf32>
    %87 = arith.mulf %85, %86 : vector<112x256xf32>
    %88 = tpu.iota {dimensions = array<i32: 0>} : vector<112x256xi32>
    %89 = tpu.iota {dimensions = array<i32: 1>} : vector<112x256xi32>
    %c112_i32 = arith.constant 112 : i32
    %90 = arith.muli %arg0, %c112_i32 : i32
    %91 = vector.broadcast %90 : i32 to vector<112x256xi32>
    %92 = arith.addi %91, %88 : vector<112x256xi32>
    %c256_i32 = arith.constant 256 : i32
    %93 = vector.broadcast %c256_i32 : i32 to vector<112x256xi32>
    %94 = arith.muli %92, %93 : vector<112x256xi32>
    %95 = arith.addi %94, %89 : vector<112x256xi32>
    %c0_23 = arith.constant 0 : index
    %96 = memref.load %arg1[%c0_23] : memref<1xi32, #tpu.memory_space<smem>>
    %97 = vector.broadcast %96 : i32 to vector<112x256xi32>
    %98 = arith.addi %95, %97 : vector<112x256xi32>
    %c16_i32 = arith.constant 16 : i32
    %99 = vector.broadcast %c16_i32 : i32 to vector<112x256xi32>
    %100 = arith.shrsi %98, %99 : vector<112x256xi32>
    %c65535_i32 = arith.constant 65535 : i32
    %101 = vector.broadcast %c65535_i32 : i32 to vector<112x256xi32>
    %102 = arith.andi %100, %101 : vector<112x256xi32>
    %103 = arith.xori %98, %102 : vector<112x256xi32>
    %c73244475_i32 = arith.constant 73244475 : i32
    %104 = vector.broadcast %c73244475_i32 : i32 to vector<112x256xi32>
    %105 = arith.muli %103, %104 : vector<112x256xi32>
    %c16_i32_24 = arith.constant 16 : i32
    %106 = vector.broadcast %c16_i32_24 : i32 to vector<112x256xi32>
    %107 = arith.shrsi %105, %106 : vector<112x256xi32>
    %c65535_i32_25 = arith.constant 65535 : i32
    %108 = vector.broadcast %c65535_i32_25 : i32 to vector<112x256xi32>
    %109 = arith.andi %107, %108 : vector<112x256xi32>
    %110 = arith.xori %105, %109 : vector<112x256xi32>
    %c73244475_i32_26 = arith.constant 73244475 : i32
    %111 = vector.broadcast %c73244475_i32_26 : i32 to vector<112x256xi32>
    %112 = arith.muli %110, %111 : vector<112x256xi32>
    %c16_i32_27 = arith.constant 16 : i32
    %113 = vector.broadcast %c16_i32_27 : i32 to vector<112x256xi32>
    %114 = arith.shrsi %112, %113 : vector<112x256xi32>
    %c65535_i32_28 = arith.constant 65535 : i32
    %115 = vector.broadcast %c65535_i32_28 : i32 to vector<112x256xi32>
    %116 = arith.andi %114, %115 : vector<112x256xi32>
    %117 = arith.xori %112, %116 : vector<112x256xi32>
    %c65535_i32_29 = arith.constant 65535 : i32
    %118 = vector.broadcast %c65535_i32_29 : i32 to vector<112x256xi32>
    %119 = arith.andi %117, %118 : vector<112x256xi32>
    %120 = arith.sitofp %119 : vector<112x256xi32> to vector<112x256xf32>
    %cst_30 = arith.constant 5.000000e-01 : f32
    %121 = vector.broadcast %cst_30 : f32 to vector<112x256xf32>
    %122 = arith.addf %120, %121 : vector<112x256xf32>
    %cst_31 = arith.constant 1.52587891E-5 : f32
    %123 = vector.broadcast %cst_31 : f32 to vector<112x256xf32>
    %124 = arith.mulf %122, %123 : vector<112x256xf32>
    %c16_i32_32 = arith.constant 16 : i32
    %125 = vector.broadcast %c16_i32_32 : i32 to vector<112x256xi32>
    %126 = arith.shrsi %117, %125 : vector<112x256xi32>
    %c65535_i32_33 = arith.constant 65535 : i32
    %127 = vector.broadcast %c65535_i32_33 : i32 to vector<112x256xi32>
    %128 = arith.andi %126, %127 : vector<112x256xi32>
    %129 = arith.sitofp %128 : vector<112x256xi32> to vector<112x256xf32>
    %cst_34 = arith.constant 5.000000e-01 : f32
    %130 = vector.broadcast %cst_34 : f32 to vector<112x256xf32>
    %131 = arith.addf %129, %130 : vector<112x256xf32>
    %cst_35 = arith.constant 1.52587891E-5 : f32
    %132 = vector.broadcast %cst_35 : f32 to vector<112x256xf32>
    %133 = arith.mulf %131, %132 : vector<112x256xf32>
    %134 = arith.addf %124, %133 : vector<112x256xf32>
    %cst_36 = arith.constant 1.000000e+00 : f32
    %135 = vector.broadcast %cst_36 : f32 to vector<112x256xf32>
    %136 = arith.subf %134, %135 : vector<112x256xf32>
    %cst_37 = arith.constant 2.44948983 : f32
    %137 = vector.broadcast %cst_37 : f32 to vector<112x256xf32>
    %138 = arith.mulf %136, %137 : vector<112x256xf32>
    %139 = vector.broadcast %73 : vector<112x1xf32> to vector<112x256xf32>
    %140 = arith.mulf %139, %0 : vector<112x256xf32>
    %141 = vector.broadcast %74 : vector<112x1xf32> to vector<112x256xf32>
    %142 = arith.mulf %141, %138 : vector<112x256xf32>
    %143 = arith.addf %140, %142 : vector<112x256xf32>
    %144 = vector.broadcast %75 : vector<112x1xf32> to vector<112x256xf32>
    %145 = arith.mulf %144, %87 : vector<112x256xf32>
    %146 = arith.addf %143, %145 : vector<112x256xf32>
    %147 = vector.broadcast %76 : vector<112x1xf32> to vector<112x256xf32>
    %148 = arith.addf %146, %147 : vector<112x256xf32>
    %cst_38 = arith.constant 0.000000e+00 : f32
    %cst_39 = arith.constant 1.000000e+00 : f32
    %149 = vector.broadcast %cst_38 : f32 to vector<112x256xf32>
    %150 = arith.maximumf %149, %148 : vector<112x256xf32>
    %151 = vector.broadcast %cst_39 : f32 to vector<112x256xf32>
    %152 = arith.minimumf %151, %150 : vector<112x256xf32>
    %153 = vector.broadcast %77 : vector<112x1xf32> to vector<112x256xf32>
    %154 = arith.mulf %152, %153 : vector<112x256xf32>
    %c0_40 = arith.constant 0 : index
    %c0_41 = arith.constant 0 : index
    %155 = vector.load %arg5[%c0_40, %c0_41] : memref<112x256xf32, #tpu.memory_space<vmem>>, vector<112x256xf32>
    tpu.vector_store %arg5[%c0_40, %c0_41], %154 {strides = array<i32>} : memref<112x256xf32, #tpu.memory_space<vmem>>, vector<112x256xf32>,
    return
  }
  func.func @transform_0(%arg0: i32, %arg1: memref<1xi32, #tpu.memory_space<smem>>) -> (i32, i32) {
    %c0_i32 = arith.constant 0 : i32
    %c0_i32_0 = arith.constant 0 : i32
    return %arg0, %c0_i32 : i32, i32
  }
  func.func @transform_1(%arg0: i32, %arg1: memref<1xi32, #tpu.memory_space<smem>>) -> (i32, i32) {
    %c0_i32 = arith.constant 0 : i32
    %c0_i32_0 = arith.constant 0 : i32
    return %arg0, %c0_i32 : i32, i32
  }
  func.func @transform_2(%arg0: i32, %arg1: memref<1xi32, #tpu.memory_space<smem>>) -> (i32, i32) {
    %c0_i32 = arith.constant 0 : i32
    %c0_i32_0 = arith.constant 0 : i32
    %c0_i32_1 = arith.constant 0 : i32
    return %c0_i32, %c0_i32_0 : i32, i32
  }
  func.func @transform_3(%arg0: i32, %arg1: memref<1xi32, #tpu.memory_space<smem>>) -> (i32, i32) {
    %c0_i32 = arith.constant 0 : i32
    %c0_i32_0 = arith.constant 0 : i32
    return %arg0, %c0_i32 : i32, i32
  }
}

</mosaic_0001>

<bundles_post_ra>
// kernel: tpu_custom_call.1
= control target key start
LH: loop header
LB: loop body
LE: loop exit
PB: predicated region body
PF: predicated region fallthrough
CT: control target
= control target key end

     0   :  { %s5291_s0 = inlined_call_operand.<no memory space> [shape: s32[1], index: 0, kind: input, shape index: {}]   ;;  %s5292_s1 = inlined_call_operand.hbm [shape: f32[448,256], index: 1, kind: input, shape index: {}]   ;;  %s5293_s2 = inlined_call_operand.vmem [shape: f32[224,9], index: 2, kind: input, shape index: {}]   ;;  %s5294_s3 = inlined_call_operand.vmem [shape: bf16[256,256], index: 3, kind: input, shape index: {}]   ;;  %s5295_s4 = inlined_call_operand.hbm [shape: f32[448,256], index: 4, kind: output, shape index: {}]  }
   0x1   :  { %9 = sst [smem:[#allocation3]] %s5291_s0 }
   0x2   :  { %10 = vsyncpa [#allocation5], 0 }
   0x3   :  { %12 = vsyncpa [#allocation5 + $0x1], 0 }
   0x4   :  { %13 = vsyncpa [#allocation6], 0 }
   0x5   :  { %15 = vsyncpa [#allocation6 + $0x1], 0  ;;  %s3337_s17 = smov 0   ;;  %s3339_s18 = smov 0  }
   0x6   :  { %s3341_s19 = smov 0   ;;  %s3343_s20 = smov 0  }
   0x7 LB: > { %s3358_s0 = sadd.s32 4294967295, %s3293_s20   ;;  %s2773_s21 = sadd.s32 4294967294, %s3293_s20   ;;  %s3293_s20 = sphi %s3343_s20, %s5465_s20   ;;  %s3289_s19 = sphi %s3341_s19, %s5464_s19   ;;  %s3285_s18 = sphi %s3339_s18, %s5463_s18   ;;  %s3281_s17 = sphi %s3337_s17, %s5462_s17  }
   0x8   : > { %s3362_s22 = sadd.s32 1, %s3293_s20   ;;  %s28_s23 = sadd.s32 1, %s3289_s19 }
   0x9   : > { %s25_s24 = ssub.s32 %s3293_s20, %s3362_s22  ;;  %p35_p0 = scmp.ne.s32.totalorder %s3289_s19, %s3285_s18 }
   0xa   : > { %p26_p1 = scmp.eq.s32.totalorder %s25_s24, 0  ;;  %p36_p2 = scmp.eq.s32.totalorder %s3293_s20, 0 }
   0xb   : > { %p41_p3 = scmp.ne.s32.totalorder %s3285_s18, %s3281_s17  ;;  %p42_p4 = scmp.eq.s32.totalorder %s3358_s0, 0 }
   0xc   : > { %s3374_s25 = scalar_select %p26_p1, %s3289_s19, %s28_s23  }
   0xd   : > { %p37_p5 = por %p36_p2, %p35_p0  ;;  %p3376_p6 = por %p42_p4, %p41_p3 }
   0xe   : > { %p112_p7 = scmp.eq.s32.totalorder %s3358_s0, 3  ;;  %p118_p8 = scmp.eq.s32.totalorder %s2773_s21, 3 }
   0xf   : > { %p3032_p9 = scmp.lt.s32.totalorder %s3293_s20, 4  ;;  %s141_s29 = sand.u32 1, %s3289_s19  }
  0x10   : > { %p3382_p10 = por %p112_p7, %p35_p0  ;;  %p3386_p11 = por %p118_p8, %p41_p3 }
  0x11   : > { %s2988_s30 = smul.u32 3584, %s3293_s20  ;;  %p3397_p12 = pnand %p3032_p9, %p37_p5 }
  0x12   : > { %s5315_s27 = scalar_select %p3382_p10, 1, 0 }
  0x13   : > { %s5316_s28 = scalar_select %p3386_p11, 1, 0 }
  0x14   : > { %s3018_s5 = smul.u32 224, %s141_s29  ;;  %s3395_s8 = scalar_lea.hbm %s5292_s1, %s2988_s30 }
  0x15   : > { %s3403_s12 = scalar_lea.sflag [#allocation5], %s141_s29  ;;  %s3197_s13 = scalar_lea.hbm %s3395_s8, 3584 }
  0x16   : > { %s145_s10 = scalar_lea.vmem [#allocation4], %s3018_s5  ;;  %p3198_p13 = scmp.ne.s32.totalorder %s3395_s8, %s3197_s13 }
  0x17   : > { %s153_s11 = sshll.u32 %s145_s10, 4  ;;  %p3199_p0 = pneg %p3397_p12  ;;  %s3401_s11 = int_to_ptr.vmem [resolvable:$true] %s153_s11 }
  0x18   : > { %s3202_s16 = scalar_lea.hbm %s5292_s1, 14336  ;;  %p3203_p3 = scmp.lt.u32.totalorder %s3395_s8, %s5292_s1 }
  0x19   : > { %p3200_p1 = pnand %p3199_p0, %p3198_p13  ;;  %p3204_p4 = scmp.lt.u32.totalorder %s3202_s16, %s3197_s13 }
  0x1a   : > { %p3206_p7 = scmp.lt.u32.totalorder %s3197_s13, %s3395_s8 }
  0x1b   : > { %p3201_p2 = pneg %p3200_p1  ;;  %p3205_p5 = por %p3204_p4, %p3203_p3 }
  0x1d   : > { %p3207_p8 = por %p3206_p7, %p3205_p5 }
  0x1f   : > { %p3208_p9 = pnand %p3207_p8, %p3201_p2 }
  0x21   : > { %3211 = shalt.err (!%p3208_p9)
}
  0x22   : > { %s3212_s24 = scalar_lea.vmem %s3401_s11, 3584  ;;  %s3295_s29 = smov [#allocation4]  }
  0x23   : > { %p3213_p13 = scmp.ne.s32.totalorder %s3401_s11, %s3212_s24  ;;  %s3217_s30 = sshll.u32 %s3295_s29, 4  ;;  %s3218_s30 = int_to_ptr.vmem [resolvable:$false] %s3217_s30 }
  0x24   : > { %s3219_s5 = scalar_lea.vmem %s3218_s30, 7168  ;;  %p3220_p10 = scmp.lt.s32.totalorder %s3401_s11, %s3218_s30 }
  0x25   : > { %p3215_p1 = pnand %p3213_p13, %p3199_p0  ;;  %p3221_p3 = scmp.lt.s32.totalorder %s3219_s5, %s3212_s24 }
  0x27   : > { %p3216_p11 = pneg %p3215_p1  ;;  %p3222_p4 = por %p3221_p3, %p3220_p10 }
  0x29   : > { %p3223_p5 = pnand %p3222_p4, %p3216_p11 }
  0x2b   : > { %3226 = shalt.err (!%p3223_p5)
}
  0x2c   : > { %s3296_s6 = smov 256   ;;  %s3297_s7 = smov 16  }
  0x2d   : > { %3027 = dma.hbm_to_vmem [thread:$0]  (!%p3397_p12), %s3395_s8, 3584, %s3401_s11, %s3403_s12, %s3296_s6, %s3296_s6, %s3297_s7  }
  0x2e   : > { %p2778_p0 = scmp.ge.s32.totalorder %s3293_s20, 1  ;;  %p170_p2 = scmp.lt.s32.totalorder %s3293_s20, 5 }
  0x30   : > { %p171_p7 = pnand %p2778_p0, %p170_p2 }
  0x32   : > { %174 = sbr.rel (%p171_p7) target bundleno = 665 (0x299), region = 32 }
  0x39   : > { %s3434_s10 = sand.u32 1, %s3285_s18  }
  0x3a   : > { %s3019_s13 = smul.u32 224, %s3434_s10  ;;  %s177_s14 = scalar_lea.sflag [#allocation5], %s3434_s10 }
  0x3c   : > { %s3440_s15 = scalar_lea.vmem [#allocation4], %s3019_s13 }
  0x3d   : > { %3272 = dma.done.wait (%p3376_p6), %s177_s14, 3584  }
  0x3e   : > { %3274 = vsyncadd (%p3376_p6), %s177_s14, 4294963712  ;;  %v3447_v0 = vld [vmem:[%s3440_s15 + $0x20] sm:$0xff]  ;;  %v3450_v1 = vld [vmem:[%s3440_s15 + $0x28] sm:$0xff]  ;;  %s209_s14 = smul.u32 7, %s3358_s0  ;;  %s3298_s29 = smov 125  }
  0x3f   : > { %v3453_v2 = vld [vmem:[%s3440_s15] sm:$0xff]  ;;  %v257_v3 = vadd.f32 %v3450_v1, %v3447_v0  ;;  %v3458_v4 = vld [vmem:[%s3440_s15 + $0x8] sm:$0xff]  ;;  %v3461_v5 = vld [vmem:[%s3440_s15 + $0x30] sm:$0xff]  ;;  %s3299_s30 = smov 123   ;;  %s3300_s5 = smov 122  }
  0x40   : > { %v3464_v6 = vld [vmem:[%s3440_s15 + $0x38] sm:$0xff]  ;;  %v251_v7 = vadd.f32 %v3458_v4, %v3453_v2  ;;  %v3469_v8 = vld [vmem:[%s3440_s15 + $0x10] sm:$0xff]  ;;  %v3485_v14 = vld [vmem:[%s3440_s15 + $0x40] sm:$0xff]  ;;  %v293_v58 = vmul.f32 %v3453_v2, %v3453_v2  ;;  %v294_v59 = vmul.f32 %v3458_v4, %v3458_v4  ;;  %v299_v63 = vmul.f32 %v3461_v5, %v3461_v5  ;;  %p210_p6 = scmp.lt.s32.totalorder %s209_s14, 27  ;;  %s3304_s7 = smov 126  }
  0x41   : > { %v3472_v9 = vld [vmem:[%s3440_s15 + $0x18] sm:$0xff]  ;;  %258 = vadd.xlane.f32.xlu1 %v257_v3  ;;  %v260_v10 = vadd.f32 %v3464_v6, %v3461_v5  ;;  %v3479_v12 = vld [vmem:[%s3440_s15 + $0x50] sm:$0xff]  ;;  %v3488_v15 = vld [vmem:[%s3440_s15 + $0x48] sm:$0xff]  ;;  %v295_v55 = vmul.f32 %v3469_v8, %v3469_v8  ;;  %v300_v3 = vmul.f32 %v3464_v6, %v3464_v6  ;;  %s1486_s26 = smul.u32 112, %s3358_s0  ;;  %s1544_s8 = sld [smem:[#allocation3]] }
  0x42   : > { %252 = vadd.xlane.f32.xlu0 %v251_v7  ;;  %v254_v11 = vadd.f32 %v3472_v9, %v3469_v8  ;;  %v3482_v13 = vld [vmem:[%s3440_s15 + $0x58] sm:$0xff]  ;;  %v263_v17 = vadd.f32 %v3488_v15, %v3485_v14  ;;  %v3495_v18 = vld [vmem:[%s3440_s15 + $0x70] sm:$0xff]  ;;  %v3501_v20 = vld [vmem:[%s3440_s15 + $0x60] sm:$0xff]  ;;  %v991_v33 = vpack.c.bf16 %v3472_v9, %v3458_v4  ;;  %v296_v56 = vmul.f32 %v3472_v9, %v3472_v9  ;;  %s5467_s14 = smov (!%p210_p6, %s209_s14), 27  ;;  %s2674_s12 = scalar_lea.sflag [#allocation6], %s3434_s10 }
  0x43   : > { %v266_v16 = vadd.f32 %v3482_v13, %v3479_v12  ;;  %v3498_v19 = vld [vmem:[%s3440_s15 + $0x78] sm:$0xff]  ;;  %v3504_v21 = vld [vmem:[%s3440_s15 + $0x68] sm:$0xff]  ;;  %v3507_v22 = vld [vmem:[%s3440_s15 + $0x90] sm:$0xff]  ;;  %v297_v7 = vmul.f32 %v3447_v0, %v3447_v0  ;;  %s2779_s6 = sshll.u32 %s5467_s14, 3  ;;  %p5460_p11 = scmp.ne.s32.totalorder %s5315_s27, 0 }
  0x44   : > { %v3086_v23 = vld [vmem:[%s5294_s3 + $0x4] ss:$8 sps:$4 sm:$0xff]   ;;  %v3088_v24 = vld [vmem:[%s5294_s3] ss:$8 sps:$4 sm:$0xff]   ;;  %v272_v25 = vadd.f32 %v3498_v19, %v3495_v18  ;;  %v3518_v26 = vld [vmem:[%s3440_s15 + $0x98] sm:$0xff]  ;;  %v269_v28 = vadd.f32 %v3504_v21, %v3501_v20  ;;  %v1005_v39 = vunpack.c.l.bf16 %v991_v33  ;;  %v1007_v40 = vunpack.c.h.bf16 %v991_v33  ;;  %1369 = vmatprep.mubr.bf16.mxu0 %v991_v33  ;;  %s3713_s11 = scalar_lea.vmem %s5293_s2, %s2779_s6  ;;  %s3301_s6 = smov 124  }
  0x45   : > { %261 = vadd.xlane.f32.xlu1 %v260_v10  ;;  %v3521_v27 = vld [vmem:[%s3440_s15 + $0x80] sm:$0xff]  ;;  %v3089_v29 = vld [vmem:[%s5294_s3 + $0x14] ss:$8 sps:$4 sm:$0xff]   ;;  %v3529_v30 = vld [vmem:[%s3440_s15 + $0x88] sm:$0xff]  ;;  %1234 = vmatprep.subr.bf16.mxu1 %v3086_v23  ;;  %v278_v34 = vadd.f32 %v3518_v26, %v3507_v22  ;;  %v324_v62 = vadd.f32 %v296_v56, %v295_v55  ;;  %s3306_s21 = smov [#allocation7]  }
  0x46   : > { %255 = vadd.xlane.f32.xlu0 %v254_v11  ;;  %v3532_v31 = vld [vmem:[%s3440_s15 + $0xb0] sm:$0xff]  ;;  %1337 = vmatprep.subr.bf16.mxu0 %v3086_v23  ;;  %v3542_v35 = vld [vmem:[%s3440_s15 + $0xb8] sm:$0xff]  ;;  %v3545_v36 = vld [vmem:[%s3440_s15 + $0xa0] sm:$0xff]  ;;  %v275_v37 = vadd.f32 %v3529_v30, %v3521_v27  ;;  %v1033_v43 = vsub.f32 %v3458_v4, %v1005_v39  ;;  %v1035_v44 = vsub.f32 %v3472_v9, %v1007_v40  ;;  %s3231_s23 = sshll.u32 %s3306_s21, 4  ;;  %s3232_s23 = int_to_ptr.vmem [resolvable:$false] %s3231_s23 }
  0x47   : > { %1235 = vmatpush1.bf16.msra.mxu1 %v3088_v24  ;;  %v3091_v32 = vld [vmem:[%s5294_s3 + $0x10] ss:$8 sps:$4 sm:$0xff]   ;;  %1338 = vmatpush1.bf16.msra.mxu0 %v3088_v24  ;;  %v3092_v38 = vld [vmem:[%s5294_s3 + $0x24] ss:$8 sps:$4 sm:$0xff]   ;;  %v3094_v42 = vld [vmem:[%s5294_s3 + $0x20] ss:$8 sps:$4 sm:$0xff]   ;;  %v284_v45 = vadd.f32 %v3542_v35, %v3532_v31  ;;  %v321_v4 = vadd.f32 %v294_v59, %v293_v58  ;;  %v298_v9 = vmul.f32 %v3450_v1, %v3450_v1 }
  0x48   : > { %1236 = vmatprep.subr.bf16.mxu1 %v3089_v29  ;;  %v3553_v41 = vld [vmem:[%s3440_s15 + $0xa8] sm:$0xff]  ;;  %1339 = vmatprep.subr.bf16.mxu0 %v3089_v29  ;;  %v3563_v46 = vld [vmem:[%s3440_s15 + $0xd0] sm:$0xff]  ;;  %v3568_v48 = vld [vmem:[%s3440_s15 + $0xd8] sm:$0xff]  ;;  %v1061_v51 = vpack.c.bf16 %v1035_v44, %v1033_v43  ;;  %v304_v23 = vmul.f32 %v3482_v13, %v3482_v13  ;;  %v305_v39 = vmul.f32 %v3501_v20, %v3501_v20  ;;  %s3233_s24 = scalar_lea.vmem %s3232_s23, 7168 }
  0x49   : > { %267 = vadd.xlane.f32.xlu1 %v266_v16  ;;  %v281_v47 = vadd.f32 %v3553_v41, %v3545_v36  ;;  %v3571_v49 = vld [vmem:[%s3440_s15 + $0xc0] sm:$0xff]  ;;  %v3095_v50 = vld [vmem:[%s5294_s3 + $0x34] ss:$8 sps:$4 sm:$0xff]   ;;  %v3577_v52 = vld [vmem:[%s3440_s15 + $0xc8] sm:$0xff]  ;;  %v290_v54 = vadd.f32 %v3568_v48, %v3563_v46  ;;  %v330_v16 = vadd.f32 %v300_v3, %v299_v63  ;;  %v327_v24 = vadd.f32 %v298_v9, %v297_v7 }
  0x4a   : > { %264 = vadd.xlane.f32.xlu0 %v263_v17  ;;  %v3097_v53 = vld [vmem:[%s5294_s3 + $0x30] ss:$8 sps:$4 sm:$0xff]   ;;  %1266 = vmatprep.mubr.bf16.mxu1 %v1061_v51  ;;  %v287_v57 = vadd.f32 %v3577_v52, %v3571_v49  ;;  %v3098_v60 = vld [vmem:[%s5294_s3 + $0x44] ss:$8 sps:$4 sm:$0xff]   ;;  %v3100_v61 = vld [vmem:[%s5294_s3 + $0x40] ss:$8 sps:$4 sm:$0xff]   ;;  %v303_v17 = vmul.f32 %v3479_v12, %v3479_v12  ;;  %v306_v40 = vmul.f32 %v3504_v21, %v3504_v21 }
  0x4b   : > { %1237 = vmatpush1.bf16.msra.mxu1 %v3091_v32  ;;  %1340 = vmatpush1.bf16.msra.mxu0 %v3091_v32  ;;  %v3101_v10 = vld [vmem:[%s5294_s3 + $0x54] ss:$8 sps:$4 sm:$0xff]   ;;  %v3103_v11 = vld [vmem:[%s5294_s3 + $0x50] ss:$8 sps:$4 sm:$0xff]   ;;  %v3104_v29 = vld [vmem:[%s5294_s3 + $0x64] ss:$8 sps:$4 sm:$0xff]   ;;  %v309_v51 = vmul.f32 %v3521_v27, %v3521_v27  ;;  %v316_v58 = vmul.f32 %v3542_v35, %v3542_v35  ;;  %v320_v7 = vmul.f32 %v3568_v48, %v3568_v48 }
  0x4c   : > { %1238 = vmatprep.subr.bf16.mxu1 %v3092_v38  ;;  %1341 = vmatprep.subr.bf16.mxu0 %v3092_v38  ;;  %v3106_v32 = vld [vmem:[%s5294_s3 + $0x60] ss:$8 sps:$4 sm:$0xff]   ;;  %v336_v33 = vadd.f32 %v304_v23, %v303_v17  ;;  %v3109_v43 = vld [vmem:[%s5294_s3 + $0x70] ss:$8 sps:$4 sm:$0xff]  }
  0x4d   : > { %273 = vadd.xlane.f32.xlu1 %v272_v25  ;;  %v301_v25 = vmul.f32 %v3485_v14, %v3485_v14  ;;  %v3112_v55 = vld [vmem:[%s5294_s3 + $0x80] ss:$8 sps:$4 sm:$0xff]   ;;  %v3115_v63 = vld [vmem:[%s5294_s3 + $0x90] ss:$8 sps:$4 sm:$0xff]  }
  0x4e   : > { %270 = vadd.xlane.f32.xlu0 %v269_v28  ;;  %v302_v28 = vmul.f32 %v3488_v15, %v3488_v15  ;;  %v3118_v17 = vld [vmem:[%s5294_s3 + $0xa0] ss:$8 sps:$4 sm:$0xff]  }
  0x4f   : > { %1239 = vmatpush1.bf16.msra.mxu1 %v3094_v42  ;;  %1342 = vmatpush1.bf16.msra.mxu0 %v3094_v42  ;;  %v3107_v42 = vld [vmem:[%s5294_s3 + $0x74] ss:$8 sps:$4 sm:$0xff]  }
  0x50   : > { %1240 = vmatprep.subr.bf16.mxu1 %v3095_v50  ;;  %1343 = vmatprep.subr.bf16.mxu0 %v3095_v50  ;;  %v333_v38 = vadd.f32 %v302_v28, %v301_v25  ;;  %v339_v50 = vadd.f32 %v306_v40, %v305_v39  ;;  %v3119_v25 = vld [vmem:[%s5294_s3 + $0xb4] ss:$8 sps:$4 sm:$0xff]   ;;  %v3121_v28 = vld [vmem:[%s5294_s3 + $0xb0] ss:$8 sps:$4 sm:$0xff]   ;;  %v993_v39 = vpack.c.bf16 %v3464_v6, %v3450_v1 }
  0x51   : > { %279 = vadd.xlane.f32.xlu1 %v278_v34  ;;  %v307_v34 = vmul.f32 %v3495_v18, %v3495_v18 }
  0x52   : > { %276 = vadd.xlane.f32.xlu0 %v275_v37  ;;  %v308_v37 = vmul.f32 %v3498_v19, %v3498_v19 }
  0x53   : > { %1241 = vmatpush1.bf16.msra.mxu1 %v3097_v53  ;;  %1344 = vmatpush1.bf16.msra.mxu0 %v3097_v53  ;;  %v310_v53 = vmul.f32 %v3529_v30, %v3529_v30 }
  0x54   : > { %1242 = vmatprep.subr.bf16.mxu1 %v3098_v60  ;;  %1345 = vmatprep.subr.bf16.mxu0 %v3098_v60  ;;  %v342_v44 = vadd.f32 %v308_v37, %v307_v34  ;;  %v313_v60 = vmul.f32 %v3545_v36, %v3545_v36  ;;  %v990_v34 = vpack.c.bf16 %v3469_v8, %v3453_v2  ;;  %v3127_v37 = vld [vmem:[%s5294_s3 + $0xd0] ss:$8 sps:$4 sm:$0xff]  }
  0x55   : > { %285 = vadd.xlane.f32.xlu1 %v284_v45  ;;  %v311_v45 = vmul.f32 %v3507_v22, %v3507_v22  ;;  %v345_v59 = vadd.f32 %v310_v53, %v309_v51 }
  0x56   : > { %282 = vadd.xlane.f32.xlu0 %v281_v47  ;;  %v312_v47 = vmul.f32 %v3518_v26, %v3518_v26  ;;  %v1004_v40 = vunpack.c.l.bf16 %v990_v34 }
  0x57   : > { %1243 = vmatpush1.bf16.msra.mxu1 %v3100_v61  ;;  %1346 = vmatpush1.bf16.msra.mxu0 %v3100_v61  ;;  %v314_v61 = vmul.f32 %v3553_v41, %v3553_v41 }
  0x58   : > { %1244 = vmatprep.subr.bf16.mxu1 %v3101_v10  ;;  %1347 = vmatprep.subr.bf16.mxu0 %v3101_v10  ;;  %v348_v56 = vadd.f32 %v312_v47, %v311_v45  ;;  %v317_v10 = vmul.f32 %v3571_v49, %v3571_v49  ;;  %v1009_v45 = vunpack.c.l.bf16 %v993_v39  ;;  %v1011_v47 = vunpack.c.h.bf16 %v993_v39 }
  0x59   : > { %291 = vadd.xlane.f32.xlu1 %v290_v54  ;;  %v3110_v54 = vld [vmem:[%s5294_s3 + $0x84] ss:$8 sps:$4 sm:$0xff]   ;;  %v351_v9 = vadd.f32 %v314_v61, %v313_v60  ;;  %v1032_v51 = vsub.f32 %v3453_v2, %v1004_v40  ;;  %v995_v2 = vpack.c.bf16 %v3482_v13, %v3488_v15 }
  0x5a   : > { %288 = vadd.xlane.f32.xlu0 %v287_v57  ;;  %v315_v57 = vmul.f32 %v3532_v31, %v3532_v31  ;;  %v3741_v61 = vld [vmem:[%s3713_s11] sm:$0xff] }
  0x5b   : > { %1245 = vmatpush1.bf16.msra.mxu1 %v3103_v11  ;;  %1348 = vmatpush1.bf16.msra.mxu0 %v3103_v11  ;;  %v318_v11 = vmul.f32 %v3577_v52, %v3577_v52 }
  0x5c   : > { %1246 = vmatprep.subr.bf16.mxu1 %v3104_v29  ;;  %1349 = vmatprep.subr.bf16.mxu0 %v3104_v29  ;;  %v354_v3 = vadd.f32 %v316_v58, %v315_v57  ;;  %v3122_v29 = vld [vmem:[%s5294_s3 + $0xc4] ss:$8 sps:$4 sm:$0xff]   ;;  %v1039_v57 = vsub.f32 %v3464_v6, %v1011_v47  ;;  %v1013_v6 = vunpack.c.l.bf16 %v995_v2  ;;  %v1001_v47 = vpack.c.bf16 %v3542_v35, %v3553_v41 }
  0x5d   : > { %325 = vadd.xlane.f32.xlu1 %v324_v62  ;;  %v3113_v62 = vld [vmem:[%s5294_s3 + $0x94] ss:$8 sps:$4 sm:$0xff]  }
  0x5e   : > { %322 = vadd.xlane.f32.xlu0 %v321_v4  ;;  %v319_v4 = vmul.f32 %v3563_v46, %v3563_v46 }
  0x5f   : > { %1247 = vmatpush1.bf16.msra.mxu1 %v3106_v32  ;;  %1350 = vmatpush1.bf16.msra.mxu0 %v3106_v32  ;;  %v3124_v32 = vld [vmem:[%s5294_s3 + $0xc0] ss:$8 sps:$4 sm:$0xff]  }
  0x60   : > { %1248 = vmatprep.subr.bf16.mxu1 %v3107_v42  ;;  %1351 = vmatprep.subr.bf16.mxu0 %v3107_v42  ;;  %v360_v23 = vadd.f32 %v320_v7, %v319_v4  ;;  %v1006_v42 = vunpack.c.h.bf16 %v990_v34  ;;  %v994_v7 = vpack.c.bf16 %v3479_v12, %v3485_v14 }
  0x61   : > { %331 = vadd.xlane.f32.xlu1 %v330_v16  ;;  %v3116_v16 = vld [vmem:[%s5294_s3 + $0xa4] ss:$8 sps:$4 sm:$0xff]  }
  0x62   : > { %328 = vadd.xlane.f32.xlu0 %v327_v24  ;;  %v357_v24 = vadd.f32 %v318_v11, %v317_v10  ;;  %v1034_v53 = vsub.f32 %v3469_v8, %v1006_v42  ;;  %v3738_v8 = vld [vmem:[%s3713_s11 + $0x10] sm:$0xff]  ;;  %v1041_v10 = vsub.f32 %v3488_v15, %v1013_v6 }
  0x63   : > { %1249 = vmatpush1.bf16.msra.mxu1 %v3109_v43  ;;  %1352 = vmatpush1.bf16.msra.mxu0 %v3109_v43  ;;  %v3130_v43 = vld [vmem:[%s5294_s3 + $0xe0] ss:$8 sps:$4 sm:$0xff]  }
  0x64   : > { %1250 = vmatprep.subr.bf16.mxu1 %v3110_v54  ;;  %1353 = vmatprep.subr.bf16.mxu0 %v3110_v54  ;;  %v992_v54 = vpack.c.bf16 %v3461_v5, %v3447_v0  ;;  %v1060_v58 = vpack.c.bf16 %v1034_v53, %v1032_v51 }
  0x65   : > { %337 = vadd.xlane.f32.xlu1 %v336_v33  ;;  %v3125_v33 = vld [vmem:[%s5294_s3 + $0xd4] ss:$8 sps:$4 sm:$0xff]  }
  0x66   : > { %334 = vadd.xlane.f32.xlu0 %v333_v38  ;;  %v3128_v38 = vld [vmem:[%s5294_s3 + $0xe4] ss:$8 sps:$4 sm:$0xff]   ;;  %v1010_v60 = vunpack.c.h.bf16 %v992_v54 }
  0x67   : > { %1251 = vmatpush1.bf16.msra.mxu1 %v3112_v55  ;;  %1354 = vmatpush1.bf16.msra.mxu0 %v3112_v55  ;;  %v3133_v55 = vld [vmem:[%s5294_s3 + $0xf0] ss:$8 sps:$4 sm:$0xff]  }
  0x68   : > { %1252 = vmatprep.subr.bf16.mxu1 %v3113_v62  ;;  %1355 = vmatprep.subr.bf16.mxu0 %v3113_v62  ;;  %v1015_v62 = vunpack.c.h.bf16 %v995_v2  ;;  %v1038_v4 = vsub.f32 %v3461_v5, %v1010_v60  ;;  %v3764_v5 = vld [vmem:[%s3713_s11 + $0x28] sm:$0xff] }
  0x69   : > { %343 = vadd.xlane.f32.xlu1 %v342_v44  ;;  %v3131_v44 = vld [vmem:[%s5294_s3 + $0xf4] ss:$8 sps:$4 sm:$0xff]  }
  0x6a   : > { %340 = vadd.xlane.f32.xlu0 %v339_v50  ;;  %v3722_v50 = vld [vmem:[%s3713_s11 + $0x8] sm:$0xff]  ;;  %v1043_v11 = vsub.f32 %v3482_v13, %v1015_v62  ;;  %v1002_v62 = vpack.c.bf16 %v3563_v46, %v3571_v49 }
  0x6b   : > { %1253 = vmatpush1.bf16.msra.mxu1 %v3115_v63  ;;  %1356 = vmatpush1.bf16.msra.mxu0 %v3115_v63  ;;  %v3746_v63 = vld [vmem:[%s3713_s11 + $0x18] sm:$0xff] }
  0x6c   : > { %1254 = vmatprep.subr.bf16.mxu1 %v3116_v16  ;;  %1357 = vmatprep.subr.bf16.mxu0 %v3116_v16 }
  0x6d   : > { %349 = vadd.xlane.f32.xlu1 %v348_v56  ;;  %v1037_v56 = vsub.f32 %v3450_v1, %v1009_v45 }
  0x6e   : > { %346 = vadd.xlane.f32.xlu0 %v345_v59  ;;  %v1008_v59 = vunpack.c.l.bf16 %v992_v54 }
  0x6f   : > { %1255 = vmatpush1.bf16.msra.mxu1 %v3118_v17  ;;  %1358 = vmatpush1.bf16.msra.mxu0 %v3118_v17  ;;  %v1063_v1 = vpack.c.bf16 %v1039_v57, %v1037_v56  ;;  %v1012_v17 = vunpack.c.l.bf16 %v994_v7  ;;  %v1000_v56 = vpack.c.bf16 %v3532_v31, %v3545_v36 }
  0x70   : > { %1256 = vmatprep.subr.bf16.mxu1 %v3119_v25  ;;  %1359 = vmatprep.subr.bf16.mxu0 %v3119_v25  ;;  %v1065_v25 = vpack.c.bf16 %v1043_v11, %v1041_v10  ;;  %v1030_v10 = vunpack.c.h.bf16 %v1002_v62 }
  0x71   : > { %355 = vadd.xlane.f32.xlu1 %v354_v3  ;;  %v1036_v3 = vsub.f32 %v3447_v0, %v1008_v59  ;;  %v997_v0 = vpack.c.bf16 %v3498_v19, %v3504_v21  ;;  %v1040_v13 = vsub.f32 %v3485_v14, %v1012_v17  ;;  %v1026_v59 = vunpack.c.h.bf16 %v1000_v56 }
  0x72   : > { %352 = vadd.xlane.f32.xlu0 %v351_v9  ;;  %v3755_v9 = vld [vmem:[%s3713_s11 + $0x20] sm:$0xff] }
  0x73   : > { %1257 = vmatpush1.bf16.msra.mxu1 %v3121_v28  ;;  %1360 = vmatpush1.bf16.msra.mxu0 %v3121_v28  ;;  %v1062_v16 = vpack.c.bf16 %v1038_v4, %v1036_v3  ;;  %v1017_v15 = vunpack.c.l.bf16 %v997_v0  ;;  %v1019_v28 = vunpack.c.h.bf16 %v997_v0 }
  0x74   : > { %1258 = vmatprep.subr.bf16.mxu1 %v3122_v29  ;;  %1361 = vmatprep.subr.bf16.mxu0 %v3122_v29 }
  0x75   : > { %361 = vadd.xlane.f32.xlu1 %v360_v23  ;;  %v1014_v23 = vunpack.c.h.bf16 %v994_v7 }
  0x76   : > { %358 = vadd.xlane.f32.xlu0 %v357_v24  ;;  %v3769_v24 = vld [vmem:[%s3713_s11 + $0x30] sm:$0xff] }
  0x77   : > { %1259 = vmatpush1.bf16.msra.mxu1 %v3124_v32  ;;  %1362 = vmatpush1.bf16.msra.mxu0 %v3124_v32  ;;  %v1042_v29 = vsub.f32 %v3479_v12, %v1014_v23  ;;  %v996_v32 = vpack.c.bf16 %v3495_v18, %v3501_v20 }
  0x78   : > { %1260 = vmatprep.subr.bf16.mxu1 %v3125_v33  ;;  %1363 = vmatprep.subr.bf16.mxu0 %v3125_v33  ;;  %v1045_v33 = vsub.f32 %v3504_v21, %v1017_v15 }
  0x79   : > { %v1064_v12 = vpack.c.bf16 %v1042_v29, %v1040_v13  ;;  %v1016_v14 = vunpack.c.l.bf16 %v996_v32 }
  0x7b   : > { %1261 = vmatpush1.bf16.msra.mxu1 %v3127_v37  ;;  %1364 = vmatpush1.bf16.msra.mxu0 %v3127_v37  ;;  %v999_v37 = vpack.c.bf16 %v3518_v26, %v3529_v30  ;;  %v1044_v21 = vsub.f32 %v3501_v20, %v1016_v14 }
  0x7c   : > { %1262 = vmatprep.subr.bf16.mxu1 %v3128_v38  ;;  %1365 = vmatprep.subr.bf16.mxu0 %v3128_v38  ;;  %v1018_v38 = vunpack.c.h.bf16 %v996_v32 }
  0x7d   : > { %v1021_v40 = vunpack.c.l.bf16 %v999_v37  ;;  %v1023_v42 = vunpack.c.h.bf16 %v999_v37 }
  0x7f   : > { %1263 = vmatpush1.bf16.msra.mxu1 %v3130_v43  ;;  %1366 = vmatpush1.bf16.msra.mxu0 %v3130_v43  ;;  %v998_v43 = vpack.c.bf16 %v3507_v22, %v3521_v27  ;;  %v1051_v45 = vsub.f32 %v3518_v26, %v1023_v42 }
  0x80   : > { %1264 = vmatprep.subr.bf16.mxu1 %v3131_v44  ;;  %1367 = vmatprep.subr.bf16.mxu0 %v3131_v44  ;;  %v1049_v44 = vsub.f32 %v3529_v30, %v1021_v40 }
  0x81   : > { %v1020_v51 = vunpack.c.l.bf16 %v998_v43 }
  0x82   : > { %v1069_v53 = vpack.c.bf16 %v1051_v45, %v1049_v44 }
  0x83   : > { %1265 = vmatpush1.bf16.msra.mxu1 %v3133_v55  ;;  %1368 = vmatpush1.bf16.msra.mxu0 %v3133_v55  ;;  %v1027_v55 = vunpack.c.h.bf16 %v1001_v47  ;;  %v1048_v30 = vsub.f32 %v3521_v27, %v1020_v51  ;;  %v1024_v27 = vunpack.c.l.bf16 %v1000_v56 }
  0x86   : > { %743 = vrot.lane.b32.xlu1 %v3722_v50, %s3298_s29  ;;  %1267 = vmatmul.mubr.bf16.vlgmr.msra.gmra.mrb[0].mxu1 %v1060_v58  ;;  %v1003_v58 = vpack.c.bf16 %v3568_v48, %v3577_v52 }
  0x87   : > { %1370 = vmatmul.mubr.bf16.vlgmr.msra.gmra.mrb[0].mxu0 %v990_v34  ;;  %1276 = vmatprep.mubr.bf16.mxu1 %v1063_v1  ;;  %v1047_v34 = vsub.f32 %v3498_v19, %v1019_v28  ;;  %v1046_v19 = vsub.f32 %v3495_v18, %v1018_v38  ;;  %v1022_v18 = vunpack.c.h.bf16 %v998_v43 }
  0x88   : > { %1379 = vmatprep.mubr.bf16.mxu0 %v993_v39  ;;  %v1029_v1 = vunpack.c.l.bf16 %v1003_v58  ;;  %v1031_v6 = vunpack.c.h.bf16 %v1003_v58 }
  0x89   : > { %v1067_v39 = vpack.c.bf16 %v1047_v34, %v1045_v33  ;;  %v1066_v20 = vpack.c.bf16 %v1046_v19, %v1044_v21  ;;  %v1050_v26 = vsub.f32 %v3507_v22, %v1022_v18 }
  0x8a   : > { %745 = vrot.lane.b32.xlu1 %v3738_v8, %s3298_s29  ;;  %v1057_v3 = vsub.f32 %v3577_v52, %v1029_v1  ;;  %v1059_v4 = vsub.f32 %v3568_v48, %v1031_v6  ;;  %v1058_v52 = vsub.f32 %v3563_v46, %v1030_v10 }
  0x8b   : > { %v1068_v22 = vpack.c.bf16 %v1050_v26, %v1048_v30 }
  0x8c   : > { %741 = vrot.lane.b32.xlu0 %v3741_v61, %s3298_s29 }
  0x8e   : > { %747 = vrot.lane.b32.xlu1 %v3746_v63, %s3298_s29  ;;  %1277 = vmatmul.mubr.bf16.gmra.mrb[4].mxu1 %v1062_v16 }
  0x8f   : > { %1380 = vmatmul.mubr.bf16.gmra.mrb[4].mxu0 %v992_v54  ;;  %1286 = vmatprep.mubr.bf16.mxu1 %v1065_v25  ;;  %v1025_v54 = vunpack.c.l.bf16 %v1001_v47 }
  0x90   : > { %749 = vrot.lane.b32.xlu0 %v3755_v9, %s3298_s29  ;;  %1389 = vmatprep.mubr.bf16.mxu0 %v995_v2  ;;  %v1055_v2 = vsub.f32 %v3542_v35, %v1027_v55  ;;  %v1052_v35 = vsub.f32 %v3545_v36, %v1024_v27  ;;  %v1028_v36 = vunpack.c.l.bf16 %v1002_v62 }
  0x91   : > { %v1053_v57 = vsub.f32 %v3553_v41, %v1025_v54  ;;  %v1054_v41 = vsub.f32 %v3532_v31, %v1026_v59  ;;  %v1073_v31 = vpack.c.bf16 %v1059_v4, %v1057_v3 }
  0x92   : > { %751 = vrot.lane.b32.xlu1 %v3764_v5, %s3298_s29  ;;  %v1056_v11 = vsub.f32 %v3571_v49, %v1028_v36  ;;  %v5297_v49 = vmov 0  }
  0x93   : > { %v1071_v60 = vpack.c.bf16 %v1055_v2, %v1053_v57  ;;  %3079 = vset.pattern.permute.xlu0 %v5297_v49  ;;  %3078 = vset.pattern.permute.xlu1 %v5297_v49 }
  0x94   : > { %753 = vrot.lane.b32.xlu0 %v3769_v24, %s3298_s29  ;;  %v1072_v48 = vpack.c.bf16 %v1058_v52, %v1056_v11 }
  0x96   : > { %776 = vrot.lane.b32.xlu1 %v3741_v61, %s3299_s30  ;;  %1287 = vmatmul.mubr.bf16.gmra.mrb[8].mxu1 %v1064_v12 }
  0x97   : > { %1390 = vmatmul.mubr.bf16.gmra.mrb[8].mxu0 %v994_v7  ;;  %1296 = vmatprep.mubr.bf16.mxu1 %v1067_v39  ;;  %v1070_v7 = vpack.c.bf16 %v1054_v41, %v1052_v35 }
  0x98   : > { %778 = vrot.lane.b32.xlu0 %v3722_v50, %s3299_s30  ;;  %1399 = vmatprep.mubr.bf16.mxu0 %v997_v0 }
  0x9a   : > { %780 = vrot.lane.b32.xlu1 %v3738_v8, %s3299_s30 }
  0x9c   : > { %782 = vrot.lane.b32.xlu0 %v3746_v63, %s3299_s30 }
  0x9e   : > { %784 = vrot.lane.b32.xlu1 %v3755_v9, %s3299_s30  ;;  %1297 = vmatmul.mubr.bf16.gmra.mrb[12].mxu1 %v1066_v20 }
  0x9f   : > { %1400 = vmatmul.mubr.bf16.gmra.mrb[12].mxu0 %v996_v32  ;;  %1306 = vmatprep.mubr.bf16.mxu1 %v1069_v53 }
  0xa0   : > { %786 = vrot.lane.b32.xlu0 %v3764_v5, %s3299_s30  ;;  %1409 = vmatprep.mubr.bf16.mxu0 %v999_v37 }
  0xa2   : > { %788 = vrot.lane.b32.xlu1 %v3769_v24, %s3299_s30 }
  0xa4   : > { %867 = vrot.lane.b32.xlu0 %v3741_v61, %s3300_s5 }
  0xa6   : > { %869 = vrot.lane.b32.xlu1 %v3722_v50, %s3300_s5  ;;  %1307 = vmatmul.mubr.bf16.gmra.mrb[16].mxu1 %v1068_v22 }
  0xa7   : > { %1410 = vmatmul.mubr.bf16.gmra.mrb[16].mxu0 %v998_v43  ;;  %1316 = vmatprep.mubr.bf16.mxu1 %v1071_v60 }
  0xa8   : > { %871 = vrot.lane.b32.xlu0 %v3738_v8, %s3300_s5  ;;  %1419 = vmatprep.mubr.bf16.mxu0 %v1001_v47 }
  0xaa   : > { %873 = vrot.lane.b32.xlu1 %v3746_v63, %s3300_s5 }
  0xac   : > { %875 = vrot.lane.b32.xlu0 %v3755_v9, %s3300_s5 }
  0xae   : > { %877 = vrot.lane.b32.xlu1 %v3764_v5, %s3300_s5  ;;  %1317 = vmatmul.mubr.bf16.gmra.mrb[20].mxu1 %v1070_v7 }
  0xaf   : > { %1420 = vmatmul.mubr.bf16.gmra.mrb[20].mxu0 %v1000_v56  ;;  %1326 = vmatprep.mubr.bf16.mxu1 %v1073_v31 }
  0xb0   : > { %879 = vrot.lane.b32.xlu0 %v3769_v24, %s3300_s5  ;;  %1429 = vmatprep.mubr.bf16.mxu0 %v1003_v58 }
  0xb2   : > { %841 = vrot.lane.b32.xlu1 %v3722_v50, %s3301_s6 }
  0xb4   : > { %839 = vrot.lane.b32.xlu0 %v3741_v61, %s3301_s6 }
  0xb6   : > { %845 = vrot.lane.b32.xlu1 %v3746_v63, %s3301_s6  ;;  %1327 = vmatmul.mubr.bf16.gmra.mrb[24].mxu1 %v1072_v48 }
  0xb7   : > { %1430 = vmatmul.mubr.bf16.gmra.mrb[24].mxu0 %v1002_v62 }
  0xb8   : > { %843 = vrot.lane.b32.xlu0 %v3738_v8, %s3301_s6 }
  0xba   : > { %849 = vrot.lane.b32.xlu1 %v3764_v5, %s3301_s6 }
  0xbc   : > { %847 = vrot.lane.b32.xlu0 %v3755_v9, %s3301_s6 }
  0xc0   : > { %851 = vrot.lane.b32.xlu0 %v3769_v24, %s3301_s6 }
  0xce   : > { %v259_v46 = vpop.xlane.xlu1 %258 }
  0xcf   : > { %v253_v0 = vpop.xlane.xlu0 %252  ;;  %v365_v25 = vmul.f32 0.00390625, %v259_v46 }
  0xd0   : > { %v363_v15 = vmul.f32 0.00390625, %v253_v0 }
  0xd1   : > { %v2782_v33 = vadd.f32 -0.5, %v365_v25  ;;  %v3863_v27 = vmul.f32 %v365_v25, %v259_v46 }
  0xd2   : > { %v262_v16 = vpop.xlane.xlu1 %261  ;;  %v2780_v34 = vadd.f32 -0.5, %v363_v15  ;;  %v377_v1 = vmul.f32 %v363_v15, %v253_v0 }
  0xd3   : > { %v256_v17 = vpop.xlane.xlu0 %255  ;;  %v366_v13 = vmul.f32 0.00390625, %v262_v16  ;;  %v547_v19 = vand.u32 2147483647, %v2782_v33 }
  0xd4   : > { %v364_v29 = vmul.f32 0.00390625, %v256_v17  ;;  %v545_v43 = vand.u32 2147483647, %v2780_v34 }
  0xd5   : > { %v2783_v38 = vadd.f32 -0.5, %v366_v13  ;;  %v3854_v57 = vmul.f32 2.0, %v547_v19  ;;  %v380_v6 = vmul.f32 %v366_v13, %v262_v16 }
  0xd6   : > { %v268_v23 = vpop.xlane.xlu1 %267  ;;  %v2781_v39 = vadd.f32 -0.5, %v364_v29  ;;  %v3856_v2 = vmul.f32 2.0, %v545_v43  ;;  %v378_v62 = vmul.f32 %v364_v29, %v256_v17 }
  0xd7   : > { %v265_v28 = vpop.xlane.xlu0 %264  ;;  %v368_v42 = vmul.f32 0.00390625, %v268_v23  ;;  %v548_v51 = vand.u32 2147483647, %v2783_v38  ;;  %v575_v11 = vsub.f32 1.0, %v3854_v57 }
  0xd8   : > { %v367_v14 = vmul.f32 0.00390625, %v265_v28  ;;  %v546_v18 = vand.u32 2147483647, %v2781_v39  ;;  %v573_v52 = vsub.f32 1.0, %v3856_v2 }
  0xd9   : > { %v2785_v54 = vadd.f32 -0.5, %v368_v42  ;;  %v3868_v35 = vmul.f32 2.0, %v548_v51 }
  0xda   : > { %v3837_v32 = vpop.xlane.xlu1 %273  ;;  %v2784_v47 = vadd.f32 -0.5, %v367_v14  ;;  %v3870_v41 = vmul.f32 2.0, %v546_v18  ;;  %v3887_v16 = vmul.f32 %v367_v14, %v265_v28 }
  0xdb   : > { %v370_v37 = vmul.f32 0.00390625, %v3837_v32  ;;  %v3840_v12 = vpop.xlane.xlu0 %270  ;;  %v550_v4 = vand.u32 2147483647, %v2785_v54 }
  0xdc   : > { %v369_v30 = vmul.f32 0.00390625, %v3840_v12  ;;  %v549_v59 = vand.u32 2147483647, %v2784_v47 }
  0xdd   : > { %v3842_v40 = vadd.f32 %v370_v37, %v363_v15  ;;  %v2787_v55 = vadd.f32 -0.5, %v370_v37  ;;  %v382_v15 = vmul.f32 %v368_v42, %v268_v23  ;;  %v3897_v38 = vmul.f32 2.0, %v550_v4 }
  0xde   : > { %v3844_v21 = vpop.xlane.xlu1 %279  ;;  %v2786_v36 = vadd.f32 -0.5, %v369_v30  ;;  %v3889_v17 = vmul.f32 2.0, %v549_v59  ;;  %v384_v18 = vmul.f32 %v370_v37, %v3837_v32 }
  0xdf   : > { %v372_v44 = vmul.f32 0.00390625, %v3844_v21  ;;  %v277_v45 = vpop.xlane.xlu0 %276  ;;  %v552_v7 = vand.u32 2147483647, %v2787_v55  ;;  %v383_v55 = vmul.f32 %v369_v30, %v3840_v12 }
  0xe0   : > { %v371_v20 = vmul.f32 0.00390625, %v277_v45  ;;  %v551_v19 = vand.u32 2147483647, %v2786_v36 }
  0xe1   : > { %v3847_v53 = vadd.f32 %v372_v44, %v365_v25  ;;  %v2789_v48 = vadd.f32 -0.5, %v372_v44  ;;  %v3899_v39 = vmul.f32 2.0, %v552_v7 }
  0xe2   : > { %v3850_v26 = vpop.xlane.xlu1 %285  ;;  %v3852_v56 = vadd.f32 %v371_v20, %v364_v29  ;;  %v574_v29 = vsub.f32 1.0, %v3870_v41  ;;  %v2788_v33 = vadd.f32 -0.5, %v371_v20 }
  0xe3   : > { %v3859_v58 = vmul.f32 0.00390625, %v3850_v26  ;;  %v3861_v22 = vpop.xlane.xlu0 %282  ;;  %v554_v43 = vand.u32 2147483647, %v2789_v48  ;;  %v580_v48 = vsub.f32 1.0, %v3899_v39 }
  0xe4   : > { %v3866_v60 = vmul.f32 0.00390625, %v3861_v22  ;;  %v553_v7 = vand.u32 2147483647, %v2788_v33 }
  0xe5   : > { %v3873_v3 = vadd.f32 %v3859_v58, %v367_v14  ;;  %v2791_v47 = vadd.f32 -0.5, %v3859_v58 }
  0xe6   : > { %v3875_v10 = vpop.xlane.xlu1 %291  ;;  %v3878_v31 = vadd.f32 %v3866_v60, %v366_v13  ;;  %v2790_v59 = vadd.f32 -0.5, %v3866_v60  ;;  %v3917_v13 = vmul.f32 2.0, %v554_v43 }
  0xe7   : > { %v3883_v46 = vmul.f32 0.00390625, %v3875_v10  ;;  %v3885_v0 = vpop.xlane.xlu0 %288  ;;  %v556_v12 = vand.u32 2147483647, %v2791_v47 }
  0xe8   : > { %v375_v25 = vmul.f32 0.00390625, %v3885_v0 }
  0xe9   : > { %v3895_v34 = vadd.f32 %v3883_v46, %v369_v30  ;;  %v2793_v36 = vadd.f32 -0.5, %v3883_v46  ;;  %v3933_v47 = vmul.f32 2.0, %v556_v12 }
  0xea   : > { %v326_v28 = vpop.xlane.xlu1 %325  ;;  %v3901_v14 = vadd.f32 %v375_v25, %v368_v42  ;;  %v3910_v42 = vmul.f32 %v372_v44, %v3844_v21  ;;  %v3924_v44 = vmul.f32 2.0, %v553_v7 }
  0xeb   : > { %v392_v23 = vsub.f32 %v326_v28, %v378_v62  ;;  %v323_v51 = vpop.xlane.xlu0 %322  ;;  %v3913_v62 = vmul.f32 2.0, %v551_v19  ;;  %v3915_v28 = vmul.f32 %v371_v20, %v277_v45  ;;  %v558_v19 = vand.u32 2147483647, %v2793_v36 }
  0xec   : > { %v391_v4 = vsub.f32 %v323_v51, %v377_v1  ;;  %v555_v51 = vand.u32 2147483647, %v2790_v59 }
  0xed   : > { %v406_v49 = vmax.f32 %v392_v23, 0.0  ;;  %v2792_v23 = vadd.f32 -0.5, %v375_v25 }
  0xee   : > { %v405_v32 = vmax.f32 %v391_v4, 0.0  ;;  %v332_v37 = vpop.xlane.xlu1 %331  ;;  %v3941_v36 = vmul.f32 2.0, %v555_v51 }
  0xef   : > { %v3919_v30 = vmul.f32 0.003921569, %v406_v49  ;;  %v394_v1 = vsub.f32 %v332_v37, %v380_v6  ;;  %v329_v33 = vpop.xlane.xlu0 %328  ;;  %v3930_v49 = vmul.f32 %v3859_v58, %v3850_v26 }
  0xf0   : > { %v3921_v54 = vmul.f32 0.003921569, %v405_v32  ;;  %v393_v21 = vsub.f32 %v329_v33, %v3863_v27  ;;  %v3937_v27 = vmul.f32 %v3866_v60, %v3861_v22  ;;  %v557_v32 = vand.u32 2147483647, %v2792_v23 }
  0xf1   : > { %3134 = vrsqrt.f32 %v3919_v30  ;;  %v408_v45 = vmax.f32 %v394_v1, 0.0  ;;  %v3948_v1 = vmul.f32 2.0, %v558_v19  ;;  %v3952_v22 = vmul.f32 %v3883_v46, %v3875_v10 }
  0xf2   : > { %3136 = vrsqrt.f32 %v3921_v54  ;;  %v407_v6 = vmax.f32 %v393_v21, 0.0  ;;  %v338_v43 = vpop.xlane.xlu1 %337  ;;  %v3955_v60 = vmul.f32 %v375_v25, %v3885_v0  ;;  %vm442_vm0 = vcmp.eq.f32.partialorder %v3919_v30, inf }
  0xf3   : > { %v3939_v59 = vmul.f32 0.003921569, %v408_v45  ;;  %v396_v4 = vsub.f32 %v338_v43, %v382_v15  ;;  %v335_v7 = vpop.xlane.xlu0 %334  ;;  %vm444_vm1 = vcmp.eq.f32.partialorder %v3919_v30, 0.0  ;;  %vm435_vm2 = vcmp.eq.f32.partialorder %v3921_v54, inf }
  0xf4   : > { %v3943_v37 = vmul.f32 0.003921569, %v407_v6  ;;  %v395_v26 = vsub.f32 %v335_v7, %v3887_v16  ;;  %v3963_v6 = vmul.f32 2.0, %v557_v32  ;;  %vm437_vm3 = vcmp.eq.f32.partialorder %v3921_v54, 0.0 }
  0xf5   : > { %v410_v33 = vmax.f32 %v396_v4, 0.0  ;;  %vm456_vm10 = vcmp.eq.f32.partialorder %v3939_v59, inf  ;;  %vm458_vm11 = vcmp.eq.f32.partialorder %v3939_v59, 0.0 }
  0xf6   : > { %3138 = vrsqrt.f32 %v3943_v37  ;;  %v409_v15 = vmax.f32 %v395_v26, 0.0  ;;  %v344_v51 = vpop.xlane.xlu1 %343  ;;  %vm449_vm4 = vcmp.eq.f32.partialorder %v3943_v37, inf  ;;  %vm451_vm5 = vcmp.eq.f32.partialorder %v3943_v37, 0.0 }
  0xf7   : > { %3140 = vrsqrt.f32 %v3939_v59  ;;  %v3960_v23 = vmul.f32 0.003921569, %v410_v33  ;;  %v398_v21 = vsub.f32 %v344_v51, %v384_v18  ;;  %v341_v19 = vpop.xlane.xlu0 %340  ;;  %v445_v18 = vand.u32 2147483648, %v3919_v30 }
  0xf8   : > { %v3965_v10 = vmul.f32 0.003921569, %v409_v15  ;;  %v397_v46 = vsub.f32 %v341_v19, %v383_v55  ;;  %v438_v19 = vand.u32 2147483648, %v3921_v54 }
  0xf9   : > { %3142 = vrsqrt.f32 %v3960_v23  ;;  %v412_v25 = vmax.f32 %v398_v21, 0.0 }
  0xfa   : > { %3144 = vrsqrt.f32 %v3965_v10  ;;  %v411_v43 = vmax.f32 %v397_v46, 0.0  ;;  %v350_v4 = vpop.xlane.xlu1 %349  ;;  %vm463_vm6 = vcmp.eq.f32.partialorder %v3965_v10, inf  ;;  %vm465_vm8 = vcmp.eq.f32.partialorder %v3965_v10, 0.0 }
  0xfb   : > { %v3135_v7 = vpop.eup %3134  ;;  %v3973_v32 = vmul.f32 0.003921569, %v412_v25  ;;  %v400_v55 = vsub.f32 %v350_v4, %v3910_v42  ;;  %v347_v26 = vpop.xlane.xlu0 %346  ;;  %v452_v42 = vand.u32 2147483648, %v3943_v37 }
  0xfc   : > { %v3137_v33 = vpop.eup %3136  ;;  %v441_v15 = vmul.f32 %v3135_v7, %v3919_v30  ;;  %v3979_v51 = vmul.f32 0.003921569, %v411_v43  ;;  %v399_v21 = vsub.f32 %v347_v26, %v3915_v28  ;;  %v459_v28 = vand.u32 2147483648, %v3939_v59 }
  0xfd   : > { %v434_v46 = vmul.f32 %v3137_v33, %v3921_v54  ;;  %3146 = vrsqrt.f32 %v3973_v32  ;;  %v414_v25 = vmax.f32 %v400_v55, 0.0  ;;  %vm484_vm7 = vcmp.eq.f32.partialorder %v3973_v32, inf }
  0xfe   : > { %3148 = vrsqrt.f32 %v3979_v51  ;;  %v413_v4 = vmax.f32 %v399_v21, 0.0  ;;  %v356_v0 = vpop.xlane.xlu1 %355  ;;  %v443_v43 = vsel %vm442_vm0, %v3919_v30, %v441_v15  ;;  %v466_v21 = vand.u32 2147483648, %v3965_v10 }
  0xff   : > { %v3992_v7 = vmul.f32 0.003921569, %v414_v25  ;;  %v402_v26 = vsub.f32 %v356_v0, %v3930_v49  ;;  %v353_v33 = vpop.xlane.xlu0 %352  ;;  %v446_v55 = vsel %vm444_vm1, %v445_v18, %v443_v43  ;;  %v436_v49 = vsel %vm435_vm2, %v3921_v54, %v434_v46 }
 0x100   : > { %v3139_v20 = vpop.eup %3138  ;;  %v3999_v45 = vmul.f32 0.003921569, %v413_v4  ;;  %v401_v15 = vsub.f32 %v353_v33, %v3937_v27  ;;  %v588_v16 = vadd.f32 %v574_v29, %v446_v55  ;;  %vm486_vm9 = vcmp.eq.f32.partialorder %v3973_v32, 0.0 }
 0x101   : > { %v3141_v0 = vpop.eup %3140  ;;  %3150 = vrsqrt.f32 %v3992_v7  ;;  %v416_v18 = vmax.f32 %v402_v26, 0.0  ;;  %v448_v27 = vmul.f32 %v3139_v20, %v3943_v37  ;;  %v439_v55 = vsel %vm437_vm3, %v438_v19, %v436_v49 }
 0x102   : > { %3152 = vrsqrt.f32 %v3999_v45  ;;  %v415_v41 = vmax.f32 %v401_v15, 0.0  ;;  %v362_v29 = vpop.xlane.xlu1 %361  ;;  %v602_v33 = vadd.f32 %v588_v16, %v3919_v30  ;;  %v455_v20 = vmul.f32 %v3141_v0, %v3939_v59 }
 0x103   : > { %v3143_v46 = vpop.eup %3142  ;;  %v4015_v4 = vmul.f32 0.003921569, %v416_v18  ;;  %v404_v43 = vsub.f32 %v362_v29, %v3952_v22  ;;  %v359_v26 = vpop.xlane.xlu0 %358  ;;  %v494_v58 = vand.u32 2147483648, %v3999_v45  ;;  %vm491_vm12 = vcmp.eq.f32.partialorder %v3999_v45, inf }
 0x104   : > { %v3145_v25 = vpop.eup %3144  ;;  %v4022_v12 = vmul.f32 0.003921569, %v415_v41  ;;  %v403_v15 = vsub.f32 %v359_v26, %v3955_v60  ;;  %v4028_v18 = vmul.f32 %v3143_v46, %v3960_v23  ;;  %v487_v60 = vand.u32 2147483648, %v3973_v32 }
 0x105   : > { %v462_v22 = vmul.f32 %v3145_v25, %v3965_v10  ;;  %3154 = vrsqrt.f32 %v4015_v4  ;;  %v418_v30 = vmax.f32 %v404_v43, 0.0  ;;  %v587_v49 = vadd.f32 %v573_v52, %v439_v55 }
 0x106   : > { %3156 = vrsqrt.f32 %v4022_v12  ;;  %v417_v16 = vmax.f32 %v403_v15, 0.0  ;;  %v4034_v19 = vpop.permute.xlu1 %743  ;;  %vm493_vm13 = vcmp.eq.f32.partialorder %v3999_v45, 0.0  ;;  %v4043_v25 = vmul.f32 0.33333334, %v602_v33 }
 0x107   : > { %v3147_v0 = vpop.eup %3146  ;;  %v4040_v41 = vmul.f32 0.003921569, %v418_v30  ;;  %vm498_vm14 = vcmp.eq.f32.partialorder %v3992_v7, inf  ;;  %v450_v29 = vsel %vm449_vm4, %v3943_v37, %v448_v27  ;;  %v601_v2 = vadd.f32 %v587_v49, %v3921_v54 }
 0x108   : > { %v3149_v46 = vpop.eup %3148  ;;  %v483_v43 = vmul.f32 %v3147_v0, %v3973_v32  ;;  %v4050_v26 = vmul.f32 0.003921569, %v417_v16  ;;  %v453_v52 = vsel %vm451_vm5, %v452_v42, %v450_v29  ;;  %vm500_vm15 = vcmp.eq.f32.partialorder %v3992_v7, 0.0 }
 0x109   : > { %v501_v33 = vand.u32 2147483648, %v3992_v7  ;;  %v589_v55 = vadd.f32 %v575_v11, %v453_v52  ;;  %v464_v27 = vsel %vm463_vm6, %v3965_v10, %v462_v22  ;;  %v4065_v15 = vmul.f32 %v3149_v46, %v3979_v51  ;;  %v4082_v46 = vpop.permute.xlu0 %741 }
 0x10a   : > { %3158 = vrsqrt.f32 %v4040_v41  ;;  %v485_v54 = vsel %vm484_vm7, %v3973_v32, %v483_v43  ;;  %v4071_v42 = vpop.permute.xlu1 %745  ;;  %v467_v30 = vsel %vm465_vm8, %v466_v21, %v464_v27  ;;  %v615_v22 = vmul.f32 0.33333334, %v601_v2 }
 0x10b   : > { %v3151_v57 = vpop.eup %3150  ;;  %3160 = vrsqrt.f32 %v4050_v26  ;;  %v488_v11 = vsel %vm486_vm9, %v487_v60, %v485_v54  ;;  %v603_v16 = vadd.f32 %v589_v55, %v3943_v37  ;;  %vm512_vm0 = vcmp.eq.f32.partialorder %v4015_v4, inf }
 0x10c   : > { %v3153_v49 = vpop.eup %3152  ;;  %v497_v0 = vmul.f32 %v3151_v57, %v3992_v7  ;;  %v594_v29 = vadd.f32 %v580_v48, %v488_v11  ;;  %v5318_v21 = vsub.f32 1.0, %v3889_v17  ;;  %vm514_vm1 = vcmp.eq.f32.partialorder %v4015_v4, 0.0 }
 0x10d   : > { %v490_v52 = vmul.f32 %v3153_v49, %v3999_v45  ;;  %v515_v60 = vand.u32 2147483648, %v4015_v4  ;;  %v457_v37 = vsel %vm456_vm10, %v3939_v59, %v455_v20  ;;  %v617_v2 = vmul.f32 0.33333334, %v603_v16 }
 0x10e   : > { %v591_v43 = vadd.f32 %v5318_v21, %v467_v30  ;;  %v608_v39 = vadd.f32 %v594_v29, %v3973_v32  ;;  %v499_v48 = vsel %vm498_vm14, %v3992_v7, %v497_v0  ;;  %v460_v17 = vsel %vm458_vm11, %v459_v28, %v457_v37  ;;  %v4109_v57 = vpop.permute.xlu1 %747  ;;  %v4125_v37 = vpop.permute.xlu0 %749 }
 0x10f   : > { %v3155_v55 = vpop.eup %3154  ;;  %v492_v27 = vsel %vm491_vm12, %v3999_v45, %v490_v52  ;;  %v502_v20 = vsel %vm500_vm15, %v501_v33, %v499_v48  ;;  %v5319_v54 = vsub.f32 1.0, %v3868_v35  ;;  %v5320_v0 = vsub.f32 1.0, %v3917_v13 }
 0x110   : > { %v605_v32 = vadd.f32 %v591_v43, %v3965_v10  ;;  %v3157_v11 = vpop.eup %3156  ;;  %v511_v16 = vmul.f32 %v3155_v55, %v4015_v4  ;;  %v495_v28 = vsel %vm493_vm13, %v494_v58, %v492_v27  ;;  %v622_v49 = vmul.f32 0.33333334, %v608_v39 }
 0x111   : > { %v590_v30 = vadd.f32 %v5319_v54, %v460_v17  ;;  %v596_v29 = vadd.f32 %v5320_v0, %v502_v20  ;;  %v504_v21 = vmul.f32 %v3157_v11, %v4022_v12  ;;  %v5321_v33 = vsub.f32 1.0, %v3924_v44 }
 0x112   : > { %vm505_vm2 = vcmp.eq.f32.partialorder %v4022_v12, inf  ;;  %v629_v43 = vadd.f32 %v622_v49, %v615_v22  ;;  %v513_v58 = vsel %vm512_vm0, %v4015_v4, %v511_v16  ;;  %vm507_vm3 = vcmp.eq.f32.partialorder %v4022_v12, 0.0 }
 0x113   : > { %v595_v10 = vadd.f32 %v5321_v33, %v495_v28  ;;  %v604_v35 = vadd.f32 %v590_v30, %v3939_v59  ;;  %v610_v52 = vadd.f32 %v596_v29, %v3992_v7  ;;  %v516_v44 = vsel %vm514_vm1, %v515_v60, %v513_v58 }
 0x114   : > { %v506_v59 = vsel %vm505_vm2, %v4022_v12, %v504_v21  ;;  %v508_v39 = vand.u32 2147483648, %v4022_v12  ;;  %v3159_v22 = vpop.eup %3158  ;;  %v4133_v48 = vmul.f32 0.5, %v629_v43  ;;  %v5322_v17 = vsub.f32 1.0, %v3933_v47 }
 0x115   : > { %v609_v13 = vadd.f32 %v595_v10, %v3999_v45  ;;  %v624_v7 = vmul.f32 0.33333334, %v610_v52  ;;  %v619_v27 = vmul.f32 0.33333334, %v605_v32  ;;  %v3161_v20 = vpop.eup %3160  ;;  %v618_v30 = vmul.f32 0.33333334, %v604_v35  ;;  %v4139_v45 = vpop.permute.xlu1 %751 }
 0x116   : > { %v598_v55 = vadd.f32 %v5322_v17, %v516_v44  ;;  %v509_v11 = vsel %vm507_vm3, %v508_v39, %v506_v59  ;;  %vm477_vm4 = vcmp.eq.f32.partialorder %v3979_v51, inf  ;;  %vm470_vm5 = vcmp.eq.f32.partialorder %v3960_v23, inf  ;;  %v4159_v10 = vpop.permute.xlu0 %753 }
 0x117   : > { %v623_v54 = vmul.f32 0.33333334, %v609_v13  ;;  %vm657_vm6 = vcmp.lt.f32.partialorder %v4133_v48, 0.7  ;;  %v631_v60 = vadd.f32 %v624_v7, %v617_v2  ;;  %v5323_v28 = vsub.f32 1.0, %v3941_v36 }
 0x118   : > { %v612_v16 = vadd.f32 %v598_v55, %v4015_v4  ;;  %v525_v32 = vmul.f32 %v3159_v22, %v4040_v41  ;;  %v3303_v0 = vmov 0.0   ;;  %v478_v21 = vsel %vm477_vm4, %v3979_v51, %v4065_v15 }
 0x119   : > { %v597_v47 = vadd.f32 %v5323_v28, %v509_v11  ;;  %v630_v49 = vadd.f32 %v623_v54, %v4043_v25  ;;  %v4148_v29 = vsel %vm657_vm6, 1.0, %v3303_v0  ;;  %v4156_v2 = vmul.f32 0.5, %v631_v60  ;;  %v4176_v44 = vpop.permute.xlu1 %776 }
 0x11a   : > { %v4154_v33 = vmul.f32 %v4148_v29, %v3741_v61  ;;  %v626_v4 = vmul.f32 0.33333334, %v612_v16  ;;  %v518_v25 = vmul.f32 %v3161_v20, %v4050_v26  ;;  %vm479_vm7 = vcmp.eq.f32.partialorder %v3979_v51, 0.0  ;;  %v4205_v60 = vpop.permute.xlu0 %778 }
 0x11b   : > { %v611_v36 = vadd.f32 %v597_v47, %v4022_v12  ;;  %v4162_v35 = vmul.f32 0.5, %v630_v49  ;;  %v480_v43 = vand.u32 2147483648, %v3979_v51  ;;  %vm659_vm8 = vcmp.lt.f32.partialorder %v4156_v2, 0.7 }
 0x11c   : > { %v4168_v15 = vmul.f32 %v4082_v46, %v4154_v33  ;;  %v633_v52 = vadd.f32 %v626_v4, %v619_v27  ;;  %v4173_v12 = vsel %vm659_vm8, 1.0, %v3303_v0  ;;  %vm526_vm10 = vcmp.eq.f32.partialorder %v4040_v41, inf }
 0x11d   : > { %v625_v58 = vmul.f32 0.33333334, %v611_v36  ;;  %vm658_vm9 = vcmp.lt.f32.partialorder %v4162_v35, 0.7  ;;  %v481_v13 = vsel %vm479_vm7, %v480_v43, %v478_v21  ;;  %v4183_v46 = vmul.f32 %v4173_v12, %v3738_v8  ;;  %v4229_v4 = vpop.permute.xlu1 %780 }
 0x11e   : > { %v4179_v59 = vsel %vm658_vm9, 1.0, %v3303_v0  ;;  %v4185_v39 = vmul.f32 0.5, %v633_v52  ;;  %v527_v22 = vsel %vm526_vm10, %v4040_v41, %v525_v32  ;;  %v529_v55 = vand.u32 2147483648, %v4040_v41 }
 0x11f   : > { %v4190_v7 = vmul.f32 %v4179_v59, %v3722_v50  ;;  %v632_v17 = vadd.f32 %v625_v58, %v618_v30  ;;  %v5324_v27 = vsub.f32 1.0, %v3913_v62  ;;  %v4197_v54 = vmul.f32 %v4071_v42, %v4183_v46 }
 0x120   : > { %vm661_vm11 = vcmp.lt.f32.partialorder %v4185_v39, 0.7  ;;  %vm528_vm12 = vcmp.eq.f32.partialorder %v4040_v41, 0.0  ;;  %v471_v11 = vsel %vm470_vm5, %v3960_v23, %v4028_v18  ;;  %v5325_v47 = vsub.f32 1.0, %v3948_v1 }
 0x121   : > { %v593_v20 = vadd.f32 %v5324_v27, %v481_v13  ;;  %v4209_v30 = vmul.f32 %v4034_v19, %v4190_v7  ;;  %v4212_v62 = vsel %vm661_vm11, 1.0, %v3303_v0  ;;  %v4214_v42 = vmul.f32 0.5, %v632_v17 }
 0x122   : > { %v530_v16 = vsel %vm528_vm12, %v529_v55, %v527_v22  ;;  %v4218_v28 = vmul.f32 %v4212_v62, %v3755_v9  ;;  %vm472_vm13 = vcmp.eq.f32.partialorder %v3960_v23, 0.0  ;;  %v578_v19 = vsub.f32 1.0, %v3897_v38  ;;  %v4248_v55 = vpop.permute.xlu0 %782 }
 0x123   : > { %v600_v32 = vadd.f32 %v5325_v47, %v530_v16  ;;  %v607_v18 = vadd.f32 %v593_v20, %v3979_v51  ;;  %vm660_vm14 = vcmp.lt.f32.partialorder %v4214_v42, 0.7  ;;  %v5326_v49 = vand.u32 2147483648, %v3960_v23 }
 0x124   : > { %vm519_vm15 = vcmp.eq.f32.partialorder %v4050_v26, inf  ;;  %v4233_v36 = vmul.f32 %v4125_v37, %v4218_v28  ;;  %v4236_v1 = vsel %vm660_vm14, 1.0, %v3303_v0  ;;  %v585_v43 = vsub.f32 1.0, %v3963_v6 }
 0x125   : > { %v474_v21 = vsel %vm472_vm13, %v5326_v49, %v471_v11  ;;  %v614_v51 = vadd.f32 %v600_v32, %v4040_v41  ;;  %v520_v38 = vsel %vm519_vm15, %v4050_v26, %v518_v25  ;;  %v4243_v52 = vmul.f32 %v4236_v1, %v3746_v63 }
 0x126   : > { %v592_v58 = vadd.f32 %v578_v19, %v474_v21  ;;  %v522_v13 = vand.u32 2147483648, %v4050_v26  ;;  %v621_v22 = vmul.f32 0.33333334, %v607_v18  ;;  %vm521_vm0 = vcmp.eq.f32.partialorder %v4050_v26, 0.0  ;;  %v4259_v18 = vpop.permute.xlu1 %784 }
 0x127   : > { %v628_v17 = vmul.f32 0.33333334, %v614_v51  ;;  %v721_v37 = vsub.f32 1.0, %v4179_v59  ;;  %v4252_v41 = vmul.f32 %v4109_v57, %v4243_v52  ;;  %v720_v27 = vsub.f32 1.0, %v4148_v29 }
 0x128   : > { %v606_v6 = vadd.f32 %v592_v58, %v3960_v23  ;;  %v523_v25 = vsel %vm521_vm0, %v522_v13, %v520_v38  ;;  %v723_v32 = vsub.f32 1.0, %v4236_v1  ;;  %v722_v38 = vsub.f32 1.0, %v4173_v12 }
 0x129   : > { %v635_v20 = vadd.f32 %v628_v17, %v621_v22  ;;  %v599_v11 = vadd.f32 %v585_v43, %v523_v25  ;;  %v728_v16 = vmul.f32 %v721_v37, %v3722_v50  ;;  %v727_v47 = vmul.f32 %v720_v27, %v3741_v61  ;;  %v4266_v43 = vpop.permute.xlu0 %786 }
 0x12a   : > { %v620_v21 = vmul.f32 0.33333334, %v606_v6  ;;  %v730_v51 = vmul.f32 %v723_v32, %v3746_v63  ;;  %v724_v61 = vsub.f32 1.0, %v4212_v62  ;;  %v729_v13 = vmul.f32 %v722_v38, %v3738_v8  ;;  %v4279_v6 = vpop.permute.xlu1 %788 }
 0x12b   : > { %v649_v19 = vmul.f32 0.5, %v635_v20  ;;  %v613_v49 = vadd.f32 %v599_v11, %v4050_v26  ;;  %v798_v57 = vmul.f32 %v4205_v60, %v728_v16  ;;  %v797_v23 = vmul.f32 %v4176_v44, %v727_v47 }
 0x12c   : > { %v800_v58 = vmul.f32 %v4248_v55, %v730_v51  ;;  %v731_v17 = vmul.f32 %v724_v61, %v3755_v9  ;;  %v799_v37 = vmul.f32 %v4229_v4, %v729_v13  ;;  %vm689_vm3 = vcmp.lt.f32.partialorder %v4185_v39, 0.3 }
 0x12d   : > { %vm663_vm1 = vcmp.lt.f32.partialorder %v649_v19, 0.7  ;;  %v627_v50 = vmul.f32 0.33333334, %v613_v49  ;;  %813 = vrot.lane.b32.xlu0 %v798_v57, %s3304_s7  ;;  %811 = vrot.lane.b32.xlu1 %v797_v23, %s3304_s7  ;;  %v868_v9 = vpop.permute.xlu0 %867  ;;  %vm687_vm4 = vcmp.lt.f32.partialorder %v4156_v2, 0.3 }
 0x12e   : > { %v2800_v26 = vsel %vm663_vm1, 1.0, %v3303_v0  ;;  %v801_v8 = vmul.f32 %v4259_v18, %v731_v17  ;;  %v888_v61 = vmul.f32 %v868_v9, %v727_v47  ;;  %vm691_vm5 = vcmp.lt.f32.partialorder %v649_v19, 0.3 }
 0x12f   : > { %v4275_v63 = vmul.f32 %v2800_v26, %v3769_v24  ;;  %v634_v22 = vadd.f32 %v627_v50, %v620_v21  ;;  %v726_v25 = vsub.f32 1.0, %v2800_v26  ;;  %v870_v21 = vpop.permute.xlu1 %869  ;;  %vm688_vm6 = vcmp.lt.f32.partialorder %v4214_v42, 0.3 }
 0x130   : > { %vm686_vm8 = vcmp.lt.f32.partialorder %v4162_v35, 0.3  ;;  %vm685_vm9 = vcmp.lt.f32.partialorder %v4133_v48, 0.3 }
 0x131   : > { %v4283_v27 = vmul.f32 %v4159_v10, %v4275_v63  ;;  %v648_v20 = vmul.f32 0.5, %v634_v22  ;;  %817 = vrot.lane.b32.xlu0 %v800_v58, %s3304_s7  ;;  %v733_v11 = vmul.f32 %v726_v25, %v3769_v24  ;;  %815 = vrot.lane.b32.xlu1 %v799_v37, %s3304_s7  ;;  %v872_v50 = vpop.permute.xlu0 %871  ;;  %v2805_v22 = vsel %vm689_vm3, 1.0, %v3303_v0 }
 0x132   : > { %v4307_v37 = vmul.f32 %v2805_v22, %v4212_v62  ;;  %v2807_v25 = vsel %vm691_vm5, 1.0, %v3303_v0  ;;  %v890_v2 = vmul.f32 %v872_v50, %v729_v13  ;;  %v2804_v62 = vsel %vm688_vm6, 1.0, %v3303_v0 }
 0x133   : > { %vm662_vm2 = vcmp.lt.f32.partialorder %v648_v20, 0.7  ;;  %v803_v10 = vmul.f32 %v4279_v6, %v733_v11  ;;  %v874_v58 = vpop.permute.xlu1 %873  ;;  %v4315_v39 = vmul.f32 %v2807_v25, %v2800_v26  ;;  %v4321_v19 = vmul.f32 %v2804_v62, %v4236_v1 }
 0x134   : > { %v2799_v32 = vsel %vm662_vm2, 1.0, %v3303_v0  ;;  %vm690_vm7 = vcmp.lt.f32.partialorder %v648_v20, 0.3  ;;  %v931_v1 = vmul.f32 %v4205_v60, %v4190_v7  ;;  %v930_v13 = vmul.f32 %v4176_v44, %v4154_v33 }
 0x135   : > { %v4291_v49 = vmul.f32 %v2799_v32, %v3764_v5  ;;  %v725_v57 = vsub.f32 1.0, %v2799_v32  ;;  %819 = vrot.lane.b32.xlu1 %v801_v8, %s3304_s7  ;;  %v876_v47 = vpop.permute.xlu0 %875  ;;  %v933_v20 = vmul.f32 %v4248_v55, %v4243_v52  ;;  %v650_v60 = vmul.f32 0.5, %v3842_v40 }
 0x136   : > { %v934_v44 = vmul.f32 %v4259_v18, %v4218_v28  ;;  %v939_v55 = vmul.f32 %v872_v50, %v4183_v46  ;;  %v941_v40 = vmul.f32 %v876_v47, %v4218_v28  ;;  %v651_v22 = vmul.f32 0.5, %v3852_v56 }
 0x137   : > { %v4297_v23 = vmul.f32 %v4139_v45, %v4291_v49  ;;  %v732_v24 = vmul.f32 %v725_v57, %v3764_v5  ;;  %v889_v45 = vmul.f32 %v870_v21, %v728_v16  ;;  %v2803_v5 = vsel %vm687_vm4, 1.0, %v3303_v0  ;;  %v878_v57 = vpop.permute.xlu1 %877 }
 0x138   : > { %v4313_v8 = vmul.f32 %v2803_v5, %v4173_v12  ;;  %v891_v16 = vmul.f32 %v874_v58, %v730_v51  ;;  %v2806_v12 = vsel %vm690_vm7, 1.0, %v3303_v0  ;;  %v654_v18 = vmul.f32 0.5, %v3873_v3 }
 0x139   : > { %v802_v38 = vmul.f32 %v4266_v43, %v732_v24  ;;  %823 = vrot.lane.b32.xlu1 %v803_v10, %s3304_s7  ;;  %v4326_v26 = vmul.f32 %v2806_v12, %v2799_v32  ;;  %v892_v10 = vmul.f32 %v876_v47, %v731_v17  ;;  %v893_v42 = vmul.f32 %v878_v57, %v732_v24 }
 0x13a   : > { %v932_v17 = vmul.f32 %v4229_v4, %v4183_v46  ;;  %v937_v32 = vmul.f32 %v868_v9, %v4154_v33  ;;  %v936_v4 = vmul.f32 %v4279_v6, %v4275_v63  ;;  %v2802_v50 = vsel %vm686_vm8, 1.0, %v3303_v0 }
 0x13b   : > { %821 = vrot.lane.b32.xlu0 %v802_v38, %s3304_s7  ;;  %v880_v38 = vpop.permute.xlu0 %879  ;;  %v940_v6 = vmul.f32 %v874_v58, %v4243_v52  ;;  %v707_v56 = vmul.f32 %v2802_v50, %v4179_v59  ;;  %v2801_v5 = vsel %vm685_vm9, 1.0, %v3303_v0  ;;  %v656_v3 = vmul.f32 0.5, %v3895_v34 }
 0x13c   : > { %v894_v51 = vmul.f32 %v880_v38, %v733_v11  ;;  %v935_v11 = vmul.f32 %v4266_v43, %v4291_v49  ;;  %v944_v24 = vmul.f32 %v937_v32, %v650_v60  ;;  %v938_v43 = vmul.f32 %v870_v21, %v4190_v7 }
 0x13d   : > { %902 = vrot.lane.b32.xlu1 %v888_v61, %s3304_s7  ;;  %v652_v61 = vmul.f32 0.5, %v3847_v53  ;;  %v948_v21 = vmul.f32 %v941_v40, %v654_v18  ;;  %v943_v35 = vmul.f32 %v880_v38, %v4275_v63  ;;  %v942_v48 = vmul.f32 %v878_v57, %v4291_v49 }
 0x13e   : > { %v945_v53 = vmul.f32 %v938_v43, %v651_v22  ;;  %v706_v58 = vmul.f32 %v2801_v5, %v4148_v29  ;;  %v655_v62 = vmul.f32 0.5, %v3901_v14  ;;  %v3163_v29 = vld [vmem:[%s3713_s11] sm:$0xff]  ;;  %v5327_v43 = vmov 0  }
 0x13f   : > { %904 = vrot.lane.b32.xlu0 %v889_v45, %s3304_s7  ;;  %v946_v9 = vmul.f32 %v939_v55, %v652_v61  ;;  %v653_v45 = vmul.f32 0.5, %v3878_v31  ;;  %v950_v47 = vmul.f32 %v943_v35, %v656_v3  ;;  %v3162_v31 = vld [vmem:[%s3713_s11 + $0x8] sm:$0xff] }
 0x140   : > { %v949_v38 = vmul.f32 %v942_v48, %v655_v62 }
 0x141   : > { %906 = vrot.lane.b32.xlu1 %v890_v2, %s3304_s7  ;;  %v947_v25 = vmul.f32 %v940_v6, %v653_v45 }
 0x143   : > { %908 = vrot.lane.b32.xlu0 %v891_v16, %s3304_s7  ;;  %v714_v16 = vmul.f32 %v3162_v31, %v707_v56 }
 0x145   : > { %910 = vrot.lane.b32.xlu1 %v892_v10, %s3304_s7 }
 0x147   : > { %912 = vrot.lane.b32.xlu0 %v893_v42, %s3304_s7 }
 0x149   : > { %914 = vrot.lane.b32.xlu1 %v894_v51, %s3304_s7 }
 0x14b   : > { %2379 = vperm.xlu0 %3079, %v931_v1   ;;  %v713_v1 = vmul.f32 %v3163_v29, %v706_v58 }
 0x14d   : > { %2374 = vperm.xlu1 %3078, %v930_v13   ;;  %v951_v32 = vsub.f32 1.0, %v713_v1 }
 0x14f   : > { %2389 = vperm.xlu0 %3079, %v933_v20   ;;  %v952_v20 = vsub.f32 1.0, %v714_v16 }
 0x151   : > { %2384 = vperm.xlu1 %3078, %v932_v17  }
 0x153   : > { %2399 = vperm.xlu0 %3079, %v935_v11   ;;  %v5299_v11 = vmov 1  }
 0x155   : > { %2394 = vperm.xlu1 %3078, %v934_v44  }
 0x157   : > { %2465 = vperm.xlu0 %3079, %v944_v24  }
 0x159   : > { %2404 = vperm.xlu1 %3078, %v936_v4   ;;  %v1268_v2 = vpop.f32.mrb[0].mxu1 }
 0x15a   : > { %v1371_v12 = vpop.f32.mrb[0].mxu0  ;;  %v1270_v59 = vpop.f32.mrb[1].mxu1 }
 0x15b   : > { %2475 = vperm.xlu0 %3079, %v946_v9   ;;  %v4366_v0 = vadd.f32 %v1371_v12, %v1268_v2  ;;  %v1373_v34 = vpop.f32.mrb[1].mxu0  ;;  %v1272_v10 = vpop.f32.mrb[2].mxu1 }
 0x15c   : > { %v4368_v42 = vadd.f32 %v1373_v34, %v1270_v59  ;;  %v1375_v57 = vpop.f32.mrb[2].mxu0  ;;  %v1274_v51 = vpop.f32.mrb[3].mxu1 }
 0x15d   : > { %2470 = vperm.xlu1 %3078, %v945_v53   ;;  %v4371_v13 = vadd.f32 %v1375_v57, %v1272_v10  ;;  %v1377_v14 = vpop.f32.mrb[3].mxu0 }
 0x15e   : > { %v4373_v17 = vadd.f32 %v1377_v14, %v1274_v51 }
 0x15f   : > { %2485 = vperm.xlu0 %3079, %v948_v21  }
 0x161   : > { %2480 = vperm.xlu1 %3078, %v947_v25   ;;  %v1278_v60 = vpop.f32.mrb[4].mxu1 }
 0x162   : > { %v1381_v44 = vpop.f32.mrb[4].mxu0  ;;  %v1280_v24 = vpop.f32.mrb[5].mxu1 }
 0x163   : > { %2495 = vperm.xlu0 %3079, %v950_v47   ;;  %v4377_v55 = vadd.f32 %v1381_v44, %v1278_v60  ;;  %v1383_v61 = vpop.f32.mrb[5].mxu0  ;;  %v1282_v4 = vpop.f32.mrb[6].mxu1 }
 0x164   : > { %v4380_v9 = vadd.f32 %v1383_v61, %v1280_v24  ;;  %v1385_v40 = vpop.f32.mrb[6].mxu0  ;;  %v1284_v22 = vpop.f32.mrb[7].mxu1 }
 0x165   : > { %2490 = vperm.xlu1 %3078, %v949_v38   ;;  %v4382_v18 = vadd.f32 %v1385_v40, %v1282_v4  ;;  %v1387_v50 = vpop.f32.mrb[7].mxu0 }
 0x166   : > { %v4384_v53 = vadd.f32 %v1387_v50, %v1284_v22 }
 0x167   : > { %3081 = vset.pattern.permute.xlu0 %v5299_v11 }
 0x168   : > { %2589 = vperm.xlu0 %3081, %v952_v20  }
 0x169   : > { %3080 = vset.pattern.permute.xlu1 %v5299_v11  ;;  %v1288_v6 = vpop.f32.mrb[8].mxu1  ;;  %v4599_v11 = vstv %s1544_s8 }
 0x16a   : > { %2584 = vperm.xlu1 %3080, %v951_v32   ;;  %v1391_v21 = vpop.f32.mrb[8].mxu0  ;;  %v1290_v35 = vpop.f32.mrb[9].mxu1  ;;  %5342 = vst [vmem:[#allocation24_spill] sm:$0xff] %v4599_v11 }
 0x16b   : > { %v4387_v45 = vadd.f32 %v1391_v21, %v1288_v6  ;;  %v1393_v56 = vpop.f32.mrb[9].mxu0  ;;  %v1292_v5 = vpop.f32.mrb[10].mxu1 }
 0x16c   : > { %3082 = vset.pattern.permute.xlu0 %v5327_v43  ;;  %v4389_v3 = vadd.f32 %v1393_v56, %v1290_v35  ;;  %v1395_v25 = vpop.f32.mrb[10].mxu0  ;;  %v1294_v48 = vpop.f32.mrb[11].mxu1 }
 0x16d   : > { %v4391_v47 = vadd.f32 %v1395_v25, %v1292_v5  ;;  %v1397_v58 = vpop.f32.mrb[11].mxu0  ;;  %v840_v6 = vpop.permute.xlu0 %839 }
 0x16e   : > { %3083 = vset.pattern.permute.xlu1 %v5327_v43  ;;  %v4393_v2 = vadd.f32 %v1397_v58, %v1294_v48  ;;  %v842_v21 = vpop.permute.xlu1 %841 }
 0x171   : > { %v1298_v62 = vpop.f32.mrb[12].mxu1 }
 0x172   : > { %v1401_v31 = vpop.f32.mrb[12].mxu0  ;;  %v1300_v16 = vpop.f32.mrb[13].mxu1 }
 0x173   : > { %v4395_v12 = vadd.f32 %v1401_v31, %v1298_v62  ;;  %v1403_v59 = vpop.f32.mrb[13].mxu0  ;;  %v1302_v34 = vpop.f32.mrb[14].mxu1 }
 0x174   : > { %v4397_v10 = vadd.f32 %v1403_v59, %v1300_v16  ;;  %v1405_v38 = vpop.f32.mrb[14].mxu0  ;;  %v1304_v57 = vpop.f32.mrb[15].mxu1 }
 0x175   : > { %v4399_v51 = vadd.f32 %v1405_v38, %v1302_v34  ;;  %v1407_v29 = vpop.f32.mrb[15].mxu0 }
 0x176   : > { %v4401_v1 = vadd.f32 %v1407_v29, %v1304_v57  ;;  %v844_v57 = vpop.permute.xlu0 %843  ;;  %v846_v29 = vpop.permute.xlu1 %845 }
 0x179   : > { %v1308_v14 = vpop.f32.mrb[16].mxu1 }
 0x17a   : > { %v1411_v20 = vpop.f32.mrb[16].mxu0  ;;  %v1310_v32 = vpop.f32.mrb[17].mxu1 }
 0x17b   : > { %v4403_v60 = vadd.f32 %v1411_v20, %v1308_v14  ;;  %v1413_v44 = vpop.f32.mrb[17].mxu0  ;;  %v1312_v24 = vpop.f32.mrb[18].mxu1 }
 0x17c   : > { %v4405_v61 = vadd.f32 %v1413_v44, %v1310_v32  ;;  %v1415_v4 = vpop.f32.mrb[18].mxu0  ;;  %v1314_v43 = vpop.f32.mrb[19].mxu1  ;;  %v3164_v44 = vld [vmem:[%s3713_s11 + $0x20] sm:$0xff] }
 0x17d   : > { %v4407_v40 = vadd.f32 %v1415_v4, %v1312_v24  ;;  %v1417_v22 = vpop.f32.mrb[19].mxu0  ;;  %v4421_v24 = vmul.f32 %v3164_v44, %v4307_v37  ;;  %v3165_v4 = vld [vmem:[%s3713_s11 + $0x10] sm:$0xff]  ;;  %v4461_v44 = vadd.f32 1.0, %v4297_v23 }
 0x17e   : > { %v4409_v50 = vadd.f32 %v1417_v22, %v1314_v43  ;;  %v4425_v43 = vmul.f32 %v3165_v4, %v4313_v8  ;;  %v4442_v8 = vadd.f32 1.0, %v4252_v41 }
 0x181   : > { %v1318_v35 = vpop.f32.mrb[20].mxu1 }
 0x182   : > { %v1421_v56 = vpop.f32.mrb[20].mxu0  ;;  %v1320_v5 = vpop.f32.mrb[21].mxu1 }
 0x183   : > { %v4411_v25 = vadd.f32 %v1421_v56, %v1318_v35  ;;  %v1423_v48 = vpop.f32.mrb[21].mxu0  ;;  %v1322_v58 = vpop.f32.mrb[22].mxu1 }
 0x184   : > { %v4413_v62 = vadd.f32 %v1423_v48, %v1320_v5  ;;  %v1425_v31 = vpop.f32.mrb[22].mxu0  ;;  %v1324_v16 = vpop.f32.mrb[23].mxu1  ;;  %v770_v5 = vadd.f32 1.0, %v4209_v30  ;;  %v4431_v48 = vadd.f32 1.0, %v4168_v15 }
 0x185   : > { %v4415_v59 = vadd.f32 %v1425_v31, %v1322_v58  ;;  %v1427_v34 = vpop.f32.mrb[23].mxu0  ;;  %v4434_v58 = vadd.f32 1.0, %v4197_v54  ;;  %v848_v30 = vpop.permute.xlu0 %847  ;;  %v4450_v54 = vmul.f32 %v840_v6, %v4154_v33  ;;  %v4469_v6 = vmul.f32 0.11111111, %v4366_v0  ;;  %v3167_v0 = vld [vmem:[%s3713_s11 + $0x18] sm:$0xff] }
 0x186   : > { %v4417_v38 = vadd.f32 %v1427_v34, %v1324_v16  ;;  %v4439_v34 = vadd.f32 1.0, %v4233_v36  ;;  %v4456_v36 = vmul.f32 %v844_v57, %v4183_v46  ;;  %v4475_v46 = vmul.f32 0.11111111, %v4371_v13 }
 0x187   : > { %v4485_v57 = vmul.f32 0.11111111, %v4377_v55  ;;  %v4495_v13 = vmul.f32 0.11111111, %v4382_v18  ;;  %v4514_v18 = vmul.f32 0.11111111, %v4393_v2  ;;  %v4562_v2 = vstv %s1486_s26 }
 0x189   : > { %v1328_v14 = vpop.f32.mrb[24].mxu1 }
 0x18a   : > { %v1431_v20 = vpop.f32.mrb[24].mxu0  ;;  %v1330_v32 = vpop.f32.mrb[25].mxu1 }
 0x18b   : > { %v4427_v22 = vadd.f32 %v1431_v20, %v1328_v14  ;;  %v1433_v35 = vpop.f32.mrb[25].mxu0  ;;  %v1332_v56 = vpop.f32.mrb[26].mxu1  ;;  %v4445_v14 = vadd.f32 1.0, %v4283_v27  ;;  %v4464_v27 = vmul.f32 %v846_v29, %v4243_v52  ;;  %v4482_v52 = vmul.f32 0.11111111, %v4373_v17  ;;  %v3168_v17 = vld [vmem:[%s3713_s11 + $0x28] sm:$0xff] }
 0x18c   : > { %v4436_v31 = vadd.f32 %v1433_v35, %v1330_v32  ;;  %v1435_v37 = vpop.f32.mrb[26].mxu0  ;;  %v1334_v16 = vpop.f32.mrb[27].mxu1  ;;  %v4453_v32 = vmul.f32 %v842_v21, %v4190_v7  ;;  %v4472_v7 = vmul.f32 0.11111111, %v4368_v42  ;;  %v3166_v21 = vld [vmem:[%s3713_s11 + $0x30] sm:$0xff]  ;;  %v4492_v42 = vmul.f32 %v3167_v0, %v4321_v19 }
 0x18d   : > { %v4447_v15 = vadd.f32 %v1435_v37, %v1332_v56  ;;  %v1437_v20 = vpop.f32.mrb[27].mxu0  ;;  %v4479_v23 = vmul.f32 %v3166_v21, %v4315_v39  ;;  %v4488_v29 = vmul.f32 0.11111111, %v4380_v9  ;;  %v4498_v35 = vmul.f32 0.11111111, %v4384_v53  ;;  %v850_v56 = vpop.permute.xlu1 %849 }
 0x18e   : > { %v4458_v41 = vadd.f32 %v1437_v20, %v1334_v16  ;;  %v4501_v39 = vmul.f32 0.11111111, %v4387_v45  ;;  %v4505_v55 = vmul.f32 %v3168_v17, %v4326_v26  ;;  %v852_v9 = vpop.permute.xlu0 %851  ;;  %v4508_v37 = vmul.f32 0.11111111, %v4389_v3 }
 0x18f   : > { %v4511_v19 = vmul.f32 0.11111111, %v4391_v47  ;;  %v1468_v53 = vlaneseq  ;;  %v4517_v45 = vmul.f32 %v848_v30, %v4218_v28  ;;  %v4520_v16 = vmul.f32 0.11111111, %v4395_v12 }
 0x190   : > { %5328 = vst [vmem:[#allocation10_spill] sm:$0xff] %v4501_v39  ;;  %5329 = vst [vmem:[#allocation11_spill] sm:$0xff] %v4508_v37  ;;  %v4523_v26 = vmul.f32 0.11111111, %v4397_v10  ;;  %v4526_v3 = vmul.f32 0.11111111, %v4399_v51  ;;  %v4538_v28 = vmul.f32 %v850_v56, %v4291_v49 }
 0x191   : > { %5330 = vst [vmem:[#allocation12_spill] sm:$0xff] %v4520_v16  ;;  %v4529_v20 = vmul.f32 0.11111111, %v4401_v1  ;;  %v4532_v47 = vmul.f32 0.11111111, %v4403_v60  ;;  %v4535_v21 = vshrl.u32 %v1468_v53, 7 }
 0x192   : > { %5331 = vst [vmem:[#allocation13_spill] sm:$0xff] %v4523_v26  ;;  %5332 = vst [vmem:[#allocation14_spill] sm:$0xff] %v4526_v3  ;;  %v4541_v12 = vmul.f32 0.11111111, %v4405_v61  ;;  %v4544_v10 = vmul.f32 0.11111111, %v4407_v40 }
 0x193   : > { %5333 = vst [vmem:[#allocation15_spill] sm:$0xff] %v4529_v20  ;;  %v4549_v60 = vmul.f32 0.11111111, %v4409_v50  ;;  %v4552_v30 = vmul.f32 0.11111111, %v4411_v25  ;;  %v1476_v49 = vadd.s32 56, %v4535_v21  ;;  %v1488_v25 = vadd.s32 %v4562_v2, %v4535_v21 }
 0x194   : > { %v4557_v56 = vmul.f32 0.11111111, %v4413_v62  ;;  %v4560_v40 = vmul.f32 0.11111111, %v4415_v59  ;;  %v4565_v51 = vand.u32 127, %v1468_v53 }
 0x195   : > { %v1495_v0 = vadd.s32 %v4562_v2, %v1476_v49  ;;  %v4574_v62 = vmul.f32 0.11111111, %v4417_v38  ;;  %v4577_v59 = vmul.f32 0.11111111, %v4427_v22  ;;  %v4588_v38 = vmul.f32 0.11111111, %v4447_v15 }
 0x196   : > { %5334 = vst [vmem:[#allocation16_spill] sm:$0xff] %v4560_v40  ;;  %5335 = vst [vmem:[#allocation17_spill] sm:$0xff] %v4565_v51  ;;  %v4583_v53 = vadd.s32 128, %v4565_v51  ;;  %v4591_v22 = vmul.f32 0.11111111, %v4458_v41 }
 0x197   : > { %5336 = vst [vmem:[#allocation18_spill] sm:$0xff] %v4574_v62  ;;  %5337 = vst [vmem:[#allocation19_spill] sm:$0xff] %v4577_v59  ;;  %v1509_v49 = vmul.u32 256, %v1495_v0 }
 0x198   : > { %5339 = vst [vmem:[#allocation21_spill] sm:$0xff] %v4583_v53  ;;  %5340 = vst [vmem:[#allocation22_spill] sm:$0xff] %v4588_v38 }
 0x199   : > { %5341 = vst [vmem:[#allocation23_spill] sm:$0xff] %v4591_v22  ;;  %v1530_v0 = vadd.s32 %v1509_v49, %v4565_v51  ;;  %v1531_v33 = vadd.s32 %v1509_v49, %v4583_v53  ;;  %v1478_v22 = vadd.s32 72, %v4535_v21 }
 0x19b   : > { %v1561_v20 = vadd.s32 %v4599_v11, %v1531_v33 }
 0x19d   : > { %v2855_v38 = vshrl.u32 %v1561_v20, 16 }
 0x19f   : > { %v814_v1 = vpop.permute.xlu0 %813  ;;  %v812_v17 = vpop.permute.xlu1 %811  ;;  %v1645_v62 = vxor.u32 %v2855_v38, %v1561_v20 }
 0x1a0   : > { %v833_v61 = vadd.f32 %v814_v1, %v770_v5  ;;  %v832_v50 = vadd.f32 %v812_v17, %v4431_v48  ;;  %v4571_v5 = vmul.f32 %v852_v9, %v4275_v63  ;;  %v4580_v1 = vmul.f32 0.11111111, %v4436_v31 }
 0x1a1   : > { %v1502_v17 = vmul.u32 256, %v1488_v25  ;;  %v1470_v63 = vadd.s32 8, %v4535_v21  ;;  %v1477_v31 = vadd.s32 64, %v4535_v21 }
 0x1a2   : > { %2225 = vperm.xlu1 %3083, %v833_v61   ;;  %5338 = vst [vmem:[#allocation20_spill] sm:$0xff] %v4580_v1  ;;  %2220 = vperm.xlu0 %3082, %v832_v50  }
 0x1a3   : > { %v818_v48 = vpop.permute.xlu0 %817  ;;  %v816_v9 = vpop.permute.xlu1 %815  ;;  %v1516_v4 = vadd.s32 %v1502_v17, %v4565_v51  ;;  %v1517_v25 = vadd.s32 %v1502_v17, %v4583_v53  ;;  %v1496_v15 = vadd.s32 %v4562_v2, %v1477_v31  ;;  %v1471_v17 = vadd.s32 16, %v4535_v21 }
 0x1a4   : > { %v835_v61 = vadd.f32 %v818_v48, %v4442_v8  ;;  %v834_v50 = vadd.f32 %v816_v9, %v4434_v58  ;;  %v1489_v8 = vadd.s32 %v4562_v2, %v1470_v63  ;;  %v1560_v48 = vadd.s32 %v4599_v11, %v1530_v0 }
 0x1a5   : > { %v1546_v41 = vadd.s32 %v4599_v11, %v1516_v4  ;;  %v1547_v58 = vadd.s32 %v4599_v11, %v1517_v25  ;;  %v1510_v3 = vmul.u32 256, %v1496_v15 }
 0x1a6   : > { %2230 = vperm.xlu1 %3083, %v834_v50   ;;  %2235 = vperm.xlu0 %3082, %v835_v61   ;;  %v1503_v49 = vmul.u32 256, %v1489_v8  ;;  %v2854_v61 = vshrl.u32 %v1560_v48, 16 }
 0x1a7   : > { %v820_v9 = vpop.permute.xlu1 %819  ;;  %v2840_v31 = vshrl.u32 %v1546_v41, 16  ;;  %v2841_v50 = vshrl.u32 %v1547_v58, 16  ;;  %v1532_v0 = vadd.s32 %v1510_v3, %v4565_v51  ;;  %v1533_v8 = vadd.s32 %v1510_v3, %v4583_v53 }
 0x1a8   : > { %v836_v63 = vadd.f32 %v820_v9, %v4439_v34  ;;  %v1518_v4 = vadd.s32 %v1503_v49, %v4565_v51  ;;  %v1519_v25 = vadd.s32 %v1503_v49, %v4583_v53  ;;  %v1644_v33 = vxor.u32 %v2854_v61, %v1560_v48 }
 0x1a9   : > { %v1630_v26 = vxor.u32 %v2840_v31, %v1546_v41  ;;  %v1631_v16 = vxor.u32 %v2841_v50, %v1547_v58  ;;  %v1562_v40 = vadd.s32 %v4599_v11, %v1532_v0  ;;  %v1673_v48 = vmul.u32 73244475, %v1645_v62 }
 0x1aa   : > { %2240 = vperm.xlu1 %3083, %v836_v63   ;;  %v1548_v34 = vadd.s32 %v4599_v11, %v1518_v4  ;;  %v1549_v9 = vadd.s32 %v4599_v11, %v1519_v25  ;;  %v1563_v63 = vadd.s32 %v4599_v11, %v1533_v8  ;;  %v1672_v58 = vmul.u32 73244475, %v1644_v33 }
 0x1ab   : > { %v824_v15 = vpop.permute.xlu1 %823  ;;  %v1658_v49 = vmul.u32 73244475, %v1630_v26  ;;  %v1659_v1 = vmul.u32 73244475, %v1631_v16  ;;  %v2856_v50 = vshrl.u32 %v1562_v40, 16  ;;  %v2883_v25 = vshrl.u32 %v1673_v48, 16 }
 0x1ac   : > { %v838_v37 = vadd.f32 %v824_v15, %v4445_v14  ;;  %v2842_v3 = vshrl.u32 %v1548_v34, 16  ;;  %v2843_v31 = vshrl.u32 %v1549_v9, 16  ;;  %v2882_v4 = vshrl.u32 %v1672_v58, 16 }
 0x1ad   : > { %v822_v39 = vpop.permute.xlu0 %821  ;;  %v2868_v20 = vshrl.u32 %v1658_v49, 16  ;;  %v2869_v38 = vshrl.u32 %v1659_v1, 16  ;;  %v2857_v14 = vshrl.u32 %v1563_v63, 16  ;;  %v4621_v26 = vadd.s32 24, %v4535_v21 }
 0x1ae   : > { %v837_v41 = vadd.f32 %v822_v39, %v4461_v44  ;;  %2250 = vperm.xlu1 %3083, %v838_v37   ;;  %v4624_v62 = vxor.u32 %v2842_v3, %v1548_v34  ;;  %v1756_v33 = vxor.u32 %v2882_v4, %v1672_v58  ;;  %v1757_v8 = vxor.u32 %v2883_v25, %v1673_v48 }
 0x1af   : > { %v903_v61 = vpop.permute.xlu1 %902  ;;  %v1742_v44 = vxor.u32 %v2868_v20, %v1658_v49  ;;  %v1743_v39 = vxor.u32 %v2869_v38, %v1659_v1  ;;  %v4627_v15 = vxor.u32 %v2843_v31, %v1549_v9  ;;  %v4629_v53 = vxor.u32 %v2856_v50, %v1562_v40 }
 0x1b0   : > { %2245 = vperm.xlu0 %3082, %v837_v41   ;;  %v923_v16 = vadd.f32 %v903_v61, %v4450_v54  ;;  %v4631_v51 = vxor.u32 %v2857_v14, %v1563_v63  ;;  %v1784_v54 = vmul.u32 73244475, %v1756_v33  ;;  %v1785_v49 = vmul.u32 73244475, %v1757_v8 }
 0x1b1   : > { %v905_v0 = vpop.permute.xlu0 %904  ;;  %v1770_v41 = vmul.u32 73244475, %v1742_v44  ;;  %v1771_v11 = vmul.u32 73244475, %v1743_v39  ;;  %v4634_v1 = vadd.s32 %v4562_v2, %v1471_v17 }
 0x1b2   : > { %v924_v37 = vadd.f32 %v905_v0, %v4453_v32  ;;  %v4637_v32 = vadd.s32 %v4562_v2, %v1478_v22  ;;  %v1660_v40 = vmul.u32 73244475, %v4624_v62  ;;  %v2910_v3 = vshrl.u32 %v1784_v54, 16 }
 0x1b3   : > { %v907_v59 = vpop.permute.xlu1 %906  ;;  %v2896_v58 = vshrl.u32 %v1770_v41, 16  ;;  %v2897_v48 = vshrl.u32 %v1771_v11, 16  ;;  %v2911_v20 = vshrl.u32 %v1785_v49, 16  ;;  %v1661_v38 = vmul.u32 73244475, %v4627_v15 }
 0x1b4   : > { %2283 = vperm.xlu0 %3082, %v923_v16   ;;  %2288 = vperm.xlu1 %3083, %v924_v37   ;;  %v925_v34 = vadd.f32 %v907_v59, %v4456_v36  ;;  %v1674_v17 = vmul.u32 73244475, %v4629_v53  ;;  %v1675_v22 = vmul.u32 73244475, %v4631_v51  ;;  %v1868_v36 = vxor.u32 %v2910_v3, %v1784_v54 }
 0x1b5   : > { %v909_v9 = vpop.permute.xlu0 %908  ;;  %v1854_v31 = vxor.u32 %v2896_v58, %v1770_v41  ;;  %v1855_v50 = vxor.u32 %v2897_v48, %v1771_v11  ;;  %v1869_v59 = vxor.u32 %v2911_v20, %v1785_v49  ;;  %v2870_v4 = vshrl.u32 %v1660_v40, 16 }
 0x1b6   : > { %v926_v63 = vadd.f32 %v909_v9, %v4464_v27  ;;  %v2871_v25 = vshrl.u32 %v1661_v38, 16  ;;  %v1896_v11 = vand.u32 65535, %v1868_v36  ;;  %v2938_v33 = vshrl.u32 %v1868_v36, 16 }
 0x1b7   : > { %v911_v61 = vpop.permute.xlu1 %910  ;;  %v1882_v16 = vand.u32 65535, %v1854_v31  ;;  %v1883_v0 = vand.u32 65535, %v1855_v50  ;;  %v2924_v44 = vshrl.u32 %v1854_v31, 16  ;;  %v1897_v62 = vand.u32 65535, %v1869_v59 }
 0x1b8   : > { %2293 = vperm.xlu0 %3082, %v925_v34   ;;  %2298 = vperm.xlu1 %3083, %v926_v63   ;;  %v927_v14 = vadd.f32 %v911_v61, %v4517_v45  ;;  %v2925_v53 = vshrl.u32 %v1855_v50, 16  ;;  %v2939_v8 = vshrl.u32 %v1869_v59, 16  ;;  %v1924_v41 = vcvt.s32.f32 %v1896_v11 }
 0x1b9   : > { %v913_v27 = vpop.permute.xlu0 %912  ;;  %v1910_v37 = vcvt.s32.f32 %v1882_v16  ;;  %v1911_v51 = vcvt.s32.f32 %v1883_v0  ;;  %v1925_v54 = vcvt.s32.f32 %v1897_v62  ;;  %v2050_v49 = vcvt.s32.f32 %v2924_v44 }
 0x1ba   : > { %v928_v39 = vadd.f32 %v913_v27, %v4538_v28  ;;  %v2051_v45 = vcvt.s32.f32 %v2925_v53  ;;  %v2064_v48 = vcvt.s32.f32 %v2938_v33  ;;  %v1952_v28 = vadd.f32 0.5, %v1924_v41 }
 0x1bb   : > { %v915_v15 = vpop.permute.xlu1 %914  ;;  %v1938_v9 = vadd.f32 0.5, %v1910_v37  ;;  %v1939_v58 = vadd.f32 0.5, %v1911_v51  ;;  %v1953_v63 = vadd.f32 0.5, %v1925_v54  ;;  %v2065_v3 = vcvt.s32.f32 %v2939_v8 }
 0x1bc   : > { %2303 = vperm.xlu0 %3082, %v927_v14   ;;  %2308 = vperm.xlu1 %3083, %v928_v39   ;;  %v929_v34 = vadd.f32 %v915_v15, %v4571_v5  ;;  %v2078_v20 = vadd.f32 0.5, %v2050_v49  ;;  %v2079_v61 = vadd.f32 0.5, %v2051_v45  ;;  %v2092_v36 = vadd.f32 0.5, %v2064_v48 }
 0x1bd   : > { %v1966_v31 = vmul.f32 1.5258789e-05, %v1938_v9  ;;  %v1967_v50 = vmul.f32 1.5258789e-05, %v1939_v58  ;;  %v5343_v59 = vmov 1   ;;  %v1980_v14 = vmul.f32 1.5258789e-05, %v1952_v28 }
 0x1be   : > { %v1981_v27 = vmul.f32 1.5258789e-05, %v1953_v63  ;;  %v2093_v16 = vadd.f32 0.5, %v2065_v3  ;;  %v2106_v0 = vmul.f32 1.5258789e-05, %v2078_v20  ;;  %v5344_v5 = vsub.f32 1.0, %v4425_v43 }
 0x1bf   : > { %v2107_v44 = vmul.f32 1.5258789e-05, %v2079_v61  ;;  %v2120_v39 = vmul.f32 1.5258789e-05, %v2092_v36  ;;  %v2884_v11 = vshrl.u32 %v1674_v17, 16  ;;  %v2885_v62 = vshrl.u32 %v1675_v22, 16 }
 0x1c0   : > { %2313 = vperm.xlu0 %3082, %v929_v34   ;;  %3084 = vset.pattern.permute.xlu1 %v5343_v59  ;;  %v2121_v53 = vmul.f32 1.5258789e-05, %v2093_v16  ;;  %v2134_v37 = vadd.f32 %v2106_v0, %v1966_v31  ;;  %v1744_v51 = vxor.u32 %v2870_v4, %v1660_v40  ;;  %v1745_v33 = vxor.u32 %v2871_v25, %v1661_v38 }
 0x1c1   : > { %2594 = vperm.xlu1 %3084, %v5344_v5   ;;  %v2135_v8 = vadd.f32 %v2107_v44, %v1967_v50  ;;  %v2148_v15 = vadd.f32 %v2120_v39, %v1980_v14  ;;  %v1758_v41 = vxor.u32 %v2884_v11, %v1674_v17  ;;  %v1759_v54 = vxor.u32 %v2885_v62, %v1675_v22 }
 0x1c2   : > { %v2149_v49 = vadd.f32 %v2121_v53, %v1981_v27  ;;  %v2952_v45 = vadd.f32 -1.0, %v2134_v37  ;;  %v1772_v34 = vmul.u32 73244475, %v1744_v51  ;;  %v1773_v9 = vmul.u32 73244475, %v1745_v33 }
 0x1c3   : > { %v5345_v43 = vsub.f32 1.0, %v4421_v24  ;;  %v5346_v58 = vsub.f32 1.0, %v4492_v42  ;;  %v2953_v48 = vadd.f32 -1.0, %v2135_v8  ;;  %v2966_v28 = vadd.f32 -1.0, %v2148_v15 }
 0x1c4   : > { %3085 = vset.pattern.permute.xlu0 %v5343_v59  ;;  %v1786_v40 = vmul.u32 73244475, %v1758_v41  ;;  %v1787_v38 = vmul.u32 73244475, %v1759_v54  ;;  %v2967_v4 = vadd.f32 -1.0, %v2149_v49  ;;  %v2898_v25 = vshrl.u32 %v1772_v34, 16 }
 0x1c5   : > { %2604 = vperm.xlu0 %3085, %v5345_v43   ;;  %2599 = vperm.xlu1 %3084, %v5346_v58   ;;  %v2899_v17 = vshrl.u32 %v1773_v9, 16  ;;  %v1479_v22 = vadd.s32 80, %v4535_v21  ;;  %v4657_v63 = vmul.f32 2.4494898, %v2952_v45  ;;  %v4661_v24 = vadd.s32 %v4562_v2, %v4621_v26 }
 0x1c6   : > { %v2912_v3 = vshrl.u32 %v1786_v40, 16  ;;  %v2913_v20 = vshrl.u32 %v1787_v38, 16  ;;  %v4663_v31 = vmul.f32 2.4494898, %v2953_v48  ;;  %v4665_v42 = vmul.f32 2.4494898, %v2966_v28 }
 0x1c7   : > { %v1856_v50 = vxor.u32 %v2898_v25, %v1772_v34  ;;  %v1857_v61 = vxor.u32 %v2899_v17, %v1773_v9  ;;  %v5347_v36 = vsub.f32 1.0, %v4479_v23  ;;  %v5348_v59 = vsub.f32 1.0, %v4505_v55 }
 0x1c8   : > { %v4671_v14 = vmul.f32 2.4494898, %v2967_v4  ;;  %v1870_v27 = vxor.u32 %v2912_v3, %v1786_v40  ;;  %v1871_v16 = vxor.u32 %v2913_v20, %v1787_v38  ;;  %v1504_v0 = vmul.u32 256, %v4634_v1 }
 0x1c9   : > { %2614 = vperm.xlu0 %3085, %v5347_v36   ;;  %2609 = vperm.xlu1 %3084, %v5348_v59   ;;  %v1884_v5 = vand.u32 65535, %v1856_v50  ;;  %v1885_v44 = vand.u32 65535, %v1857_v61  ;;  %v2926_v39 = vshrl.u32 %v1856_v50, 16  ;;  %v2927_v11 = vshrl.u32 %v1857_v61, 16  ;;  %v5359_v61 = vld [vmem:[#allocation19_spill] sm:$0xff] }
 0x1ca   : > { %v2380_v26 = vpop.permute.xlu0 %2379  ;;  %v1511_v55 = vmul.u32 256, %v4637_v32  ;;  %v4682_v53 = vadd.s32 %v4562_v2, %v1479_v22  ;;  %v1898_v37 = vand.u32 65535, %v1870_v27  ;;  %v1899_v51 = vand.u32 65535, %v1871_v16 }
 0x1cb   : > { %v4675_v62 = vmul.f32 %v2380_v26, %v4475_v46  ;;  %v4678_v23 = vmul.f32 %v2380_v26, %v4482_v52  ;;  %v1912_v33 = vcvt.s32.f32 %v1884_v5  ;;  %v1913_v8 = vcvt.s32.f32 %v1885_v44 }
 0x1cc   : > { %v4684_v15 = vpop.permute.xlu1 %2374  ;;  %v2940_v41 = vshrl.u32 %v1870_v27, 16  ;;  %v2941_v54 = vshrl.u32 %v1871_v16, 16  ;;  %v2052_v49 = vcvt.s32.f32 %v2926_v39  ;;  %v2053_v45 = vcvt.s32.f32 %v2927_v11 }
 0x1cd   : > { %v4687_v46 = vmul.f32 %v2380_v26, %v4532_v47  ;;  %v4690_v52 = vmul.f32 %v2380_v26, %v4541_v12  ;;  %v4694_v34 = vmul.f32 %v4684_v15, %v4469_v6  ;;  %v4698_v9 = vmul.f32 %v4684_v15, %v4472_v7 }
 0x1ce   : > { %v2390_v43 = vpop.permute.xlu0 %2389  ;;  %v1926_v28 = vcvt.s32.f32 %v1898_v37  ;;  %v1927_v6 = vcvt.s32.f32 %v1899_v51  ;;  %v1940_v40 = vadd.f32 0.5, %v1912_v33  ;;  %v1941_v38 = vadd.f32 0.5, %v1913_v8  ;;  %v5367_v51 = vld [vmem:[#allocation16_spill] sm:$0xff]  ;;  %v5369_v8 = vld [vmem:[#allocation18_spill] sm:$0xff] }
 0x1cf   : > { %v4701_v58 = vmul.f32 %v2390_v43, %v4495_v13  ;;  %v4704_v48 = vmul.f32 %v2390_v43, %v4498_v35  ;;  %v4707_v47 = vmul.f32 %v2390_v43, %v4552_v30  ;;  %v4710_v12 = vmul.f32 %v2390_v43, %v4557_v56 }
 0x1d0   : > { %v2385_v4 = vpop.permute.xlu1 %2384  ;;  %v2066_v7 = vcvt.s32.f32 %v2940_v41  ;;  %v2067_v25 = vcvt.s32.f32 %v2941_v54  ;;  %v2080_v17 = vadd.f32 0.5, %v2052_v49  ;;  %v2081_v22 = vadd.f32 0.5, %v2053_v45 }
 0x1d1   : > { %5349 = vst [vmem:[#allocation25_spill] sm:$0xff] %v4701_v58  ;;  %5350 = vst [vmem:[#allocation26_spill] sm:$0xff] %v4704_v48  ;;  %v4713_v13 = vmul.f32 %v2385_v4, %v4485_v57  ;;  %v4716_v35 = vmul.f32 %v2385_v4, %v4488_v29  ;;  %v4719_v30 = vmul.f32 %v2385_v4, %v4544_v10  ;;  %v5361_v57 = vld [vmem:[#allocation20_spill] sm:$0xff]  ;;  %v1954_v29 = vadd.f32 0.5, %v1926_v28 }
 0x1d2   : > { %5351 = vst [vmem:[#allocation27_spill] sm:$0xff] %v4707_v47  ;;  %5352 = vst [vmem:[#allocation28_spill] sm:$0xff] %v4710_v12  ;;  %v4722_v56 = vmul.f32 %v2385_v4, %v4549_v60  ;;  %v2400_v3 = vpop.permute.xlu0 %2399  ;;  %v1955_v27 = vadd.f32 0.5, %v1927_v6  ;;  %v1968_v10 = vmul.f32 1.5258789e-05, %v1940_v40  ;;  %v1969_v16 = vmul.f32 1.5258789e-05, %v1941_v38  ;;  %v5371_v40 = vld [vmem:[#allocation17_spill] sm:$0xff] }
 0x1d3   : > { %5353 = vst [vmem:[#allocation29_spill] sm:$0xff] %v4713_v13  ;;  %5354 = vst [vmem:[#allocation30_spill] sm:$0xff] %v4716_v35  ;;  %v4725_v20 = vmul.f32 %v2400_v3, %v4511_v19  ;;  %v4728_v50 = vmul.f32 %v2400_v3, %v4514_v18  ;;  %v4731_v36 = vmul.f32 %v2400_v3, %v5359_v61  ;;  %v2094_v60 = vadd.f32 0.5, %v2066_v7  ;;  %v5363_v19 = vld [vmem:[#allocation10_spill] sm:$0xff]  ;;  %v5365_v18 = vld [vmem:[#allocation11_spill] sm:$0xff] }
 0x1d4   : > { %5355 = vst [vmem:[#allocation31_spill] sm:$0xff] %v4719_v30  ;;  %5356 = vst [vmem:[#allocation32_spill] sm:$0xff] %v4722_v56  ;;  %v4734_v59 = vmul.f32 %v2400_v3, %v5361_v57  ;;  %v2395_v26 = vpop.permute.xlu1 %2394  ;;  %v2095_v5 = vadd.f32 0.5, %v2067_v25  ;;  %v2108_v44 = vmul.f32 1.5258789e-05, %v2080_v17  ;;  %v2109_v39 = vmul.f32 1.5258789e-05, %v2081_v22  ;;  %v5372_v4 = vld [vmem:[#allocation21_spill] sm:$0xff] }
 0x1d5   : > { %5357 = vst [vmem:[#allocation33_spill] sm:$0xff] %v4725_v20  ;;  %5358 = vst [vmem:[#allocation34_spill] sm:$0xff] %v4728_v50  ;;  %v4737_v11 = vmul.f32 %v2395_v26, %v5363_v19  ;;  %v4740_v37 = vmul.f32 %v2395_v26, %v5365_v18  ;;  %v4743_v33 = vmul.f32 %v2395_v26, %v5367_v51  ;;  %v1982_v54 = vmul.f32 1.5258789e-05, %v1954_v29  ;;  %v5373_v57 = vld [vmem:[#allocation12_spill] sm:$0xff] }
 0x1d6   : > { %5360 = vst [vmem:[#allocation19_spill] sm:$0xff] %v4731_v36  ;;  %5362 = vst [vmem:[#allocation20_spill] sm:$0xff] %v4734_v59  ;;  %v4746_v41 = vmul.f32 %v2395_v26, %v5369_v8  ;;  %v1983_v49 = vmul.f32 1.5258789e-05, %v1955_v27  ;;  %v2122_v45 = vmul.f32 1.5258789e-05, %v2094_v60  ;;  %v2123_v43 = vmul.f32 1.5258789e-05, %v2095_v5  ;;  %v5375_v27 = vld [vmem:[#allocation13_spill] sm:$0xff] }
 0x1d7   : > { %5364 = vst [vmem:[#allocation10_spill] sm:$0xff] %v4737_v11  ;;  %5366 = vst [vmem:[#allocation11_spill] sm:$0xff] %v4740_v37  ;;  %v2136_v28 = vadd.f32 %v2108_v44, %v1968_v10  ;;  %v2137_v6 = vadd.f32 %v2109_v39, %v1969_v16  ;;  %v1520_v38 = vadd.s32 %v1504_v0, %v5371_v40  ;;  %v5377_v16 = vld [vmem:[#allocation22_spill] sm:$0xff]  ;;  %v5381_v19 = vld [vmem:[#allocation24_spill] sm:$0xff] }
 0x1d8   : > { %5368 = vst [vmem:[#allocation16_spill] sm:$0xff] %v4743_v33  ;;  %5370 = vst [vmem:[#allocation18_spill] sm:$0xff] %v4746_v41  ;;  %v1521_v7 = vadd.s32 %v1504_v0, %v5372_v4  ;;  %v2405_v25 = vpop.permute.xlu1 %2404  ;;  %v2150_v17 = vadd.f32 %v2122_v45, %v1982_v54  ;;  %v2151_v22 = vadd.f32 %v2123_v43, %v1983_v49  ;;  %v5379_v0 = vld [vmem:[#allocation23_spill] sm:$0xff]  ;;  %v5382_v8 = vld [vmem:[#allocation14_spill] sm:$0xff] }
 0x1d9   : > { %v1534_v3 = vadd.s32 %v1511_v55, %v5371_v40  ;;  %v1535_v61 = vadd.s32 %v1511_v55, %v5372_v4  ;;  %v4761_v29 = vmul.f32 %v2405_v25, %v5373_v57  ;;  %v4764_v10 = vmul.f32 %v2405_v25, %v5375_v27  ;;  %v5383_v49 = vld [vmem:[#allocation15_spill] sm:$0xff] }
 0x1da   : > { %v4767_v1 = vmul.f32 %v2405_v25, %v5377_v16  ;;  %v4770_v26 = vmul.f32 %v2405_v25, %v5379_v0  ;;  %v2954_v60 = vadd.f32 -1.0, %v2136_v28  ;;  %v2955_v5 = vadd.f32 -1.0, %v2137_v6 }
 0x1db   : > { %5374 = vst [vmem:[#allocation17_spill] sm:$0xff] %v4761_v29  ;;  %5376 = vst [vmem:[#allocation21_spill] sm:$0xff] %v4764_v10  ;;  %v2968_v44 = vadd.f32 -1.0, %v2150_v17  ;;  %v2969_v39 = vadd.f32 -1.0, %v2151_v22  ;;  %v1550_v18 = vadd.s32 %v5381_v19, %v1520_v38  ;;  %v1551_v32 = vadd.s32 %v5381_v19, %v1521_v7 }
 0x1dc   : > { %5378 = vst [vmem:[#allocation12_spill] sm:$0xff] %v4767_v1  ;;  %5380 = vst [vmem:[#allocation13_spill] sm:$0xff] %v4770_v26  ;;  %v1564_v55 = vadd.s32 %v5381_v19, %v1534_v3  ;;  %v1565_v51 = vadd.s32 %v5381_v19, %v1535_v61  ;;  %v4778_v54 = vmul.f32 %v4684_v15, %v5382_v8  ;;  %v4784_v43 = vmul.f32 2.4494898, %v2954_v60 }
 0x1dd   : > { %v4782_v45 = vmul.f32 %v4684_v15, %v5383_v49  ;;  %v4786_v28 = vmul.f32 2.4494898, %v2955_v5  ;;  %v4788_v6 = vmul.f32 2.4494898, %v2968_v44  ;;  %v2844_v38 = vshrl.u32 %v1550_v18, 16 }
 0x1de   : > { %v2845_v7 = vshrl.u32 %v1551_v32, 16  ;;  %v2858_v25 = vshrl.u32 %v1564_v55, 16  ;;  %v4790_v17 = vmul.f32 2.4494898, %v2969_v39  ;;  %v2859_v22 = vshrl.u32 %v1565_v51, 16 }
 0x1df   : > { %v1505_v3 = vmul.u32 256, %v4661_v24  ;;  %v1512_v61 = vmul.u32 256, %v4682_v53  ;;  %v1634_v57 = vxor.u32 %v2844_v38, %v1550_v18  ;;  %v1473_v16 = vadd.s32 32, %v4535_v21 }
 0x1e0   : > { %v1635_v27 = vxor.u32 %v2845_v7, %v1551_v32  ;;  %v1648_v15 = vxor.u32 %v2858_v25, %v1564_v55  ;;  %v1649_v0 = vxor.u32 %v2859_v22, %v1565_v51  ;;  %v1480_v24 = vadd.s32 88, %v4535_v21 }
 0x1e1   : > { %v1522_v60 = vadd.s32 %v1505_v3, %v5371_v40  ;;  %v1523_v5 = vadd.s32 %v1505_v3, %v5372_v4  ;;  %v1536_v44 = vadd.s32 %v1512_v61, %v5371_v40  ;;  %v1662_v8 = vmul.u32 73244475, %v1634_v57 }
 0x1e2   : > { %v1663_v39 = vmul.u32 73244475, %v1635_v27  ;;  %v1537_v49 = vadd.s32 %v1512_v61, %v5372_v4  ;;  %v1676_v59 = vmul.u32 73244475, %v1648_v15  ;;  %v4808_v41 = vadd.s32 %v4562_v2, %v1480_v24 }
 0x1e3   : > { %v1677_v53 = vmul.u32 73244475, %v1649_v0  ;;  %v1552_v18 = vadd.s32 %v5381_v19, %v1522_v60  ;;  %v1553_v32 = vadd.s32 %v5381_v19, %v1523_v5  ;;  %v2872_v55 = vshrl.u32 %v1662_v8, 16 }
 0x1e4   : > { %v2873_v51 = vshrl.u32 %v1663_v39, 16  ;;  %v1566_v38 = vadd.s32 %v5381_v19, %v1536_v44  ;;  %v1567_v7 = vadd.s32 %v5381_v19, %v1537_v49  ;;  %v2886_v25 = vshrl.u32 %v1676_v59, 16 }
 0x1e5   : > { %v2887_v22 = vshrl.u32 %v1677_v53, 16  ;;  %v2846_v3 = vshrl.u32 %v1552_v18, 16  ;;  %v2847_v57 = vshrl.u32 %v1553_v32, 16  ;;  %v1746_v27 = vxor.u32 %v2872_v55, %v1662_v8 }
 0x1e6   : > { %v1747_v61 = vxor.u32 %v2873_v51, %v1663_v39  ;;  %v2860_v36 = vshrl.u32 %v1566_v38, 16  ;;  %v2861_v50 = vshrl.u32 %v1567_v7, 16  ;;  %v1760_v15 = vxor.u32 %v2886_v25, %v1676_v59 }
 0x1e7   : > { %v1761_v0 = vxor.u32 %v2887_v22, %v1677_v53  ;;  %v1636_v20 = vxor.u32 %v2846_v3, %v1552_v18  ;;  %v1637_v60 = vxor.u32 %v2847_v57, %v1553_v32  ;;  %v1774_v26 = vmul.u32 73244475, %v1746_v27 }
 0x1e8   : > { %v1775_v5 = vmul.u32 73244475, %v1747_v61  ;;  %v1650_v1 = vxor.u32 %v2860_v36, %v1566_v38  ;;  %v1651_v10 = vxor.u32 %v2861_v50, %v1567_v7  ;;  %v1788_v29 = vmul.u32 73244475, %v1760_v15 }
 0x1e9   : > { %v1789_v44 = vmul.u32 73244475, %v1761_v0  ;;  %v4805_v49 = vadd.s32 %v4562_v2, %v1473_v16  ;;  %v2900_v8 = vshrl.u32 %v1774_v26, 16  ;;  %v1664_v55 = vmul.u32 73244475, %v1636_v20 }
 0x1ea   : > { %v2901_v39 = vshrl.u32 %v1775_v5, 16  ;;  %v1665_v51 = vmul.u32 73244475, %v1637_v60  ;;  %v2914_v59 = vshrl.u32 %v1788_v29, 16  ;;  %v1678_v18 = vmul.u32 73244475, %v1650_v1 }
 0x1eb   : > { %v2915_v53 = vshrl.u32 %v1789_v44, 16  ;;  %v1679_v32 = vmul.u32 73244475, %v1651_v10  ;;  %v1858_v25 = vxor.u32 %v2900_v8, %v1774_v26  ;;  %v2874_v36 = vshrl.u32 %v1664_v55, 16 }
 0x1ec   : > { %v1859_v22 = vxor.u32 %v2901_v39, %v1775_v5  ;;  %v2875_v50 = vshrl.u32 %v1665_v51, 16  ;;  %v1872_v38 = vxor.u32 %v2914_v59, %v1788_v29  ;;  %v2888_v3 = vshrl.u32 %v1678_v18, 16 }
 0x1ed   : > { %v1873_v7 = vxor.u32 %v2915_v53, %v1789_v44  ;;  %v2889_v16 = vshrl.u32 %v1679_v32, 16  ;;  %v1886_v57 = vand.u32 65535, %v1858_v25  ;;  %v2928_v24 = vshrl.u32 %v1858_v25, 16 }
 0x1ee   : > { %v1887_v27 = vand.u32 65535, %v1859_v22  ;;  %v2929_v61 = vshrl.u32 %v1859_v22, 16  ;;  %v1900_v15 = vand.u32 65535, %v1872_v38  ;;  %v2942_v20 = vshrl.u32 %v1872_v38, 16 }
 0x1ef   : > { %v1901_v0 = vand.u32 65535, %v1873_v7  ;;  %v2943_v60 = vshrl.u32 %v1873_v7, 16  ;;  %v1914_v33 = vcvt.s32.f32 %v1886_v57  ;;  %v2054_v1 = vcvt.s32.f32 %v2928_v24 }
 0x1f0   : > { %v1915_v37 = vcvt.s32.f32 %v1887_v27  ;;  %v2055_v10 = vcvt.s32.f32 %v2929_v61  ;;  %v1928_v26 = vcvt.s32.f32 %v1900_v15  ;;  %v2068_v8 = vcvt.s32.f32 %v2942_v20 }
 0x1f1   : > { %v1929_v5 = vcvt.s32.f32 %v1901_v0  ;;  %v2069_v39 = vcvt.s32.f32 %v2943_v60  ;;  %v1942_v29 = vadd.f32 0.5, %v1914_v33  ;;  %v2082_v59 = vadd.f32 0.5, %v2054_v1 }
 0x1f2   : > { %v1943_v44 = vadd.f32 0.5, %v1915_v37  ;;  %v2083_v53 = vadd.f32 0.5, %v2055_v10  ;;  %v1956_v11 = vadd.f32 0.5, %v1928_v26  ;;  %v2096_v25 = vadd.f32 0.5, %v2068_v8 }
 0x1f3   : > { %v1957_v12 = vadd.f32 0.5, %v1929_v5  ;;  %v2097_v22 = vadd.f32 0.5, %v2069_v39  ;;  %v1970_v47 = vmul.f32 1.5258789e-05, %v1942_v29  ;;  %v2110_v38 = vmul.f32 1.5258789e-05, %v2082_v59 }
 0x1f4   : > { %v1971_v48 = vmul.f32 1.5258789e-05, %v1943_v44  ;;  %v2111_v7 = vmul.f32 1.5258789e-05, %v2083_v53  ;;  %v1984_v57 = vmul.f32 1.5258789e-05, %v1956_v11  ;;  %v2124_v24 = vmul.f32 1.5258789e-05, %v2096_v25 }
 0x1f5   : > { %v1985_v27 = vmul.f32 1.5258789e-05, %v1957_v12  ;;  %v2125_v61 = vmul.f32 1.5258789e-05, %v2097_v22  ;;  %v2138_v15 = vadd.f32 %v2110_v38, %v1970_v47  ;;  %v1748_v20 = vxor.u32 %v2874_v36, %v1664_v55 }
 0x1f6   : > { %v2139_v0 = vadd.f32 %v2111_v7, %v1971_v48  ;;  %v1749_v60 = vxor.u32 %v2875_v50, %v1665_v51  ;;  %v2152_v33 = vadd.f32 %v2124_v24, %v1984_v57  ;;  %v1762_v1 = vxor.u32 %v2888_v3, %v1678_v18 }
 0x1f7   : > { %v2153_v37 = vadd.f32 %v2125_v61, %v1985_v27  ;;  %v1763_v10 = vxor.u32 %v2889_v16, %v1679_v32  ;;  %v2956_v26 = vadd.f32 -1.0, %v2138_v15  ;;  %v1776_v8 = vmul.u32 73244475, %v1748_v20 }
 0x1f8   : > { %v2957_v5 = vadd.f32 -1.0, %v2139_v0  ;;  %v1777_v39 = vmul.u32 73244475, %v1749_v60  ;;  %v2970_v29 = vadd.f32 -1.0, %v2152_v33  ;;  %v1790_v44 = vmul.u32 73244475, %v1762_v1 }
 0x1f9   : > { %v1791_v59 = vmul.u32 73244475, %v1763_v10  ;;  %v1474_v11 = vadd.s32 40, %v4535_v21  ;;  %v2971_v12 = vadd.f32 -1.0, %v2153_v37  ;;  %v4811_v53 = vmul.f32 2.4494898, %v2956_v26 }
 0x1fa   : > { %v2902_v47 = vshrl.u32 %v1776_v8, 16  ;;  %v2903_v48 = vshrl.u32 %v1777_v39, 16  ;;  %v4813_v55 = vmul.f32 2.4494898, %v2957_v5  ;;  %v4815_v51 = vmul.f32 2.4494898, %v2970_v29 }
 0x1fb   : > { %v2916_v18 = vshrl.u32 %v1790_v44, 16  ;;  %v2917_v32 = vshrl.u32 %v1791_v59, 16  ;;  %v1506_v3 = vmul.u32 256, %v4805_v49  ;;  %v1513_v16 = vmul.u32 256, %v4808_v41 }
 0x1fc   : > { %v1860_v36 = vxor.u32 %v2902_v47, %v1776_v8  ;;  %v1861_v50 = vxor.u32 %v2903_v48, %v1777_v39  ;;  %v4820_v38 = vadd.s32 96, %v4535_v21  ;;  %v4823_v7 = vadd.s32 %v4562_v2, %v1474_v11 }
 0x1fd   : > { %v1874_v25 = vxor.u32 %v2916_v18, %v1790_v44  ;;  %v1875_v22 = vxor.u32 %v2917_v32, %v1791_v59 }
 0x1fe   : > { %v1888_v57 = vand.u32 65535, %v1860_v36  ;;  %v1889_v27 = vand.u32 65535, %v1861_v50  ;;  %v2930_v24 = vshrl.u32 %v1860_v36, 16  ;;  %v2931_v61 = vshrl.u32 %v1861_v50, 16 }
 0x1ff   : > { %v1902_v15 = vand.u32 65535, %v1874_v25  ;;  %v1903_v0 = vand.u32 65535, %v1875_v22  ;;  %v2944_v20 = vshrl.u32 %v1874_v25, 16  ;;  %v2945_v60 = vshrl.u32 %v1875_v22, 16 }
 0x200   : > { %v1916_v33 = vcvt.s32.f32 %v1888_v57  ;;  %v1917_v49 = vcvt.s32.f32 %v1889_v27  ;;  %v2056_v37 = vcvt.s32.f32 %v2930_v24  ;;  %v2057_v41 = vcvt.s32.f32 %v2931_v61  ;;  %v4825_v24 = vpop.permute.xlu0 %2465 }
 0x201   : > { %v1930_v1 = vcvt.s32.f32 %v1902_v15  ;;  %v1931_v10 = vcvt.s32.f32 %v1903_v0  ;;  %v2070_v26 = vcvt.s32.f32 %v2944_v20  ;;  %v2071_v5 = vcvt.s32.f32 %v2945_v60 }
 0x202   : > { %v1944_v8 = vadd.f32 0.5, %v1916_v33  ;;  %v1945_v39 = vadd.f32 0.5, %v1917_v49  ;;  %v2084_v29 = vadd.f32 0.5, %v2056_v37  ;;  %v2085_v44 = vadd.f32 0.5, %v2057_v41 }
 0x203   : > { %v1958_v59 = vadd.f32 0.5, %v1930_v1  ;;  %v1959_v11 = vadd.f32 0.5, %v1931_v10  ;;  %v2098_v47 = vadd.f32 0.5, %v2070_v26  ;;  %v2099_v48 = vadd.f32 0.5, %v2071_v5 }
 0x204   : > { %v1972_v18 = vmul.f32 1.5258789e-05, %v1944_v8  ;;  %v1973_v32 = vmul.f32 1.5258789e-05, %v1945_v39  ;;  %v2112_v36 = vmul.f32 1.5258789e-05, %v2084_v29  ;;  %v2113_v50 = vmul.f32 1.5258789e-05, %v2085_v44 }
 0x205   : > { %v1986_v25 = vmul.f32 1.5258789e-05, %v1958_v59  ;;  %v1987_v22 = vmul.f32 1.5258789e-05, %v1959_v11  ;;  %v2126_v57 = vmul.f32 1.5258789e-05, %v2098_v47  ;;  %v2127_v27 = vmul.f32 1.5258789e-05, %v2099_v48  ;;  %v4839_v47 = vpop.permute.xlu1 %2470 }
 0x206   : > { %v2140_v61 = vadd.f32 %v2112_v36, %v1972_v18  ;;  %v2141_v15 = vadd.f32 %v2113_v50, %v1973_v32  ;;  %v1524_v0 = vadd.s32 %v1506_v3, %v5371_v40  ;;  %v1525_v20 = vadd.s32 %v1506_v3, %v5372_v4 }
 0x207   : > { %v2154_v60 = vadd.f32 %v2126_v57, %v1986_v25  ;;  %v2155_v33 = vadd.f32 %v2127_v27, %v1987_v22  ;;  %v1538_v49 = vadd.s32 %v1513_v16, %v5371_v40  ;;  %v1539_v37 = vadd.s32 %v1513_v16, %v5372_v4 }
 0x208   : > { %v2958_v41 = vadd.f32 -1.0, %v2140_v61  ;;  %v2959_v1 = vadd.f32 -1.0, %v2141_v15  ;;  %v1554_v10 = vadd.s32 %v5381_v19, %v1524_v0  ;;  %v1555_v26 = vadd.s32 %v5381_v19, %v1525_v20 }
 0x209   : > { %v4833_v5 = vmul.f32 2.4494898, %v2971_v12  ;;  %v2972_v8 = vadd.f32 -1.0, %v2154_v60  ;;  %v1568_v39 = vadd.s32 %v5381_v19, %v1538_v49  ;;  %v1569_v29 = vadd.s32 %v5381_v19, %v1539_v37  ;;  %v4845_v12 = vpop.permute.xlu0 %2475 }
 0x20a   : > { %v2973_v3 = vadd.f32 -1.0, %v2155_v33  ;;  %v4837_v44 = vmul.f32 2.4494898, %v2958_v41  ;;  %v2848_v59 = vshrl.u32 %v1554_v10, 16  ;;  %v2849_v11 = vshrl.u32 %v1555_v26, 16  ;;  %5386 = vst [vmem:[#allocation24_spill] sm:$0xff] %v4845_v12 }
 0x20b   : > { %v4841_v16 = vmul.f32 2.4494898, %v2959_v1  ;;  %v4843_v48 = vmul.f32 2.4494898, %v2972_v8  ;;  %v2862_v18 = vshrl.u32 %v1568_v39, 16  ;;  %v2863_v32 = vshrl.u32 %v1569_v29, 16  ;;  %v4860_v8 = vpop.permute.xlu1 %2480 }
 0x20c   : > { %v1638_v36 = vxor.u32 %v2848_v59, %v1554_v10  ;;  %v1639_v50 = vxor.u32 %v2849_v11, %v1555_v26  ;;  %v1500_v25 = vadd.s32 %v4562_v2, %v4820_v38  ;;  %v1507_v22 = vmul.u32 256, %v4823_v7  ;;  %5388 = vst [vmem:[#allocation15_spill] sm:$0xff] %v4860_v8 }
 0x20d   : > { %5384 = vst [vmem:[#allocation22_spill] sm:$0xff] %v4841_v16  ;;  %5385 = vst [vmem:[#allocation23_spill] sm:$0xff] %v4843_v48  ;;  %v1652_v57 = vxor.u32 %v2862_v18, %v1568_v39  ;;  %v1653_v27 = vxor.u32 %v2863_v32, %v1569_v29  ;;  %v1475_v61 = vadd.s32 48, %v4535_v21  ;;  %v1482_v15 = vadd.s32 104, %v4535_v21 }
 0x20e   : > { %v1666_v0 = vmul.u32 73244475, %v1638_v36  ;;  %v1667_v20 = vmul.u32 73244475, %v1639_v50  ;;  %v1526_v60 = vadd.s32 %v1507_v22, %v5371_v40  ;;  %v1527_v33 = vadd.s32 %v1507_v22, %v5372_v4 }
 0x20f   : > { %v4854_v49 = vmul.f32 2.4494898, %v2973_v3  ;;  %v1680_v37 = vmul.u32 73244475, %v1652_v57  ;;  %v1681_v41 = vmul.u32 73244475, %v1653_v27  ;;  %v4857_v38 = vadd.s32 %v4562_v2, %v1475_v61  ;;  %v4866_v3 = vpop.permute.xlu0 %2485 }
 0x210   : > { %v2876_v7 = vshrl.u32 %v1666_v0, 16  ;;  %v2877_v1 = vshrl.u32 %v1667_v20, 16  ;;  %v1514_v10 = vmul.u32 256, %v1500_v25  ;;  %v1556_v26 = vadd.s32 %v5381_v19, %v1526_v60  ;;  %5389 = vst [vmem:[#allocation35_spill] sm:$0xff] %v4866_v3 }
 0x211   : > { %5387 = vst [vmem:[#allocation14_spill] sm:$0xff] %v4854_v49  ;;  %v2890_v21 = vshrl.u32 %v1680_v37, 16  ;;  %v2891_v39 = vshrl.u32 %v1681_v41, 16  ;;  %v1557_v29 = vadd.s32 %v5381_v19, %v1527_v33  ;;  %v4864_v59 = vadd.s32 %v4562_v2, %v1482_v15 }
 0x212   : > { %v1750_v11 = vxor.u32 %v2876_v7, %v1666_v0  ;;  %v1751_v18 = vxor.u32 %v2877_v1, %v1667_v20  ;;  %v1540_v32 = vadd.s32 %v1514_v10, %v5371_v40  ;;  %v1541_v36 = vadd.s32 %v1514_v10, %v5372_v4 }
 0x213   : > { %v1764_v50 = vxor.u32 %v2890_v21, %v1680_v37  ;;  %v1765_v25 = vxor.u32 %v2891_v39, %v1681_v41  ;;  %v2850_v22 = vshrl.u32 %v1556_v26, 16  ;;  %v2851_v57 = vshrl.u32 %v1557_v29, 16  ;;  %v4876_v37 = vpop.permute.xlu1 %2490 }
 0x214   : > { %v1778_v27 = vmul.u32 73244475, %v1750_v11  ;;  %v1779_v61 = vmul.u32 73244475, %v1751_v18  ;;  %v1570_v60 = vadd.s32 %v5381_v19, %v1540_v32  ;;  %v1571_v33 = vadd.s32 %v5381_v19, %v1541_v36  ;;  %5390 = vst [vmem:[#allocation36_spill] sm:$0xff] %v4876_v37  ;;  %v4880_v18 = vpop.permute.xlu0 %2495 }
 0x215   : > { %v1792_v2 = vmul.u32 73244475, %v1764_v50  ;;  %v1793_v15 = vmul.u32 73244475, %v1765_v25  ;;  %v4872_v8 = vxor.u32 %v2850_v22, %v1556_v26  ;;  %v4874_v0 = vxor.u32 %v2851_v57, %v1557_v29  ;;  %5391 = vst [vmem:[#allocation37_spill] sm:$0xff] %v4880_v18 }
 0x216   : > { %v2904_v20 = vshrl.u32 %v1778_v27, 16  ;;  %v2905_v7 = vshrl.u32 %v1779_v61, 16  ;;  %v2864_v1 = vshrl.u32 %v1570_v60, 16  ;;  %v2865_v10 = vshrl.u32 %v1571_v33, 16 }
 0x217   : > { %v2918_v41 = vshrl.u32 %v1792_v2, 16  ;;  %v2919_v21 = vshrl.u32 %v1793_v15, 16  ;;  %v5312_v39 = vmul.u32 73244475, %v4872_v8 }
 0x218   : > { %v1862_v32 = vxor.u32 %v2904_v20, %v1778_v27  ;;  %v1863_v36 = vxor.u32 %v2905_v7, %v1779_v61  ;;  %v4882_v26 = vxor.u32 %v2864_v1, %v1570_v60  ;;  %v4885_v22 = vxor.u32 %v2865_v10, %v1571_v33  ;;  %v4889_v1 = vpop.permute.xlu1 %2584 }
 0x219   : > { %v1876_v50 = vxor.u32 %v2918_v41, %v1792_v2  ;;  %v1877_v25 = vxor.u32 %v2919_v21, %v1793_v15  ;;  %v2878_v57 = vshrl.u32 %v5312_v39, 16  ;;  %v4891_v41 = vpop.permute.xlu0 %2589 }
 0x21a   : > { %v1890_v37 = vand.u32 65535, %v1862_v32  ;;  %v1891_v3 = vand.u32 65535, %v1863_v36  ;;  %v2932_v12 = vshrl.u32 %v1862_v32, 16  ;;  %v2933_v58 = vshrl.u32 %v1863_v36, 16 }
 0x21b   : > { %v1904_v11 = vand.u32 65535, %v1876_v50  ;;  %v1905_v56 = vand.u32 65535, %v1877_v25  ;;  %v2946_v18 = vshrl.u32 %v1876_v50, 16  ;;  %v2947_v27 = vshrl.u32 %v1877_v25, 16 }
 0x21c   : > { %v1918_v61 = vcvt.s32.f32 %v1890_v37  ;;  %v1919_v60 = vcvt.s32.f32 %v1891_v3  ;;  %v2058_v20 = vcvt.s32.f32 %v2932_v12  ;;  %v2059_v7 = vcvt.s32.f32 %v2933_v58 }
 0x21d   : > { %v1932_v2 = vcvt.s32.f32 %v1904_v11  ;;  %v1933_v33 = vcvt.s32.f32 %v1905_v56  ;;  %v2072_v15 = vcvt.s32.f32 %v2946_v18  ;;  %v2073_v10 = vcvt.s32.f32 %v2947_v27 }
 0x21e   : > { %v1946_v21 = vadd.f32 0.5, %v1918_v61  ;;  %v1947_v39 = vadd.f32 0.5, %v1919_v60  ;;  %v2086_v32 = vadd.f32 0.5, %v2058_v20  ;;  %v2087_v36 = vadd.f32 0.5, %v2059_v7  ;;  %v3169_v7 = vld [vmem:[%s3440_s15 + $0x10] sm:$0xff] }
 0x21f   : > { %v1960_v29 = vadd.f32 0.5, %v1932_v2  ;;  %v1961_v50 = vadd.f32 0.5, %v1933_v33  ;;  %v2100_v37 = vadd.f32 0.5, %v2072_v15  ;;  %v2101_v12 = vadd.f32 0.5, %v2073_v10  ;;  %v3170_v33 = vld [vmem:[%s3440_s15 + $0x18] sm:$0xff] }
 0x220   : > { %v1974_v58 = vmul.f32 1.5258789e-05, %v1946_v21  ;;  %v1975_v3 = vmul.f32 1.5258789e-05, %v1947_v39  ;;  %v2114_v11 = vmul.f32 1.5258789e-05, %v2086_v32  ;;  %v2115_v56 = vmul.f32 1.5258789e-05, %v2087_v36  ;;  %v3171_v39 = vld [vmem:[%s3440_s15 + $0x80] sm:$0xff] }
 0x221   : > { %v2226_v18 = vpop.permute.xlu1 %2225  ;;  %v1988_v25 = vmul.f32 1.5258789e-05, %v1960_v29  ;;  %v1989_v27 = vmul.f32 1.5258789e-05, %v1961_v50  ;;  %v2128_v61 = vmul.f32 1.5258789e-05, %v2100_v37  ;;  %v2129_v60 = vmul.f32 1.5258789e-05, %v2101_v12  ;;  %v2221_v20 = vpop.permute.xlu0 %2220  ;;  %v3172_v29 = vld [vmem:[%s3440_s15] sm:$0xff]  ;;  %v3173_v50 = vld [vmem:[%s3440_s15 + $0x8] sm:$0xff] }
 0x222   : > { %v4894_v2 = vmul.f32 %v3169_v7, %v2226_v18  ;;  %v4897_v15 = vmul.f32 %v3170_v33, %v2226_v18  ;;  %v4900_v10 = vmul.f32 %v3171_v39, %v2226_v18  ;;  %v5392_v21 = vmul.u32 73244475, %v4874_v0  ;;  %v3174_v12 = vld [vmem:[%s3440_s15 + $0x70] sm:$0xff]  ;;  %v3175_v7 = vld [vmem:[%s3440_s15 + $0x88] sm:$0xff] }
 0x223   : > { %v4905_v36 = vmul.f32 %v3172_v29, %v2221_v20  ;;  %v4908_v37 = vmul.f32 %v3173_v50, %v2221_v20  ;;  %v4911_v30 = vmul.f32 %v3174_v12, %v2221_v20  ;;  %v4914_v35 = vmul.f32 %v3175_v7, %v2226_v18 }
 0x224   : > { %v2879_v32 = vshrl.u32 %v5392_v21, 16  ;;  %v2142_v33 = vadd.f32 %v2114_v11, %v1974_v58  ;;  %v2143_v13 = vadd.f32 %v2115_v56, %v1975_v3  ;;  %v2156_v39 = vadd.f32 %v2128_v61, %v1988_v25  ;;  %v3176_v21 = vld [vmem:[%s3440_s15 + $0x78] sm:$0xff] }
 0x225   : > { %v2157_v49 = vadd.f32 %v2129_v60, %v1989_v27  ;;  %v4917_v48 = vmul.f32 %v3176_v21, %v2221_v20  ;;  %v1682_v29 = vmul.u32 73244475, %v4882_v26  ;;  %v1683_v50 = vmul.u32 73244475, %v4885_v22  ;;  %v2231_v18 = vpop.permute.xlu1 %2230  ;;  %v2236_v7 = vpop.permute.xlu0 %2235  ;;  %v3177_v26 = vld [vmem:[%s3440_s15 + $0x20] sm:$0xff]  ;;  %v3178_v22 = vld [vmem:[%s3440_s15 + $0x28] sm:$0xff] }
 0x226   : > { %v5393_v12 = vmul.u32 73244475, %v4872_v8  ;;  %v2960_v58 = vadd.f32 -1.0, %v2142_v33  ;;  %v2961_v3 = vadd.f32 -1.0, %v2143_v13  ;;  %v2974_v11 = vadd.f32 -1.0, %v2156_v39  ;;  %v3179_v8 = vld [vmem:[%s3440_s15 + $0x90] sm:$0xff] }
 0x227   : > { %v5394_v56 = vmul.u32 73244475, %v4874_v0  ;;  %v4928_v27 = vmul.f32 %v3177_v26, %v2231_v18  ;;  %v4931_v61 = vmul.f32 %v3178_v22, %v2231_v18  ;;  %v2975_v60 = vadd.f32 -1.0, %v2157_v49  ;;  %v3180_v20 = vld [vmem:[%s3440_s15 + $0x98] sm:$0xff]  ;;  %v3181_v13 = vld [vmem:[%s3440_s15 + $0x30] sm:$0xff]  ;;  %v3183_v21 = vld [vmem:[%s3440_s15 + $0xa0] sm:$0xff] }
 0x228   : > { %v1752_v16 = vxor.u32 %v2878_v57, %v5393_v12  ;;  %v4934_v57 = vmul.f32 %v3179_v8, %v2231_v18  ;;  %v4937_v33 = vmul.f32 %v3180_v20, %v2231_v18  ;;  %v4940_v39 = vmul.f32 %v3181_v13, %v2236_v7  ;;  %v3182_v0 = vld [vmem:[%s3440_s15 + $0x38] sm:$0xff] }
 0x229   : > { %v4925_v25 = vxor.u32 %v2879_v32, %v5394_v56  ;;  %v4943_v32 = vmul.f32 %v3182_v0, %v2236_v7  ;;  %v4946_v12 = vmul.f32 %v3183_v21, %v2236_v7  ;;  %v3184_v56 = vld [vmem:[%s3440_s15 + $0xa8] sm:$0xff]  ;;  %v4951_v22 = vmul.f32 2.4494898, %v2960_v58  ;;  %v2241_v20 = vpop.permute.xlu1 %2240  ;;  %v3185_v21 = vld [vmem:[%s3440_s15 + $0x40] sm:$0xff]  ;;  %v3187_v58 = vld [vmem:[%s3440_s15 + $0xb0] sm:$0xff] }
 0x22a   : > { %5395 = vst [vmem:[#allocation38_spill] sm:$0xff] %v4940_v39  ;;  %v4949_v26 = vmul.f32 %v3184_v56, %v2236_v7  ;;  %v4953_v49 = vmul.f32 2.4494898, %v2961_v3  ;;  %v5401_v18 = vmul.u32 256, %v4857_v38  ;;  %v4958_v13 = vmul.f32 2.4494898, %v2974_v11 }
 0x22b   : > { %5396 = vst [vmem:[#allocation39_spill] sm:$0xff] %v4943_v32  ;;  %5397 = vst [vmem:[#allocation40_spill] sm:$0xff] %v4946_v12  ;;  %v2892_v0 = vshrl.u32 %v1682_v29, 16  ;;  %v2893_v32 = vshrl.u32 %v1683_v50, 16  ;;  %v1780_v39 = vmul.u32 73244475, %v1752_v16  ;;  %v4961_v12 = vmul.f32 %v3185_v21, %v2241_v20 }
 0x22c   : > { %5398 = vst [vmem:[#allocation41_spill] sm:$0xff] %v4949_v26  ;;  %5399 = vst [vmem:[#allocation42_spill] sm:$0xff] %v4951_v22  ;;  %v1528_v8 = vadd.s32 %v5401_v18, %v5371_v40  ;;  %v3186_v7 = vld [vmem:[%s3440_s15 + $0x48] sm:$0xff]  ;;  %v4967_v3 = vmul.f32 %v3187_v58, %v2241_v20  ;;  %v1781_v11 = vmul.u32 73244475, %v4925_v25  ;;  %v3188_v16 = vld [vmem:[%s3440_s15 + $0xb8] sm:$0xff] }
 0x22d   : > { %5400 = vst [vmem:[#allocation43_spill] sm:$0xff] %v4953_v49  ;;  %5402 = vst [vmem:[#allocation44_spill] sm:$0xff] %v4958_v13  ;;  %v4964_v56 = vmul.f32 %v3186_v7, %v2241_v20  ;;  %v4969_v49 = vmul.f32 2.4494898, %v2975_v60  ;;  %v1766_v18 = vxor.u32 %v2892_v0, %v1682_v29  ;;  %v1767_v22 = vxor.u32 %v2893_v32, %v1683_v50  ;;  %v2251_v29 = vpop.permute.xlu1 %2250 }
 0x22e   : > { %5403 = vst [vmem:[#allocation45_spill] sm:$0xff] %v4961_v12  ;;  %5405 = vst [vmem:[#allocation47_spill] sm:$0xff] %v4967_v3  ;;  %v2906_v13 = vshrl.u32 %v1780_v39, 16  ;;  %v4973_v26 = vmul.f32 %v3188_v16, %v2241_v20  ;;  %v1515_v21 = vmul.u32 256, %v4864_v59  ;;  %v5408_v7 = vmul.u32 256, %v4857_v38  ;;  %v3189_v16 = vld [vmem:[%s3440_s15 + $0x60] sm:$0xff] }
 0x22f   : > { %5404 = vst [vmem:[#allocation46_spill] sm:$0xff] %v4964_v56  ;;  %5406 = vst [vmem:[#allocation48_spill] sm:$0xff] %v4969_v49  ;;  %v4980_v60 = vadd.s32 %v5381_v19, %v1528_v8  ;;  %v1794_v50 = vmul.u32 73244475, %v1766_v18  ;;  %v1795_v25 = vmul.u32 73244475, %v1767_v22  ;;  %v2246_v20 = vpop.permute.xlu0 %2245  ;;  %v4985_v59 = vmul.f32 %v3189_v16, %v2251_v29 }
 0x230   : > { %5407 = vst [vmem:[#allocation49_spill] sm:$0xff] %v4973_v26  ;;  %v1529_v58 = vadd.s32 %v5408_v7, %v5372_v4  ;;  %v2907_v32 = vshrl.u32 %v1781_v11, 16  ;;  %v4982_v0 = vxor.u32 %v2906_v13, %v1780_v39  ;;  %v3190_v26 = vld [vmem:[%s3440_s15 + $0x68] sm:$0xff]  ;;  %v3191_v7 = vld [vmem:[%s3440_s15 + $0xd0] sm:$0xff]  ;;  %v3192_v8 = vld [vmem:[%s3440_s15 + $0xd8] sm:$0xff] }
 0x231   : > { %5409 = vst [vmem:[#allocation50_spill] sm:$0xff] %v4980_v60  ;;  %5410 = vst [vmem:[#allocation51_spill] sm:$0xff] %v4985_v59  ;;  %v4988_v38 = vmul.f32 %v3190_v26, %v2251_v29  ;;  %v4991_v3 = vmul.f32 %v3191_v7, %v2251_v29  ;;  %v4994_v60 = vmul.f32 %v3192_v8, %v2251_v29  ;;  %v3193_v18 = vld [vmem:[%s3440_s15 + $0x50] sm:$0xff]  ;;  %v3194_v56 = vld [vmem:[%s3440_s15 + $0x58] sm:$0xff]  ;;  %v2920_v26 = vshrl.u32 %v1794_v50, 16 }
 0x232   : > { %v4997_v22 = vmul.f32 %v3193_v18, %v2246_v20  ;;  %v5000_v39 = vmul.f32 %v3194_v56, %v2246_v20  ;;  %v3195_v13 = vld [vmem:[%s3440_s15 + $0xc0] sm:$0xff]  ;;  %v3196_v16 = vld [vmem:[%s3440_s15 + $0xc8] sm:$0xff]  ;;  %v5008_v49 = vxor.u32 %v2907_v32, %v1781_v11  ;;  %v1892_v7 = vand.u32 65535, %v4982_v0  ;;  %s5070_s15 = scalar_lea.vmem [#allocation7], %s3019_s13  ;;  %s2989_s13 = smul.u32 3584, %s3358_s0 }
 0x233   : > { %5411 = vst [vmem:[#allocation52_spill] sm:$0xff] %v4988_v38  ;;  %5412 = vst [vmem:[#allocation53_spill] sm:$0xff] %v4991_v3  ;;  %v5003_v12 = vmul.f32 %v3195_v13, %v2246_v20  ;;  %v5006_v59 = vmul.f32 %v3196_v16, %v2246_v20  ;;  %v2921_v38 = vshrl.u32 %v1795_v25, 16  ;;  %v5013_v8 = vadd.s32 %v1515_v21, %v5371_v40  ;;  %v2284_v13 = vpop.permute.xlu0 %2283  ;;  %v2289_v20 = vpop.permute.xlu1 %2288  ;;  %s2688_s9 = sshll.u32 %s5070_s15, 4  ;;  %s5244_s9 = int_to_ptr.vmem [resolvable:$true] %s2688_s9 }
 0x234   : > { %5413 = vst [vmem:[#allocation54_spill] sm:$0xff] %v4994_v60  ;;  %v5016_v56 = vadd.s32 %v1515_v21, %v5372_v4  ;;  %v5019_v18 = vadd.s32 %v5381_v19, %v1529_v58  ;;  %v5021_v16 = vxor.u32 %v2920_v26, %v1794_v50  ;;  %v1893_v11 = vand.u32 65535, %v5008_v49  ;;  %s5242_s0 = scalar_lea.hbm %s5295_s4, %s2989_s13  ;;  %s3227_s16 = scalar_lea.vmem %s5244_s9, 3584 }
 0x235   : > { %v5023_v60 = vxor.u32 %v2921_v38, %v1795_v25  ;;  %v5026_v32 = vcvt.s32.f32 %v1892_v7  ;;  %v2316_v29 = vmul.f32 %v2284_v13, %v4657_v63  ;;  %v2317_v40 = vmul.f32 %v2284_v13, %v4663_v31  ;;  %p3228_p10 = scmp.ne.s32.totalorder %s5244_s9, %s3227_s16  ;;  %p3234_p9 = scmp.lt.s32.totalorder %s5244_s9, %s3232_s23 }
 0x236   : > { %v2330_v4 = vmul.f32 %v2284_v13, %v4665_v42  ;;  %v2331_v21 = vmul.f32 %v2284_v13, %v4671_v14  ;;  %v2318_v58 = vmul.f32 %v2289_v20, %v4784_v43  ;;  %v2319_v3 = vmul.f32 %v2289_v20, %v4786_v28  ;;  %p3235_p13 = scmp.lt.s32.totalorder %s3233_s24, %s3227_s16 }
 0x237   : > { %v2332_v50 = vmul.f32 %v2289_v20, %v4788_v6  ;;  %v2333_v25 = vmul.f32 %v2289_v20, %v4790_v17  ;;  %v2344_v38 = vadd.f32 %v2316_v29, %v4905_v36  ;;  %v2345_v26 = vadd.f32 %v2317_v40, %v4908_v37  ;;  %p3229_p12 = pnand %p3228_p10, %p5460_p11 }
 0x238   : > { %v2358_v63 = vadd.f32 %v2330_v4, %v4911_v30  ;;  %v2359_v31 = vadd.f32 %v2331_v21, %v4917_v48  ;;  %v2346_v42 = vadd.f32 %v2318_v58, %v4894_v2  ;;  %v2347_v14 = vadd.f32 %v2319_v3, %v4897_v15  ;;  %p3236_p1 = por %p3235_p13, %p3234_p9 }
 0x239   : > { %v2360_v43 = vadd.f32 %v2332_v50, %v4900_v10  ;;  %v2361_v28 = vadd.f32 %v2333_v25, %v4914_v35  ;;  %v2435_v6 = vadd.f32 %v4694_v34, %v2344_v38  ;;  %v2436_v17 = vadd.f32 %v4698_v9, %v2345_v26  ;;  %p3230_p8 = pneg %p3229_p12 }
 0x23a   : > { %v2449_v36 = vadd.f32 %v4778_v54, %v2358_v63  ;;  %v2450_v37 = vadd.f32 %v4782_v45, %v2359_v31  ;;  %v2437_v30 = vadd.f32 %v4675_v62, %v2346_v42  ;;  %v2438_v48 = vadd.f32 %v4678_v23, %v2347_v14  ;;  %v2294_v63 = vpop.permute.xlu0 %2293 }
 0x23b   : > { %v2451_v2 = vadd.f32 %v4687_v46, %v2360_v43  ;;  %v2452_v15 = vadd.f32 %v4690_v52, %v2361_v28  ;;  %v2498_v10 = vadd.f32 %v4825_v24, %v2435_v6  ;;  %v2499_v35 = vadd.f32 %v4825_v24, %v2436_v17  ;;  %v2299_v43 = vpop.permute.xlu1 %2298  ;;  %p3237_p3 = pnand %p3236_p1, %p3230_p8 }
 0x23c   : > { %v2512_v34 = vadd.f32 %v4825_v24, %v2449_v36  ;;  %v2513_v9 = vadd.f32 %v4825_v24, %v2450_v37  ;;  %v2500_v54 = vadd.f32 %v4839_v47, %v2437_v30  ;;  %v2501_v45 = vadd.f32 %v4839_v47, %v2438_v48 }
 0x23d   : > { %v2514_v62 = vadd.f32 %v4839_v47, %v2451_v2  ;;  %v2515_v23 = vadd.f32 %v4839_v47, %v2452_v15  ;;  %v2526_v3 = vmax.f32 %v2498_v10, 0.0  ;;  %v2527_v46 = vmax.f32 %v2499_v35, 0.0  ;;  %v5414_v2 = vld [vmem:[#allocation22_spill] sm:$0xff]  ;;  %v5415_v10 = vld [vmem:[#allocation23_spill] sm:$0xff] }
 0x23e   : > { %v2540_v7 = vmax.f32 %v2512_v34, 0.0  ;;  %v2541_v52 = vmax.f32 %v2513_v9, 0.0  ;;  %v2528_v29 = vmax.f32 %v2500_v54, 0.0  ;;  %v2529_v13 = vmax.f32 %v2501_v45, 0.0  ;;  %v5416_v34 = vld [vmem:[#allocation14_spill] sm:$0xff] }
 0x23f   : > { %v2542_v20 = vmax.f32 %v2514_v62, 0.0  ;;  %v2543_v40 = vmax.f32 %v2515_v23, 0.0  ;;  %v2554_v4 = vmin.f32 %v2526_v3, 1.0  ;;  %v2555_v21 = vmin.f32 %v2527_v46, 1.0  ;;  %v5417_v54 = vld [vmem:[#allocation38_spill] sm:$0xff]  ;;  %v5418_v62 = vld [vmem:[#allocation39_spill] sm:$0xff] }
 0x240   : > { %v2568_v58 = vmin.f32 %v2540_v7, 1.0  ;;  %v2569_v24 = vmin.f32 %v2541_v52, 1.0  ;;  %v2556_v50 = vmin.f32 %v2528_v29, 1.0  ;;  %v2557_v25 = vmin.f32 %v2529_v13, 1.0  ;;  %v5419_v3 = vld [vmem:[#allocation40_spill] sm:$0xff]  ;;  %v5420_v46 = vld [vmem:[#allocation41_spill] sm:$0xff]  ;;  %v2304_v52 = vpop.permute.xlu0 %2303 }
 0x241   : > { %v2570_v38 = vmin.f32 %v2542_v20, 1.0  ;;  %v2571_v26 = vmin.f32 %v2543_v40, 1.0  ;;  %v2617_v47 = vmul.f32 %v4889_v1, %v2554_v4  ;;  %v2618_v31 = vmul.f32 %v4889_v1, %v2555_v21  ;;  %v5421_v29 = vld [vmem:[#allocation29_spill] sm:$0xff]  ;;  %v5422_v20 = vld [vmem:[#allocation30_spill] sm:$0xff] }
 0x242   : > { %v2631_v42 = vmul.f32 %v4889_v1, %v2568_v58  ;;  %v2632_v14 = vmul.f32 %v4889_v1, %v2569_v24  ;;  %v2619_v28 = vmul.f32 %v4891_v41, %v2556_v50  ;;  %v2620_v6 = vmul.f32 %v4891_v41, %v2557_v25  ;;  %v5425_v4 = vld [vmem:[#allocation25_spill] sm:$0xff]  ;;  %v5426_v58 = vld [vmem:[#allocation26_spill] sm:$0xff]  ;;  %v5427_v50 = vld [vmem:[#allocation27_spill] sm:$0xff] }
 0x243   : > { %v2633_v17 = vmul.f32 %v4891_v41, %v2570_v38  ;;  %v2634_v36 = vmul.f32 %v4891_v41, %v2571_v26  ;;  %2645 = vst [vmem:[%s5070_s15] sm:$0xff] %v2617_v47  ;;  %2646 = vst [vmem:[%s5070_s15 + $0x8] sm:$0xff] %v2618_v31  ;;  %v2320_v1 = vmul.f32 %v2294_v63, %v4811_v53  ;;  %v5428_v38 = vld [vmem:[#allocation28_spill] sm:$0xff]  ;;  %v5430_v31 = vld [vmem:[#allocation43_spill] sm:$0xff] }
 0x244   : > { %2659 = vst [vmem:[%s5070_s15 + $0x70] sm:$0xff] %v2631_v42  ;;  %2660 = vst [vmem:[%s5070_s15 + $0x78] sm:$0xff] %v2632_v14  ;;  %v2321_v37 = vmul.f32 %v2294_v63, %v4813_v55  ;;  %v2334_v41 = vmul.f32 %v2294_v63, %v4815_v51  ;;  %v2335_v30 = vmul.f32 %v2294_v63, %v4833_v5  ;;  %v5429_v63 = vld [vmem:[#allocation42_spill] sm:$0xff]  ;;  %v5431_v14 = vld [vmem:[#allocation44_spill] sm:$0xff] }
 0x245   : > { %2647 = vst [vmem:[%s5070_s15 + $0x10] sm:$0xff] %v2619_v28  ;;  %2648 = vst [vmem:[%s5070_s15 + $0x18] sm:$0xff] %v2620_v6  ;;  %v2322_v48 = vmul.f32 %v2299_v43, %v4837_v44  ;;  %v2323_v15 = vmul.f32 %v2299_v43, %v5414_v2  ;;  %v2336_v35 = vmul.f32 %v2299_v43, %v5415_v10  ;;  %v5432_v28 = vld [vmem:[#allocation48_spill] sm:$0xff] }
 0x246   : > { %2661 = vst [vmem:[%s5070_s15 + $0x80] sm:$0xff] %v2633_v17  ;;  %2662 = vst [vmem:[%s5070_s15 + $0x88] sm:$0xff] %v2634_v36  ;;  %v2337_v9 = vmul.f32 %v2299_v43, %v5416_v34  ;;  %v2348_v53 = vadd.f32 %v2320_v1, %v4928_v27  ;;  %v2349_v55 = vadd.f32 %v2321_v37, %v4931_v61  ;;  %v5423_v61 = vld [vmem:[#allocation31_spill] sm:$0xff]  ;;  %v1906_v17 = vand.u32 65535, %v5021_v16 }
 0x247   : > { %v2362_v51 = vadd.f32 %v2334_v41, %v4934_v57  ;;  %v2363_v5 = vadd.f32 %v2335_v30, %v4937_v33  ;;  %v2350_v45 = vadd.f32 %v2322_v48, %v5417_v54  ;;  %v2351_v23 = vadd.f32 %v2323_v15, %v5418_v62  ;;  %v5424_v57 = vld [vmem:[#allocation32_spill] sm:$0xff]  ;;  %v5433_v41 = vld [vmem:[#allocation45_spill] sm:$0xff]  ;;  %v5434_v48 = vld [vmem:[#allocation46_spill] sm:$0xff] }
 0x248   : > { %v2364_v44 = vadd.f32 %v2336_v35, %v5419_v3  ;;  %v2365_v7 = vadd.f32 %v2337_v9, %v5420_v46  ;;  %v5097_v13 = vadd.f32 %v5421_v29, %v2348_v53  ;;  %v5100_v27 = vadd.f32 %v5422_v20, %v2349_v55  ;;  %v5435_v15 = vld [vmem:[#allocation47_spill] sm:$0xff]  ;;  %v5436_v35 = vld [vmem:[#allocation49_spill] sm:$0xff] }
 0x249   : > { %v5103_v40 = vadd.f32 %v5423_v61, %v2362_v51  ;;  %v5106_v33 = vadd.f32 %v5424_v57, %v2363_v5  ;;  %v5109_v21 = vadd.f32 %v5425_v4, %v2350_v45  ;;  %v5112_v24 = vadd.f32 %v5426_v58, %v2351_v23  ;;  %v5437_v5 = vld [vmem:[#allocation10_spill] sm:$0xff]  ;;  %v5438_v45 = vld [vmem:[#allocation11_spill] sm:$0xff] }
 0x24a   : > { %v5115_v25 = vadd.f32 %v5427_v50, %v2364_v44  ;;  %v5118_v26 = vadd.f32 %v5428_v38, %v2365_v7  ;;  %v2324_v47 = vmul.f32 %v2304_v52, %v5429_v63  ;;  %v2325_v42 = vmul.f32 %v2304_v52, %v5430_v31  ;;  %v5440_v23 = vld [vmem:[#allocation18_spill] sm:$0xff] }
 0x24b   : > { %v2338_v43 = vmul.f32 %v2304_v52, %v5431_v14  ;;  %v2339_v6 = vmul.f32 %v2304_v52, %v5432_v28  ;;  %v1907_v36 = vand.u32 65535, %v5023_v60  ;;  %v1921_v1 = vcvt.s32.f32 %v1893_v11  ;;  %v5439_v11 = vld [vmem:[#allocation16_spill] sm:$0xff] }
 0x24c   : > { %v1948_v37 = vadd.f32 0.5, %v5026_v32  ;;  %v2352_v30 = vadd.f32 %v2324_v47, %v5433_v41  ;;  %v2353_v2 = vadd.f32 %v2325_v42, %v5434_v48  ;;  %v1934_v9 = vcvt.s32.f32 %v1906_v17 }
 0x24d   : > { %v2366_v10 = vadd.f32 %v2338_v43, %v5435_v15  ;;  %v2367_v34 = vadd.f32 %v2339_v6, %v5436_v35  ;;  %v1935_v53 = vcvt.s32.f32 %v1907_v36  ;;  %v1949_v55 = vadd.f32 0.5, %v1921_v1  ;;  %v5443_v35 = vld [vmem:[#allocation24_spill] sm:$0xff] }
 0x24e   : > { %v1976_v51 = vmul.f32 1.5258789e-05, %v1948_v37  ;;  %v5134_v54 = vadd.f32 %v5437_v5, %v2352_v30  ;;  %v5137_v62 = vadd.f32 %v5438_v45, %v2353_v2  ;;  %v1962_v44 = vadd.f32 0.5, %v1934_v9 }
 0x24f   : > { %v5140_v32 = vadd.f32 %v5439_v11, %v2366_v10  ;;  %v5143_v3 = vadd.f32 %v5440_v23, %v2367_v34  ;;  %v1963_v46 = vadd.f32 0.5, %v1935_v53  ;;  %v1977_v7 = vmul.f32 1.5258789e-05, %v1949_v55  ;;  %v2309_v11 = vpop.permute.xlu1 %2308 }
 0x250   : > { %v2935_v52 = vshrl.u32 %v5008_v49, 16  ;;  %v2948_v29 = vshrl.u32 %v5021_v16, 16  ;;  %v2949_v20 = vshrl.u32 %v5023_v60, 16  ;;  %v5441_v61 = vshrl.u32 %v4982_v0, 16  ;;  %v5442_v49 = vld [vmem:[#allocation50_spill] sm:$0xff] }
 0x251   : > { %v1572_v4 = vadd.s32 %v5381_v19, %v5013_v8  ;;  %v1990_v58 = vmul.f32 1.5258789e-05, %v1962_v44  ;;  %v1991_v50 = vmul.f32 1.5258789e-05, %v1963_v46  ;;  %v1573_v63 = vadd.s32 %v5381_v19, %v5016_v56 }
 0x252   : > { %v2060_v57 = vcvt.s32.f32 %v5441_v61  ;;  %v2061_v38 = vcvt.s32.f32 %v2935_v52  ;;  %v2074_v47 = vcvt.s32.f32 %v2948_v29  ;;  %v2075_v31 = vcvt.s32.f32 %v2949_v20 }
 0x253   : > { %v2852_v14 = vshrl.u32 %v5442_v49, 16  ;;  %v2853_v60 = vshrl.u32 %v5019_v18, 16  ;;  %v2866_v43 = vshrl.u32 %v1572_v4, 16  ;;  %v2867_v0 = vshrl.u32 %v1573_v63, 16 }
 0x254   : > { %v2088_v42 = vadd.f32 0.5, %v2060_v57  ;;  %v2089_v16 = vadd.f32 0.5, %v2061_v38  ;;  %v2102_v28 = vadd.f32 0.5, %v2074_v47  ;;  %v2103_v6 = vadd.f32 0.5, %v2075_v31 }
 0x255   : > { %v1642_v8 = vxor.u32 %v2852_v14, %v5442_v49  ;;  %v1643_v1 = vxor.u32 %v2853_v60, %v5019_v18  ;;  %v1656_v37 = vxor.u32 %v2866_v43, %v1572_v4  ;;  %v1657_v19 = vxor.u32 %v2867_v0, %v1573_v63 }
 0x256   : > { %v2116_v17 = vmul.f32 1.5258789e-05, %v2088_v42  ;;  %v2117_v36 = vmul.f32 1.5258789e-05, %v2089_v16  ;;  %v2130_v56 = vmul.f32 1.5258789e-05, %v2102_v28  ;;  %v2131_v41 = vmul.f32 1.5258789e-05, %v2103_v6 }
 0x257   : > { %v1670_v48 = vmul.u32 73244475, %v1642_v8  ;;  %v1671_v15 = vmul.u32 73244475, %v1643_v1  ;;  %v5160_v34 = vadd.f32 %v5443_v35, %v5097_v13  ;;  %v2503_v31 = vadd.f32 %v5443_v35, %v5100_v27 }
 0x258   : > { %v2144_v30 = vadd.f32 %v2116_v17, %v1976_v51  ;;  %v2145_v2 = vadd.f32 %v2117_v36, %v1977_v7  ;;  %v1684_v10 = vmul.u32 73244475, %v1656_v37  ;;  %v2158_v9 = vadd.f32 %v2130_v56, %v1990_v58 }
 0x259   : > { %v2159_v53 = vadd.f32 %v2131_v41, %v1991_v50  ;;  %v1685_v5 = vmul.u32 73244475, %v1657_v19  ;;  %v2880_v18 = vshrl.u32 %v1670_v48, 16  ;;  %v2881_v23 = vshrl.u32 %v1671_v15, 16 }
 0x25a   : > { %v2962_v55 = vadd.f32 -1.0, %v2144_v30  ;;  %v2963_v45 = vadd.f32 -1.0, %v2145_v2  ;;  %v2894_v44 = vshrl.u32 %v1684_v10, 16  ;;  %v2976_v46 = vadd.f32 -1.0, %v2158_v9 }
 0x25b   : > { %v2977_v52 = vadd.f32 -1.0, %v2159_v53  ;;  %v2895_v29 = vshrl.u32 %v1685_v5, 16  ;;  %v1754_v20 = vxor.u32 %v2880_v18, %v1670_v48  ;;  %v1755_v61 = vxor.u32 %v2881_v23, %v1671_v15 }
 0x25c   : > { %v2200_v51 = vmul.f32 2.4494898, %v2962_v55  ;;  %v2201_v7 = vmul.f32 2.4494898, %v2963_v45  ;;  %v1768_v57 = vxor.u32 %v2894_v44, %v1684_v10  ;;  %v2214_v4 = vmul.f32 2.4494898, %v2976_v46 }
 0x25d   : > { %v2215_v13 = vmul.f32 2.4494898, %v2977_v52  ;;  %v1769_v58 = vxor.u32 %v2895_v29, %v1685_v5  ;;  %v1782_v63 = vmul.u32 73244475, %v1754_v20  ;;  %v1783_v47 = vmul.u32 73244475, %v1755_v61 }
 0x25e   : > { %v2326_v38 = vmul.f32 %v2309_v11, %v2200_v51  ;;  %v2327_v50 = vmul.f32 %v2309_v11, %v2201_v7  ;;  %v2340_v42 = vmul.f32 %v2309_v11, %v2214_v4  ;;  %v1796_v16 = vmul.u32 73244475, %v1768_v57 }
 0x25f   : > { %v2341_v49 = vmul.f32 %v2309_v11, %v2215_v13  ;;  %v1797_v43 = vmul.u32 73244475, %v1769_v58  ;;  %v2908_v0 = vshrl.u32 %v1782_v63, 16  ;;  %v2909_v28 = vshrl.u32 %v1783_v47, 16 }
 0x260   : > { %v5165_v14 = vadd.f32 %v2326_v38, %v4997_v22  ;;  %v5168_v60 = vadd.f32 %v2327_v50, %v5000_v39  ;;  %v5171_v6 = vadd.f32 %v2340_v42, %v5003_v12  ;;  %v2922_v8 = vshrl.u32 %v1796_v16, 16  ;;  %v2595_v50 = vpop.permute.xlu1 %2594 }
 0x261   : > { %v5174_v17 = vadd.f32 %v2341_v49, %v5006_v59  ;;  %v2516_v27 = vadd.f32 %v5443_v35, %v5103_v40  ;;  %v2923_v36 = vshrl.u32 %v1797_v43, 16  ;;  %v1866_v22 = vxor.u32 %v2908_v0, %v1782_v63 }
 0x262   : > { %v1867_v1 = vxor.u32 %v2909_v28, %v1783_v47  ;;  %v2517_v39 = vadd.f32 %v5443_v35, %v5106_v33  ;;  %v1880_v37 = vxor.u32 %v2922_v8, %v1796_v16  ;;  %v2530_v19 = vmax.f32 %v5160_v34, 0.0 }
 0x263   : > { %v2531_v56 = vmax.f32 %v2503_v31, 0.0  ;;  %v2544_v41 = vmax.f32 %v2516_v27, 0.0  ;;  %v1881_v12 = vxor.u32 %v2923_v36, %v1797_v43  ;;  %v1894_v30 = vand.u32 65535, %v1866_v22 }
 0x264   : > { %v1895_v48 = vand.u32 65535, %v1867_v1  ;;  %v2936_v59 = vshrl.u32 %v1866_v22, 16  ;;  %v1908_v2 = vand.u32 65535, %v1880_v37  ;;  %v2937_v15 = vshrl.u32 %v1867_v1, 16 }
 0x265   : > { %v2950_v10 = vshrl.u32 %v1880_v37, 16  ;;  %v2545_v9 = vmax.f32 %v2517_v39, 0.0  ;;  %v1909_v40 = vand.u32 65535, %v1881_v12  ;;  %v1922_v53 = vcvt.s32.f32 %v1894_v30  ;;  %v2314_v37 = vpop.permute.xlu0 %2313 }
 0x266   : > { %v1923_v55 = vcvt.s32.f32 %v1895_v48  ;;  %v2951_v5 = vshrl.u32 %v1881_v12, 16  ;;  %v1936_v45 = vcvt.s32.f32 %v1908_v2  ;;  %v2062_v11 = vcvt.s32.f32 %v2936_v59 }
 0x267   : > { %v2063_v33 = vcvt.s32.f32 %v2937_v15  ;;  %v2076_v35 = vcvt.s32.f32 %v2950_v10  ;;  %v1937_v18 = vcvt.s32.f32 %v1909_v40  ;;  %v1950_v34 = vadd.f32 0.5, %v1922_v53 }
 0x268   : > { %v1951_v23 = vadd.f32 0.5, %v1923_v55  ;;  %v2077_v44 = vcvt.s32.f32 %v2951_v5  ;;  %v1964_v46 = vadd.f32 0.5, %v1936_v45  ;;  %v2090_v52 = vadd.f32 0.5, %v2062_v11 }
 0x269   : > { %v2091_v51 = vadd.f32 0.5, %v2063_v33  ;;  %v2104_v29 = vadd.f32 0.5, %v2076_v35  ;;  %v1965_v7 = vadd.f32 0.5, %v1937_v18  ;;  %v1978_v20 = vmul.f32 1.5258789e-05, %v1950_v34  ;;  %v5445_v34 = vld [vmem:[#allocation51_spill] sm:$0xff] }
 0x26a   : > { %v1979_v61 = vmul.f32 1.5258789e-05, %v1951_v23  ;;  %v2105_v57 = vadd.f32 0.5, %v2077_v44  ;;  %v1992_v4 = vmul.f32 1.5258789e-05, %v1964_v46  ;;  %v2118_v13 = vmul.f32 1.5258789e-05, %v2090_v52  ;;  %v5447_v46 = vld [vmem:[#allocation53_spill] sm:$0xff] }
 0x26b   : > { %v2119_v38 = vmul.f32 1.5258789e-05, %v2091_v51  ;;  %v2132_v58 = vmul.f32 1.5258789e-05, %v2104_v29  ;;  %v1993_v63 = vmul.f32 1.5258789e-05, %v1965_v7  ;;  %v2558_v31 = vmin.f32 %v2530_v19, 1.0  ;;  %v5448_v29 = vld [vmem:[#allocation54_spill] sm:$0xff] }
 0x26c   : > { %v2133_v47 = vmul.f32 1.5258789e-05, %v2105_v57  ;;  %v2559_v42 = vmin.f32 %v2531_v56, 1.0  ;;  %v2146_v49 = vadd.f32 %v2118_v13, %v1978_v20  ;;  %v2572_v0 = vmin.f32 %v2544_v41, 1.0  ;;  %v5444_v56 = vld [vmem:[#allocation35_spill] sm:$0xff] }
 0x26d   : > { %v2147_v16 = vadd.f32 %v2119_v38, %v1979_v61  ;;  %v2160_v43 = vadd.f32 %v2132_v58, %v1992_v4  ;;  %v2573_v8 = vmin.f32 %v2545_v9, 1.0  ;;  %v2621_v27 = vmul.f32 %v2595_v50, %v2558_v31  ;;  %v5449_v13 = vld [vmem:[#allocation15_spill] sm:$0xff]  ;;  %v5450_v31 = vld [vmem:[#allocation17_spill] sm:$0xff] }
 0x26e   : > { %v2161_v28 = vadd.f32 %v2133_v47, %v1993_v63  ;;  %v2622_v36 = vmul.f32 %v2595_v50, %v2559_v42  ;;  %v2964_v22 = vadd.f32 -1.0, %v2146_v49  ;;  %v2635_v12 = vmul.f32 %v2595_v50, %v2572_v0  ;;  %v5451_v49 = vld [vmem:[#allocation21_spill] sm:$0xff] }
 0x26f   : > { %v2965_v1 = vadd.f32 -1.0, %v2147_v16  ;;  %v2978_v39 = vadd.f32 -1.0, %v2160_v43  ;;  %v2636_v19 = vmul.f32 %v2595_v50, %v2573_v8  ;;  %2649 = vst [vmem:[%s5070_s15 + $0x20] sm:$0xff] %v2621_v27  ;;  %v2506_v48 = vadd.f32 %v5444_v56, %v5134_v54 }
 0x270   : > { %v2979_v30 = vadd.f32 -1.0, %v2161_v28  ;;  %2650 = vst [vmem:[%s5070_s15 + $0x28] sm:$0xff] %v2622_v36  ;;  %v2507_v41 = vadd.f32 %v5444_v56, %v5137_v62  ;;  %v2202_v59 = vmul.f32 2.4494898, %v2964_v22  ;;  %2663 = vst [vmem:[%s5070_s15 + $0x90] sm:$0xff] %v2635_v12  ;;  %v2520_v10 = vadd.f32 %v5444_v56, %v5140_v32  ;;  %v5446_v32 = vld [vmem:[#allocation52_spill] sm:$0xff] }
 0x271   : > { %v2203_v2 = vmul.f32 2.4494898, %v2965_v1  ;;  %v2216_v15 = vmul.f32 2.4494898, %v2978_v39  ;;  %2664 = vst [vmem:[%s5070_s15 + $0x98] sm:$0xff] %v2636_v19  ;;  %v2521_v40 = vadd.f32 %v5444_v56, %v5143_v3  ;;  %v2534_v53 = vmax.f32 %v2506_v48, 0.0  ;;  %v2605_v3 = vpop.permute.xlu0 %2604 }
 0x272   : > { %v2217_v9 = vmul.f32 2.4494898, %v2979_v30  ;;  %v2535_v55 = vmax.f32 %v2507_v41, 0.0  ;;  %v2328_v5 = vmul.f32 %v2314_v37, %v2202_v59  ;;  %v2548_v11 = vmax.f32 %v2520_v10, 0.0  ;;  %v5452_v28 = vld [vmem:[#allocation12_spill] sm:$0xff]  ;;  %v5454_v22 = vld [vmem:[#allocation37_spill] sm:$0xff] }
 0x273   : > { %v2329_v45 = vmul.f32 %v2314_v37, %v2203_v2  ;;  %v2342_v54 = vmul.f32 %v2314_v37, %v2216_v15  ;;  %v2549_v62 = vmax.f32 %v2521_v40, 0.0  ;;  %v2562_v35 = vmin.f32 %v2534_v53, 1.0 }
 0x274   : > { %v2343_v33 = vmul.f32 %v2314_v37, %v2217_v9  ;;  %v2563_v18 = vmin.f32 %v2535_v55, 1.0  ;;  %v2356_v23 = vadd.f32 %v2328_v5, %v5445_v34  ;;  %v2576_v51 = vmin.f32 %v2548_v11, 1.0 }
 0x275   : > { %v2357_v44 = vadd.f32 %v2329_v45, %v5446_v32  ;;  %v2370_v52 = vadd.f32 %v2342_v54, %v5447_v46  ;;  %v2577_v20 = vmin.f32 %v2549_v62, 1.0  ;;  %v2625_v61 = vmul.f32 %v2605_v3, %v2562_v35  ;;  %v2615_v45 = vpop.permute.xlu0 %2614  ;;  %v5455_v54 = vld [vmem:[#allocation33_spill] sm:$0xff]  ;;  %v5457_v35 = vld [vmem:[#allocation19_spill] sm:$0xff] }
 0x276   : > { %v2371_v7 = vadd.f32 %v2343_v33, %v5448_v29  ;;  %v2626_v57 = vmul.f32 %v2605_v3, %v2563_v18  ;;  %v2639_v4 = vmul.f32 %v2605_v3, %v2576_v51  ;;  %v2504_v38 = vadd.f32 %v5449_v13, %v5109_v21  ;;  %v5456_v33 = vld [vmem:[#allocation34_spill] sm:$0xff]  ;;  %v5459_v51 = vld [vmem:[#allocation36_spill] sm:$0xff] }
 0x277   : > { %v2505_v58 = vadd.f32 %v5449_v13, %v5112_v24  ;;  %v2518_v50 = vadd.f32 %v5449_v13, %v5115_v25  ;;  %v2640_v63 = vmul.f32 %v2605_v3, %v2577_v20  ;;  %2653 = vst [vmem:[%s5070_s15 + $0x40] sm:$0xff] %v2625_v61  ;;  %v2519_v47 = vadd.f32 %v5449_v13, %v5118_v26  ;;  %v2600_v24 = vpop.permute.xlu1 %2599  ;;  %v5453_v25 = vld [vmem:[#allocation13_spill] sm:$0xff] }
 0x278   : > { %2654 = vst [vmem:[%s5070_s15 + $0x48] sm:$0xff] %v2626_v57  ;;  %v2447_v42 = vadd.f32 %v5450_v31, %v2356_v23  ;;  %v2448_v16 = vadd.f32 %v5451_v49, %v2357_v44  ;;  %2667 = vst [vmem:[%s5070_s15 + $0xb0] sm:$0xff] %v2639_v4  ;;  %v2532_v43 = vmax.f32 %v2504_v38, 0.0  ;;  %v2461_v8 = vadd.f32 %v5452_v28, %v2370_v52  ;;  %v5458_v44 = vld [vmem:[#allocation20_spill] sm:$0xff] }
 0x279   : > { %v2533_v0 = vmax.f32 %v2505_v58, 0.0  ;;  %v2546_v21 = vmax.f32 %v2518_v50, 0.0  ;;  %2668 = vst [vmem:[%s5070_s15 + $0xb8] sm:$0xff] %v2640_v63  ;;  %v2547_v27 = vmax.f32 %v2519_v47, 0.0  ;;  %v2462_v36 = vadd.f32 %v5453_v25, %v2371_v7 }
 0x27a   : > { %v2510_v1 = vadd.f32 %v5454_v22, %v2447_v42  ;;  %v2511_v39 = vadd.f32 %v5454_v22, %v2448_v16  ;;  %v2560_v26 = vmin.f32 %v2532_v43, 1.0  ;;  %v2524_v30 = vadd.f32 %v5454_v22, %v2461_v8 }
 0x27b   : > { %v2561_v37 = vmin.f32 %v2533_v0, 1.0  ;;  %v2574_v12 = vmin.f32 %v2546_v21, 1.0  ;;  %v2575_v19 = vmin.f32 %v2547_v27, 1.0  ;;  %v2525_v56 = vadd.f32 %v5454_v22, %v2462_v36 }
 0x27c   : > { %v2538_v48 = vmax.f32 %v2510_v1, 0.0  ;;  %v2539_v41 = vmax.f32 %v2511_v39, 0.0  ;;  %v2623_v59 = vmul.f32 %v2600_v24, %v2560_v26  ;;  %v2552_v10 = vmax.f32 %v2524_v30, 0.0 }
 0x27d   : > { %v2624_v2 = vmul.f32 %v2600_v24, %v2561_v37  ;;  %v2637_v15 = vmul.f32 %v2600_v24, %v2574_v12  ;;  %v2638_v9 = vmul.f32 %v2600_v24, %v2575_v19  ;;  %v2553_v40 = vmax.f32 %v2525_v56, 0.0 }
 0x27e   : > { %v2566_v53 = vmin.f32 %v2538_v48, 1.0  ;;  %v2567_v55 = vmin.f32 %v2539_v41, 1.0  ;;  %2651 = vst [vmem:[%s5070_s15 + $0x30] sm:$0xff] %v2623_v59  ;;  %v2580_v5 = vmin.f32 %v2552_v10, 1.0  ;;  %v2445_v11 = vadd.f32 %v5455_v54, %v5165_v14 }
 0x27f   : > { %2652 = vst [vmem:[%s5070_s15 + $0x38] sm:$0xff] %v2624_v2  ;;  %2665 = vst [vmem:[%s5070_s15 + $0xa0] sm:$0xff] %v2637_v15  ;;  %v2446_v62 = vadd.f32 %v5456_v33, %v5168_v60  ;;  %v2459_v18 = vadd.f32 %v5457_v35, %v5171_v6  ;;  %v2581_v34 = vmin.f32 %v2553_v40, 1.0  ;;  %v2460_v46 = vadd.f32 %v5458_v44, %v5174_v17  ;;  %v2610_v17 = vpop.permute.xlu1 %2609 }
 0x280   : > { %2666 = vst [vmem:[%s5070_s15 + $0xa8] sm:$0xff] %v2638_v9  ;;  %v2629_v23 = vmul.f32 %v2615_v45, %v2566_v53  ;;  %v2630_v32 = vmul.f32 %v2615_v45, %v2567_v55  ;;  %v2643_v52 = vmul.f32 %v2615_v45, %v2580_v5  ;;  %v2508_v14 = vadd.f32 %v5459_v51, %v2445_v11 }
 0x281   : > { %v2509_v3 = vadd.f32 %v5459_v51, %v2446_v62  ;;  %v2522_v60 = vadd.f32 %v5459_v51, %v2459_v18  ;;  %v2644_v29 = vmul.f32 %v2615_v45, %v2581_v34  ;;  %v2523_v6 = vadd.f32 %v5459_v51, %v2460_v46 }
 0x282   : > { %2657 = vst [vmem:[%s5070_s15 + $0x60] sm:$0xff] %v2629_v23  ;;  %2658 = vst [vmem:[%s5070_s15 + $0x68] sm:$0xff] %v2630_v32  ;;  %v2536_v7 = vmax.f32 %v2508_v14, 0.0 }
 0x283   : > { %2671 = vst [vmem:[%s5070_s15 + $0xd0] sm:$0xff] %v2643_v52  ;;  %v2537_v20 = vmax.f32 %v2509_v3, 0.0  ;;  %v2550_v61 = vmax.f32 %v2522_v60, 0.0  ;;  %2672 = vst [vmem:[%s5070_s15 + $0xd8] sm:$0xff] %v2644_v29  ;;  %v2551_v57 = vmax.f32 %v2523_v6, 0.0 }
 0x284   : > { %v2564_v4 = vmin.f32 %v2536_v7, 1.0 }
 0x285   : > { %v2565_v13 = vmin.f32 %v2537_v20, 1.0  ;;  %v2578_v38 = vmin.f32 %v2550_v61, 1.0  ;;  %v2579_v58 = vmin.f32 %v2551_v57, 1.0 }
 0x286   : > { %v2627_v50 = vmul.f32 %v2610_v17, %v2564_v4 }
 0x287   : > { %v2628_v63 = vmul.f32 %v2610_v17, %v2565_v13  ;;  %v2641_v47 = vmul.f32 %v2610_v17, %v2578_v38  ;;  %v2642_v31 = vmul.f32 %v2610_v17, %v2579_v58 }
 0x288   : > { %2655 = vst [vmem:[%s5070_s15 + $0x50] sm:$0xff] %v2627_v50 }
 0x289   : > { %2656 = vst [vmem:[%s5070_s15 + $0x58] sm:$0xff] %v2628_v63  ;;  %2669 = vst [vmem:[%s5070_s15 + $0xc0] sm:$0xff] %v2641_v47 }
 0x28a   : > { %2670 = vst [vmem:[%s5070_s15 + $0xc8] sm:$0xff] %v2642_v31 }
 0x28b   : > { %3240 = shalt.err (!%p3237_p3)
}
 0x28c   : > { %s3241_s29 = scalar_lea.hbm %s5242_s0, 3584  ;;  %s3245_s6 = scalar_lea.hbm %s5295_s4, 14336 }
 0x28d   : > { %p3242_p4 = scmp.ne.s32.totalorder %s5242_s0, %s3241_s29  ;;  %p3246_p2 = scmp.lt.u32.totalorder %s5242_s0, %s5295_s4 }
 0x28e   : > { %p3247_p7 = scmp.lt.u32.totalorder %s3245_s6, %s3241_s29  ;;  %p3249_p10 = scmp.lt.u32.totalorder %s3241_s29, %s5242_s0 }
 0x28f   : > { %p3243_p5 = pnand %p3242_p4, %p5460_p11 }
 0x290   : > { %p3248_p6 = por %p3247_p7, %p3246_p2 }
 0x291   : > { %p3244_p0 = pneg %p3243_p5 }
 0x292   : > { %p3250_p12 = por %p3249_p10, %p3248_p6 }
 0x294   : > { %p3251_p8 = pnand %p3250_p12, %p3244_p0 }
 0x296   : > { %3254 = shalt.err (!%p3251_p8)
}
 0x297   : > { %s3307_s8 = smov 256   ;;  %s3308_s15 = smov 16  }
 0x298   : > { %3022 = dma.vmem_to_hbm [thread:$0]  (%p5460_p11), %s5244_s9, 3584, %s5242_s0, %s2674_s12, %s3307_s8, %s3307_s8, %s3308_s15  }
 0x299 PF: > { %p3033_p9 = scmp.ge.s32.totalorder %s3293_s20, 2  ;;  %s2703_s13 = sand.u32 1, %s3281_s17  }
 0x29a   : > { %p5461_p13 = scmp.ne.s32.totalorder %s5316_s28, 0  ;;  %s2704_s11 = scalar_lea.sflag [#allocation6], %s2703_s13 }
 0x29c   : > { %p3029_p1 = pnand %p3033_p9, %p5461_p13 }
 0x29e   : > { %3276 = dma.done.wait (!%p3029_p1), %s2704_s11, 3584  }
 0x29f   : > { %3278 = vsyncadd (!%p3029_p1), %s2704_s11, 4294963712  ;;  %p18_p3 = scmp.ge.s32.totalorder %s3362_s22, 6   ;;  %s5462_s17 = smov %s3285_s18 }
 0x2a0   : > { %s5463_s18 = smov %s3289_s19  ;;  %s5464_s19 = smov %s3374_s25 }
 0x2a1   : > { %s5465_s20 = smov %s3362_s22  ;;  %20 = sbr.rel (!%p18_p3) target bundleno = 7 (0x7), region = 80 }
 0x2a8   :  { %2709 = vsyncpa [#allocation5], 1 }
 0x2a9   :  { %2711 = vsyncpa [#allocation5 + $0x1], 1 }
 0x2aa   :  { %2712 = vsyncpa [#allocation6], 1 }
 0x2ab   :  { %2714 = vsyncpa [#allocation6 + $0x1], 1 }

</bundles_post_ra>
